<compile_context>
chip_gen: v7x
topology: tpu7x:2x2x1
jax: 0.10.0
libtpu: 0.0.40
codegen_flags: <defaults>
</compile_context>

<pallas_src>
import functools

import jax
import jax.numpy as jnp
from jax.experimental import pallas as pl
from jax.experimental.pallas import tpu as pltpu


# ---------------------------------------------------------------------------
# Fused whole-network kernel: one sample per grid step.
# ---------------------------------------------------------------------------
def _quantumnet_kernel(x_ref, t1_ref, b1c_ref, selr1_ref, selc1_ref,
                       t2_ref, b2c_ref, selr2_ref, selc2_ref,
                       w1_ref, b1f_ref, w2_ref, b2f_ref,
                       m_ref, s3_ref, o_ref):
    f32 = jnp.float32
    dot = functools.partial(jnp.dot, preferred_element_type=f32)
    k = 5

    x = x_ref[0].astype(f32)                       # (28, 28) image
    h1c = x.shape[0] - (k - 1)                     # 24

    # --- conv1 (1->2, k=5) + bias + ReLU: 5 banded matmuls, channels in cols.
    acc1 = dot(x[0:h1c, :], t1_ref[0])
    for ki in range(1, k):
        acc1 = acc1 + dot(x[ki:ki + h1c, :], t1_ref[ki])
    r1 = jnp.maximum(acc1 + b1c_ref[...], 0.0)     # (24, 48), cols = c*24 + v

    # --- maxpool 2x2/2 = max over 4 phases of rowsel @ r1 @ colsel.
    p1 = None
    for dr in range(2):
        rs = dot(selr1_ref[dr], r1)                # (12, 48)
        for dc in range(2):
            cand = dot(rs, selc1_ref[dc])          # (12, 24), cols = c*12 + j
            p1 = cand if p1 is None else jnp.maximum(p1, cand)

    # --- conv2 (2->16, k=5) + bias + ReLU: 5 banded matmuls over both inputs.
    h2c = p1.shape[0] - (k - 1)                    # 8
    acc2 = dot(p1[0:h2c, :], t2_ref[0])
    for ki in range(1, k):
        acc2 = acc2 + dot(p1[ki:ki + h2c, :], t2_ref[ki])
    r2 = jnp.maximum(acc2 + b2c_ref[...], 0.0)     # (8, 128), cols = co*8 + v

    # --- maxpool 2x2/2 again.
    p2 = None
    for dr in range(2):
        rs = dot(selr2_ref[dr], r2)                # (4, 128)
        for dc in range(2):
            cand = dot(rs, selc2_ref[dc])          # (4, 64), cols = co*4 + b
            p2 = cand if p2 is None else jnp.maximum(p2, cand)

    # Dropout2d is identity at inference time.
    # --- fc1 + ReLU (flatten order folded into w1 column permutation outside)
    h1 = b1f_ref[...]                              # (1, 64)
    for a in range(p2.shape[0]):
        h1 = h1 + dot(p2[a:a + 1, :], w1_ref[a])
    h1 = jnp.maximum(h1, 0.0)

    # --- fc2 + ReLU (reference applies ReLU before the quantum layer).
    h2 = jnp.maximum(dot(h1, w2_ref[...]) + b2f_ref[...], 0.0)   # (1, 2)
    x0 = h2[:, 0:1]
    x1 = h2[:, 1:2]

    # --- ZZFeatureMap(2, linear, reps=2): psi = D(x)(HxH)D(x)(HxH)|00> with
    # diagonal phases [0, 2*x1+zz, 2*x0+zz, 2*(x0+x1)], zz = 2*(pi-x0)*(pi-x1)
    pi = f32(jnp.pi)
    zz = 2.0 * (pi - x0) * (pi - x1)
    phi1 = 2.0 * x1 + zz
    phi2 = 2.0 * x0 + zz
    phi3 = 2.0 * (x0 + x1)
    c = (jnp.ones_like(x0), jnp.cos(phi1), jnp.cos(phi2), jnp.cos(phi3))
    s = (jnp.zeros_like(x0), jnp.sin(phi1), jnp.sin(phi2), jnp.sin(phi3))
    had = ((1, 1, 1, 1), (1, -1, 1, -1), (1, 1, -1, -1), (1, -1, -1, 1))
    re_v = [had[j][0] * c[0] + had[j][1] * c[1] + had[j][2] * c[2] + had[j][3] * c[3]
            for j in range(4)]
    im_v = [had[j][0] * s[0] + had[j][1] * s[1] + had[j][2] * s[2] + had[j][3] * s[3]
            for j in range(4)]
    re_psi = [0.25 * (c[j] * re_v[j] - s[j] * im_v[j]) for j in range(4)]
    im_psi = [0.25 * (c[j] * im_v[j] + s[j] * re_v[j]) for j in range(4)]

    # --- <psi| M |psi>, M = U_ansatz^T (ZxZ) U_ansatz, real symmetric (SMEM).
    q = jnp.zeros_like(x0)
    for j in range(4):
        tr = jnp.zeros_like(x0)
        ti = jnp.zeros_like(x0)
        for kk in range(4):
            mjk = m_ref[j, kk]                     # scalar read from SMEM
            tr = tr + mjk * re_psi[kk]
            ti = ti + mjk * im_psi[kk]
        q = q + re_psi[j] * tr + im_psi[j] * ti

    # --- fc3 (1->1 affine, scalars from SMEM) fused with cat((y, 1-y), -1).
    y = q * s3_ref[0] + s3_ref[1]                  # (1, 1)
    col = jax.lax.broadcasted_iota(jnp.int32, (1, 2), 1)
    o_ref[0] = jnp.where(col == 0, y, 1.0 - y)


# ---------------------------------------------------------------------------
# Weight-only precompute (plain JAX, outside the kernel, O(params) work).
# ---------------------------------------------------------------------------
def _band_masks(k, in_len, out_len):
    r = jnp.arange(in_len)[:, None]
    v = jnp.arange(out_len)[None, :]
    return jnp.stack([(r - v) == kj for kj in range(k)]).astype(jnp.float32)


def _row_select(out_len):
    i = jnp.arange(out_len)[:, None]
    u = jnp.arange(2 * out_len)[None, :]
    return jnp.stack([u == 2 * i + d for d in (0, 1)]).astype(jnp.float32)


def _col_select(n_ch, in_w, out_w):
    v = jnp.arange(n_ch * in_w)
    b = jnp.arange(n_ch * out_w)
    same = (v[:, None] // in_w) == (b[None, :] // out_w)
    return jnp.stack([same & ((v[:, None] % in_w) == 2 * (b[None, :] % out_w) + d)
                      for d in (0, 1)]).astype(jnp.float32)


def _ansatz_observable(theta):
    """Fold RealAmplitudes(2, reps=1, linear) + <ZxZ> into a 4x4 observable."""
    def ry(t):
        ch, sh = jnp.cos(t / 2.0), jnp.sin(t / 2.0)
        return jnp.stack([jnp.stack([ch, -sh]), jnp.stack([sh, ch])])

    i2 = jnp.eye(2, dtype=jnp.float32)
    cx = jnp.array([[1, 0, 0, 0], [0, 1, 0, 0], [0, 0, 0, 1], [0, 0, 1, 0]],
                   jnp.float32)
    on0 = lambda g: jnp.kron(g, i2)
    on1 = lambda g: jnp.kron(i2, g)
    u = (on1(ry(theta[3])) @ on0(ry(theta[2])) @ cx
         @ on1(ry(theta[1])) @ on0(ry(theta[0])))
    zzd = jnp.diag(jnp.array([1.0, -1.0, -1.0, 1.0], jnp.float32))
    return u.T @ zzd @ u


# ---------------------------------------------------------------------------
# Model
# ---------------------------------------------------------------------------
def init_params(key):
    ks = jax.random.split(key, 11)
    return {
        "conv1_w": jax.random.normal(ks[0], (2, 1, 5, 5), jnp.float32) * 0.1,
        "conv1_b": jax.random.normal(ks[1], (2,), jnp.float32) * 0.1,
        "conv2_w": jax.random.normal(ks[2], (16, 2, 5, 5), jnp.float32) * 0.1,
        "conv2_b": jax.random.normal(ks[3], (16,), jnp.float32) * 0.1,
        "fc1_w": jax.random.normal(ks[4], (64, 256), jnp.float32) * 0.05,
        "fc1_b": jax.random.normal(ks[5], (64,), jnp.float32) * 0.05,
        "fc2_w": jax.random.normal(ks[6], (2, 64), jnp.float32) * 0.1,
        "fc2_b": jax.random.normal(ks[7], (2,), jnp.float32) * 0.1,
        "theta": jax.random.uniform(ks[8], (4,), jnp.float32, 0.0, 2.0 * jnp.pi),
        "fc3_w": jax.random.normal(ks[9], (1, 1), jnp.float32) * 0.5,
        "fc3_b": jax.random.normal(ks[10], (1,), jnp.float32) * 0.1,
    }


@jax.jit
def quantum_net_forward(x, params):
    B, _, hin, _ = x.shape                       # fc1=Linear(256,64) => 28x28
    k = 5
    h1 = hin - (k - 1)                           # 24
    q1 = h1 // 2                                 # 12
    h2 = q1 - (k - 1)                            # 8
    q2 = h2 // 2                                 # 4
    c1, c2 = 2, 16

    xs = x.reshape(B, hin, hin).astype(jnp.float32)

    # conv1 -> banded matrices, output channels concatenated along columns.
    t1 = jnp.einsum("ckj,jrv->ckrv", params["conv1_w"][:, 0],
                    _band_masks(k, hin, h1))             # (2, 5, 28, 24)
    t1 = t1.transpose(1, 2, 0, 3).reshape(k, hin, c1 * h1)      # (5, 28, 48)
    b1c = jnp.repeat(params["conv1_b"], h1)[None, :]            # (1, 48)

    # conv2 -> banded matrices folding both input channels into the rows.
    t2 = jnp.einsum("ockj,jrv->ockrv", params["conv2_w"],
                    _band_masks(k, q1, h2))              # (16, 2, 5, 12, 8)
    t2 = t2.transpose(2, 1, 3, 0, 4).reshape(k, 2 * q1, c2 * h2)  # (5, 24, 128)
    b2c = jnp.repeat(params["conv2_b"], h2)[None, :]            # (1, 128)

    # max-pool selection matrices (0/1 constants).
    selr1 = _row_select(q1)                                     # (2, 12, 24)
    selc1 = _col_select(c1, h1, q1)                             # (2, 48, 24)
    selr2 = _row_select(q2)                                     # (2, 4, 8)
    selc2 = _col_select(c2, h2, q2)                             # (2, 128, 64)

    # fc1 with PyTorch's (co, a, b) flatten order folded into a column perm.
    qi = jnp.arange(c2 * q2 * q2)
    a_i = qi // (c2 * q2)
    co_i = (qi % (c2 * q2)) // q2
    b_i = qi % q2
    perm = co_i * (q2 * q2) + a_i * q2 + b_i
    w1k = params["fc1_w"][:, perm].T.reshape(q2, c2 * q2, 64)   # (4, 64, 64)
    b1f = params["fc1_b"][None, :]                              # (1, 64)
    w2k = params["fc2_w"].T                                     # (64, 2)
    b2f = params["fc2_b"][None, :]                              # (1, 2)

    m = _ansatz_observable(params["theta"])                     # (4, 4) -> SMEM
    s3 = jnp.concatenate([params["fc3_w"].reshape(1),
                          params["fc3_b"].reshape(1)])          # (2,)  -> SMEM

    def full(arr):
        zeros = (0,) * arr.ndim
        return pl.BlockSpec(arr.shape, lambda i, z=zeros: z)

    smem = pl.BlockSpec(memory_space=pltpu.MemorySpace.SMEM)

    out = pl.pallas_call(
        _quantumnet_kernel,
        out_shape=jax.ShapeDtypeStruct((B, 1, 2), jnp.float32),
        grid=(B,),
        in_specs=[pl.BlockSpec((1, hin, hin), lambda i: (i, 0, 0)),
                  full(t1), full(b1c), full(selr1), full(selc1),
                  full(t2), full(b2c), full(selr2), full(selc2),
                  full(w1k), full(b1f), full(w2k), full(b2f),
                  smem, smem],
        out_specs=pl.BlockSpec((1, 1, 2), lambda i: (i, 0, 0)),
        compiler_params=pltpu.CompilerParams(
            dimension_semantics=("parallel",)),
    )(xs, t1, b1c, selr1, selc1, t2, b2c, selr2, selc2,
      w1k, b1f, w2k, b2f, m, s3)
    # TODO(synk): for very large batches, process several samples per grid
    # step to widen the fc/QNN matmuls; one sample/step is optimal at B~O(10).
    return out.reshape(B, 2)


if __name__ == "__main__":
    key = jax.random.PRNGKey(0)
    kx, kp = jax.random.split(key)
    # fc1 = Linear(256, 64) implies MNIST-style 28x28 single-channel input.
    x = jax.random.normal(kx, (2, 1, 28, 28), jnp.float32)
    params = init_params(kp)
    out = quantum_net_forward(x, params)
    out = jax.block_until_ready(out)
    assert out.shape == (2, 2)
    assert bool(jnp.all(jnp.isfinite(out)))
    print("KERNEL_OK")
</pallas_src>

<mosaic_0001>
module attributes {stable_mosaic.version = 11 : i64} {
  func.func @_quantumnet_kernel(%arg0: i32, %arg1: memref<1x28x28xf32, #tpu.memory_space<vmem>>, %arg2: memref<5x28x48xf32, #tpu.memory_space<vmem>>, %arg3: memref<1x48xf32, #tpu.memory_space<vmem>>, %arg4: memref<2x12x24xf32, #tpu.memory_space<vmem>>, %arg5: memref<2x48x24xf32, #tpu.memory_space<vmem>>, %arg6: memref<5x24x128xf32, #tpu.memory_space<vmem>>, %arg7: memref<1x128xf32, #tpu.memory_space<vmem>>, %arg8: memref<2x4x8xf32, #tpu.memory_space<vmem>>, %arg9: memref<2x128x64xf32, #tpu.memory_space<vmem>>, %arg10: memref<4x64x64xf32, #tpu.memory_space<vmem>>, %arg11: memref<1x64xf32, #tpu.memory_space<vmem>>, %arg12: memref<64x2xf32, #tpu.memory_space<vmem>>, %arg13: memref<1x2xf32, #tpu.memory_space<vmem>>, %arg14: memref<4x4xf32, #tpu.memory_space<smem>>, %arg15: memref<2xf32, #tpu.memory_space<smem>>, %arg16: memref<1x1x2xf32, #tpu.memory_space<vmem>>) attributes {dimension_semantics = [#tpu.dimension_semantics<parallel>], iteration_bounds = array<i64: 2>, scalar_prefetch = 0 : i64, scratch_operands = 0 : i64, tpu.core_type = #tpu.core_type<tc>, window_params = [{transform_indices = @transform_0, window_bounds = array<i64: 1, 28, 28>}, {pipeline_mode = #tpu.pipeline_mode<synchronous>, transform_indices = @transform_1, window_bounds = array<i64: 5, 28, 48>}, {pipeline_mode = #tpu.pipeline_mode<synchronous>, transform_indices = @transform_2, window_bounds = array<i64: 1, 48>}, {pipeline_mode = #tpu.pipeline_mode<synchronous>, transform_indices = @transform_3, window_bounds = array<i64: 2, 12, 24>}, {pipeline_mode = #tpu.pipeline_mode<synchronous>, transform_indices = @transform_4, window_bounds = array<i64: 2, 48, 24>}, {pipeline_mode = #tpu.pipeline_mode<synchronous>, transform_indices = @transform_5, window_bounds = array<i64: 5, 24, 128>}, {pipeline_mode = #tpu.pipeline_mode<synchronous>, transform_indices = @transform_6, window_bounds = array<i64: 1, 128>}, {pipeline_mode = #tpu.pipeline_mode<synchronous>, transform_indices = @transform_7, window_bounds = array<i64: 2, 4, 8>}, {pipeline_mode = #tpu.pipeline_mode<synchronous>, transform_indices = @transform_8, window_bounds = array<i64: 2, 128, 64>}, {pipeline_mode = #tpu.pipeline_mode<synchronous>, transform_indices = @transform_9, window_bounds = array<i64: 4, 64, 64>}, {pipeline_mode = #tpu.pipeline_mode<synchronous>, transform_indices = @transform_10, window_bounds = array<i64: 1, 64>}, {pipeline_mode = #tpu.pipeline_mode<synchronous>, transform_indices = @transform_11, window_bounds = array<i64: 64, 2>}, {pipeline_mode = #tpu.pipeline_mode<synchronous>, transform_indices = @transform_12, window_bounds = array<i64: 1, 2>}, {transform_indices = @transform_13, window_bounds = array<i64: 4, 4>}, {transform_indices = @transform_14, window_bounds = array<i64: 2>}, {transform_indices = @transform_15, window_bounds = array<i64: 1, 1, 2>}]} {
    %c0 = arith.constant 0 : index
    %c0_0 = arith.constant 0 : index
    %c0_1 = arith.constant 0 : index
    %0 = vector.load %arg1[%c0, %c0_0, %c0_1] : memref<1x28x28xf32, #tpu.memory_space<vmem>>, vector<1x28x28xf32>
    %1 = vector.shape_cast %0 : vector<1x28x28xf32> to vector<28x28xf32>
    %2 = vector.extract_strided_slice %1 {offsets = [0, 0], sizes = [24, 28], strides = [1, 1]} : vector<28x28xf32> to vector<24x28xf32>
    %c0_2 = arith.constant 0 : index
    %c0_3 = arith.constant 0 : index
    %c0_4 = arith.constant 0 : index
    %3 = vector.load %arg2[%c0_2, %c0_3, %c0_4] : memref<5x28x48xf32, #tpu.memory_space<vmem>>, vector<1x28x48xf32>
    %4 = vector.shape_cast %3 : vector<1x28x48xf32> to vector<28x48xf32>
    %cst = arith.constant dense<0.000000e+00> : vector<24x48xf32>
    %5 = tpu.matmul %2, %4, %cst {dimension_numbers = #tpu.dot_dimension_numbers<[1], [0], [0], [1], [0, 0, 1, 1], [], []>} : vector<24x28xf32>, vector<28x48xf32>, vector<24x48xf32> -> vector<24x48xf32>
    %6 = vector.extract_strided_slice %1 {offsets = [1, 0], sizes = [24, 28], strides = [1, 1]} : vector<28x28xf32> to vector<24x28xf32>
    %c1 = arith.constant 1 : index
    %c0_5 = arith.constant 0 : index
    %c0_6 = arith.constant 0 : index
    %7 = vector.load %arg2[%c1, %c0_5, %c0_6] : memref<5x28x48xf32, #tpu.memory_space<vmem>>, vector<1x28x48xf32>
    %8 = vector.shape_cast %7 : vector<1x28x48xf32> to vector<28x48xf32>
    %cst_7 = arith.constant dense<0.000000e+00> : vector<24x48xf32>
    %9 = tpu.matmul %6, %8, %cst_7 {dimension_numbers = #tpu.dot_dimension_numbers<[1], [0], [0], [1], [0, 0, 1, 1], [], []>} : vector<24x28xf32>, vector<28x48xf32>, vector<24x48xf32> -> vector<24x48xf32>
    %10 = arith.addf %5, %9 : vector<24x48xf32>
    %11 = vector.extract_strided_slice %1 {offsets = [2, 0], sizes = [24, 28], strides = [1, 1]} : vector<28x28xf32> to vector<24x28xf32>
    %c2 = arith.constant 2 : index
    %c0_8 = arith.constant 0 : index
    %c0_9 = arith.constant 0 : index
    %12 = vector.load %arg2[%c2, %c0_8, %c0_9] : memref<5x28x48xf32, #tpu.memory_space<vmem>>, vector<1x28x48xf32>
    %13 = vector.shape_cast %12 : vector<1x28x48xf32> to vector<28x48xf32>
    %cst_10 = arith.constant dense<0.000000e+00> : vector<24x48xf32>
    %14 = tpu.matmul %11, %13, %cst_10 {dimension_numbers = #tpu.dot_dimension_numbers<[1], [0], [0], [1], [0, 0, 1, 1], [], []>} : vector<24x28xf32>, vector<28x48xf32>, vector<24x48xf32> -> vector<24x48xf32>
    %15 = arith.addf %10, %14 : vector<24x48xf32>
    %16 = vector.extract_strided_slice %1 {offsets = [3, 0], sizes = [24, 28], strides = [1, 1]} : vector<28x28xf32> to vector<24x28xf32>
    %c3 = arith.constant 3 : index
    %c0_11 = arith.constant 0 : index
    %c0_12 = arith.constant 0 : index
    %17 = vector.load %arg2[%c3, %c0_11, %c0_12] : memref<5x28x48xf32, #tpu.memory_space<vmem>>, vector<1x28x48xf32>
    %18 = vector.shape_cast %17 : vector<1x28x48xf32> to vector<28x48xf32>
    %cst_13 = arith.constant dense<0.000000e+00> : vector<24x48xf32>
    %19 = tpu.matmul %16, %18, %cst_13 {dimension_numbers = #tpu.dot_dimension_numbers<[1], [0], [0], [1], [0, 0, 1, 1], [], []>} : vector<24x28xf32>, vector<28x48xf32>, vector<24x48xf32> -> vector<24x48xf32>
    %20 = arith.addf %15, %19 : vector<24x48xf32>
    %21 = vector.extract_strided_slice %1 {offsets = [4, 0], sizes = [24, 28], strides = [1, 1]} : vector<28x28xf32> to vector<24x28xf32>
    %c4 = arith.constant 4 : index
    %c0_14 = arith.constant 0 : index
    %c0_15 = arith.constant 0 : index
    %22 = vector.load %arg2[%c4, %c0_14, %c0_15] : memref<5x28x48xf32, #tpu.memory_space<vmem>>, vector<1x28x48xf32>
    %23 = vector.shape_cast %22 : vector<1x28x48xf32> to vector<28x48xf32>
    %cst_16 = arith.constant dense<0.000000e+00> : vector<24x48xf32>
    %24 = tpu.matmul %21, %23, %cst_16 {dimension_numbers = #tpu.dot_dimension_numbers<[1], [0], [0], [1], [0, 0, 1, 1], [], []>} : vector<24x28xf32>, vector<28x48xf32>, vector<24x48xf32> -> vector<24x48xf32>
    %25 = arith.addf %20, %24 : vector<24x48xf32>
    %c0_17 = arith.constant 0 : index
    %c0_18 = arith.constant 0 : index
    %26 = vector.load %arg3[%c0_17, %c0_18] : memref<1x48xf32, #tpu.memory_space<vmem>>, vector<1x48xf32>
    %27 = vector.broadcast %26 : vector<1x48xf32> to vector<24x48xf32>
    %28 = arith.addf %25, %27 : vector<24x48xf32>
    %cst_19 = arith.constant 0.000000e+00 : f32
    %29 = vector.broadcast %cst_19 : f32 to vector<24x48xf32>
    %30 = arith.maximumf %28, %29 : vector<24x48xf32>
    %c0_20 = arith.constant 0 : index
    %c0_21 = arith.constant 0 : index
    %c0_22 = arith.constant 0 : index
    %31 = vector.load %arg4[%c0_20, %c0_21, %c0_22] : memref<2x12x24xf32, #tpu.memory_space<vmem>>, vector<1x12x24xf32>
    %32 = vector.shape_cast %31 : vector<1x12x24xf32> to vector<12x24xf32>
    %cst_23 = arith.constant dense<0.000000e+00> : vector<12x48xf32>
    %33 = tpu.matmul %32, %30, %cst_23 {dimension_numbers = #tpu.dot_dimension_numbers<[1], [0], [0], [1], [0, 0, 1, 1], [], []>} : vector<12x24xf32>, vector<24x48xf32>, vector<12x48xf32> -> vector<12x48xf32>
    %c0_24 = arith.constant 0 : index
    %c0_25 = arith.constant 0 : index
    %c0_26 = arith.constant 0 : index
    %34 = vector.load %arg5[%c0_24, %c0_25, %c0_26] : memref<2x48x24xf32, #tpu.memory_space<vmem>>, vector<1x48x24xf32>
    %35 = vector.shape_cast %34 : vector<1x48x24xf32> to vector<48x24xf32>
    %cst_27 = arith.constant dense<0.000000e+00> : vector<12x24xf32>
    %36 = tpu.matmul %33, %35, %cst_27 {dimension_numbers = #tpu.dot_dimension_numbers<[1], [0], [0], [1], [0, 0, 1, 1], [], []>} : vector<12x48xf32>, vector<48x24xf32>, vector<12x24xf32> -> vector<12x24xf32>
    %c1_28 = arith.constant 1 : index
    %c0_29 = arith.constant 0 : index
    %c0_30 = arith.constant 0 : index
    %37 = vector.load %arg5[%c1_28, %c0_29, %c0_30] : memref<2x48x24xf32, #tpu.memory_space<vmem>>, vector<1x48x24xf32>
    %38 = vector.shape_cast %37 : vector<1x48x24xf32> to vector<48x24xf32>
    %cst_31 = arith.constant dense<0.000000e+00> : vector<12x24xf32>
    %39 = tpu.matmul %33, %38, %cst_31 {dimension_numbers = #tpu.dot_dimension_numbers<[1], [0], [0], [1], [0, 0, 1, 1], [], []>} : vector<12x48xf32>, vector<48x24xf32>, vector<12x24xf32> -> vector<12x24xf32>
    %40 = arith.maximumf %36, %39 : vector<12x24xf32>
    %c1_32 = arith.constant 1 : index
    %c0_33 = arith.constant 0 : index
    %c0_34 = arith.constant 0 : index
    %41 = vector.load %arg4[%c1_32, %c0_33, %c0_34] : memref<2x12x24xf32, #tpu.memory_space<vmem>>, vector<1x12x24xf32>
    %42 = vector.shape_cast %41 : vector<1x12x24xf32> to vector<12x24xf32>
    %cst_35 = arith.constant dense<0.000000e+00> : vector<12x48xf32>
    %43 = tpu.matmul %42, %30, %cst_35 {dimension_numbers = #tpu.dot_dimension_numbers<[1], [0], [0], [1], [0, 0, 1, 1], [], []>} : vector<12x24xf32>, vector<24x48xf32>, vector<12x48xf32> -> vector<12x48xf32>
    %c0_36 = arith.constant 0 : index
    %c0_37 = arith.constant 0 : index
    %c0_38 = arith.constant 0 : index
    %44 = vector.load %arg5[%c0_36, %c0_37, %c0_38] : memref<2x48x24xf32, #tpu.memory_space<vmem>>, vector<1x48x24xf32>
    %45 = vector.shape_cast %44 : vector<1x48x24xf32> to vector<48x24xf32>
    %cst_39 = arith.constant dense<0.000000e+00> : vector<12x24xf32>
    %46 = tpu.matmul %43, %45, %cst_39 {dimension_numbers = #tpu.dot_dimension_numbers<[1], [0], [0], [1], [0, 0, 1, 1], [], []>} : vector<12x48xf32>, vector<48x24xf32>, vector<12x24xf32> -> vector<12x24xf32>
    %47 = arith.maximumf %40, %46 : vector<12x24xf32>
    %c1_40 = arith.constant 1 : index
    %c0_41 = arith.constant 0 : index
    %c0_42 = arith.constant 0 : index
    %48 = vector.load %arg5[%c1_40, %c0_41, %c0_42] : memref<2x48x24xf32, #tpu.memory_space<vmem>>, vector<1x48x24xf32>
    %49 = vector.shape_cast %48 : vector<1x48x24xf32> to vector<48x24xf32>
    %cst_43 = arith.constant dense<0.000000e+00> : vector<12x24xf32>
    %50 = tpu.matmul %43, %49, %cst_43 {dimension_numbers = #tpu.dot_dimension_numbers<[1], [0], [0], [1], [0, 0, 1, 1], [], []>} : vector<12x48xf32>, vector<48x24xf32>, vector<12x24xf32> -> vector<12x24xf32>
    %51 = arith.maximumf %47, %50 : vector<12x24xf32>
    %52 = vector.extract_strided_slice %51 {offsets = [0, 0], sizes = [8, 24], strides = [1, 1]} : vector<12x24xf32> to vector<8x24xf32>
    %c0_44 = arith.constant 0 : index
    %c0_45 = arith.constant 0 : index
    %c0_46 = arith.constant 0 : index
    %53 = vector.load %arg6[%c0_44, %c0_45, %c0_46] : memref<5x24x128xf32, #tpu.memory_space<vmem>>, vector<1x24x128xf32>
    %54 = vector.shape_cast %53 : vector<1x24x128xf32> to vector<24x128xf32>
    %cst_47 = arith.constant dense<0.000000e+00> : vector<8x128xf32>
    %55 = tpu.matmul %52, %54, %cst_47 {dimension_numbers = #tpu.dot_dimension_numbers<[1], [0], [0], [1], [0, 0, 1, 1], [], []>} : vector<8x24xf32>, vector<24x128xf32>, vector<8x128xf32> -> vector<8x128xf32>
    %56 = vector.extract_strided_slice %51 {offsets = [1, 0], sizes = [8, 24], strides = [1, 1]} : vector<12x24xf32> to vector<8x24xf32>
    %c1_48 = arith.constant 1 : index
    %c0_49 = arith.constant 0 : index
    %c0_50 = arith.constant 0 : index
    %57 = vector.load %arg6[%c1_48, %c0_49, %c0_50] : memref<5x24x128xf32, #tpu.memory_space<vmem>>, vector<1x24x128xf32>
    %58 = vector.shape_cast %57 : vector<1x24x128xf32> to vector<24x128xf32>
    %cst_51 = arith.constant dense<0.000000e+00> : vector<8x128xf32>
    %59 = tpu.matmul %56, %58, %cst_51 {dimension_numbers = #tpu.dot_dimension_numbers<[1], [0], [0], [1], [0, 0, 1, 1], [], []>} : vector<8x24xf32>, vector<24x128xf32>, vector<8x128xf32> -> vector<8x128xf32>
    %60 = arith.addf %55, %59 : vector<8x128xf32>
    %61 = vector.extract_strided_slice %51 {offsets = [2, 0], sizes = [8, 24], strides = [1, 1]} : vector<12x24xf32> to vector<8x24xf32>
    %c2_52 = arith.constant 2 : index
    %c0_53 = arith.constant 0 : index
    %c0_54 = arith.constant 0 : index
    %62 = vector.load %arg6[%c2_52, %c0_53, %c0_54] : memref<5x24x128xf32, #tpu.memory_space<vmem>>, vector<1x24x128xf32>
    %63 = vector.shape_cast %62 : vector<1x24x128xf32> to vector<24x128xf32>
    %cst_55 = arith.constant dense<0.000000e+00> : vector<8x128xf32>
    %64 = tpu.matmul %61, %63, %cst_55 {dimension_numbers = #tpu.dot_dimension_numbers<[1], [0], [0], [1], [0, 0, 1, 1], [], []>} : vector<8x24xf32>, vector<24x128xf32>, vector<8x128xf32> -> vector<8x128xf32>
    %65 = arith.addf %60, %64 : vector<8x128xf32>
    %66 = vector.extract_strided_slice %51 {offsets = [3, 0], sizes = [8, 24], strides = [1, 1]} : vector<12x24xf32> to vector<8x24xf32>
    %c3_56 = arith.constant 3 : index
    %c0_57 = arith.constant 0 : index
    %c0_58 = arith.constant 0 : index
    %67 = vector.load %arg6[%c3_56, %c0_57, %c0_58] : memref<5x24x128xf32, #tpu.memory_space<vmem>>, vector<1x24x128xf32>
    %68 = vector.shape_cast %67 : vector<1x24x128xf32> to vector<24x128xf32>
    %cst_59 = arith.constant dense<0.000000e+00> : vector<8x128xf32>
    %69 = tpu.matmul %66, %68, %cst_59 {dimension_numbers = #tpu.dot_dimension_numbers<[1], [0], [0], [1], [0, 0, 1, 1], [], []>} : vector<8x24xf32>, vector<24x128xf32>, vector<8x128xf32> -> vector<8x128xf32>
    %70 = arith.addf %65, %69 : vector<8x128xf32>
    %71 = vector.extract_strided_slice %51 {offsets = [4, 0], sizes = [8, 24], strides = [1, 1]} : vector<12x24xf32> to vector<8x24xf32>
    %c4_60 = arith.constant 4 : index
    %c0_61 = arith.constant 0 : index
    %c0_62 = arith.constant 0 : index
    %72 = vector.load %arg6[%c4_60, %c0_61, %c0_62] : memref<5x24x128xf32, #tpu.memory_space<vmem>>, vector<1x24x128xf32>
    %73 = vector.shape_cast %72 : vector<1x24x128xf32> to vector<24x128xf32>
    %cst_63 = arith.constant dense<0.000000e+00> : vector<8x128xf32>
    %74 = tpu.matmul %71, %73, %cst_63 {dimension_numbers = #tpu.dot_dimension_numbers<[1], [0], [0], [1], [0, 0, 1, 1], [], []>} : vector<8x24xf32>, vector<24x128xf32>, vector<8x128xf32> -> vector<8x128xf32>
    %75 = arith.addf %70, %74 : vector<8x128xf32>
    %c0_64 = arith.constant 0 : index
    %c0_65 = arith.constant 0 : index
    %76 = vector.load %arg7[%c0_64, %c0_65] : memref<1x128xf32, #tpu.memory_space<vmem>>, vector<1x128xf32>
    %77 = vector.broadcast %76 : vector<1x128xf32> to vector<8x128xf32>
    %78 = arith.addf %75, %77 : vector<8x128xf32>
    %cst_66 = arith.constant 0.000000e+00 : f32
    %79 = vector.broadcast %cst_66 : f32 to vector<8x128xf32>
    %80 = arith.maximumf %78, %79 : vector<8x128xf32>
    %c0_67 = arith.constant 0 : index
    %c0_68 = arith.constant 0 : index
    %c0_69 = arith.constant 0 : index
    %81 = vector.load %arg8[%c0_67, %c0_68, %c0_69] : memref<2x4x8xf32, #tpu.memory_space<vmem>>, vector<1x4x8xf32>
    %82 = vector.shape_cast %81 : vector<1x4x8xf32> to vector<4x8xf32>
    %cst_70 = arith.constant dense<0.000000e+00> : vector<4x128xf32>
    %83 = tpu.matmul %82, %80, %cst_70 {dimension_numbers = #tpu.dot_dimension_numbers<[1], [0], [0], [1], [0, 0, 1, 1], [], []>} : vector<4x8xf32>, vector<8x128xf32>, vector<4x128xf32> -> vector<4x128xf32>
    %c0_71 = arith.constant 0 : index
    %c0_72 = arith.constant 0 : index
    %c0_73 = arith.constant 0 : index
    %84 = vector.load %arg9[%c0_71, %c0_72, %c0_73] : memref<2x128x64xf32, #tpu.memory_space<vmem>>, vector<1x128x64xf32>
    %85 = vector.shape_cast %84 : vector<1x128x64xf32> to vector<128x64xf32>
    %cst_74 = arith.constant dense<0.000000e+00> : vector<4x64xf32>
    %86 = tpu.matmul %83, %85, %cst_74 {dimension_numbers = #tpu.dot_dimension_numbers<[1], [0], [0], [1], [0, 0, 1, 1], [], []>} : vector<4x128xf32>, vector<128x64xf32>, vector<4x64xf32> -> vector<4x64xf32>
    %c1_75 = arith.constant 1 : index
    %c0_76 = arith.constant 0 : index
    %c0_77 = arith.constant 0 : index
    %87 = vector.load %arg9[%c1_75, %c0_76, %c0_77] : memref<2x128x64xf32, #tpu.memory_space<vmem>>, vector<1x128x64xf32>
    %88 = vector.shape_cast %87 : vector<1x128x64xf32> to vector<128x64xf32>
    %cst_78 = arith.constant dense<0.000000e+00> : vector<4x64xf32>
    %89 = tpu.matmul %83, %88, %cst_78 {dimension_numbers = #tpu.dot_dimension_numbers<[1], [0], [0], [1], [0, 0, 1, 1], [], []>} : vector<4x128xf32>, vector<128x64xf32>, vector<4x64xf32> -> vector<4x64xf32>
    %90 = arith.maximumf %86, %89 : vector<4x64xf32>
    %c1_79 = arith.constant 1 : index
    %c0_80 = arith.constant 0 : index
    %c0_81 = arith.constant 0 : index
    %91 = vector.load %arg8[%c1_79, %c0_80, %c0_81] : memref<2x4x8xf32, #tpu.memory_space<vmem>>, vector<1x4x8xf32>
    %92 = vector.shape_cast %91 : vector<1x4x8xf32> to vector<4x8xf32>
    %cst_82 = arith.constant dense<0.000000e+00> : vector<4x128xf32>
    %93 = tpu.matmul %92, %80, %cst_82 {dimension_numbers = #tpu.dot_dimension_numbers<[1], [0], [0], [1], [0, 0, 1, 1], [], []>} : vector<4x8xf32>, vector<8x128xf32>, vector<4x128xf32> -> vector<4x128xf32>
    %c0_83 = arith.constant 0 : index
    %c0_84 = arith.constant 0 : index
    %c0_85 = arith.constant 0 : index
    %94 = vector.load %arg9[%c0_83, %c0_84, %c0_85] : memref<2x128x64xf32, #tpu.memory_space<vmem>>, vector<1x128x64xf32>
    %95 = vector.shape_cast %94 : vector<1x128x64xf32> to vector<128x64xf32>
    %cst_86 = arith.constant dense<0.000000e+00> : vector<4x64xf32>
    %96 = tpu.matmul %93, %95, %cst_86 {dimension_numbers = #tpu.dot_dimension_numbers<[1], [0], [0], [1], [0, 0, 1, 1], [], []>} : vector<4x128xf32>, vector<128x64xf32>, vector<4x64xf32> -> vector<4x64xf32>
    %97 = arith.maximumf %90, %96 : vector<4x64xf32>
    %c1_87 = arith.constant 1 : index
    %c0_88 = arith.constant 0 : index
    %c0_89 = arith.constant 0 : index
    %98 = vector.load %arg9[%c1_87, %c0_88, %c0_89] : memref<2x128x64xf32, #tpu.memory_space<vmem>>, vector<1x128x64xf32>
    %99 = vector.shape_cast %98 : vector<1x128x64xf32> to vector<128x64xf32>
    %cst_90 = arith.constant dense<0.000000e+00> : vector<4x64xf32>
    %100 = tpu.matmul %93, %99, %cst_90 {dimension_numbers = #tpu.dot_dimension_numbers<[1], [0], [0], [1], [0, 0, 1, 1], [], []>} : vector<4x128xf32>, vector<128x64xf32>, vector<4x64xf32> -> vector<4x64xf32>
    %101 = arith.maximumf %97, %100 : vector<4x64xf32>
    %c0_91 = arith.constant 0 : index
    %c0_92 = arith.constant 0 : index
    %102 = vector.load %arg11[%c0_91, %c0_92] : memref<1x64xf32, #tpu.memory_space<vmem>>, vector<1x64xf32>
    %103 = vector.extract_strided_slice %101 {offsets = [0, 0], sizes = [1, 64], strides = [1, 1]} : vector<4x64xf32> to vector<1x64xf32>
    %c0_93 = arith.constant 0 : index
    %c0_94 = arith.constant 0 : index
    %c0_95 = arith.constant 0 : index
    %104 = vector.load %arg10[%c0_93, %c0_94, %c0_95] : memref<4x64x64xf32, #tpu.memory_space<vmem>>, vector<1x64x64xf32>
    %105 = vector.shape_cast %104 : vector<1x64x64xf32> to vector<64x64xf32>
    %cst_96 = arith.constant dense<0.000000e+00> : vector<1x64xf32>
    %106 = tpu.matmul %103, %105, %cst_96 {dimension_numbers = #tpu.dot_dimension_numbers<[1], [0], [0], [1], [0, 0, 1, 1], [], []>} : vector<1x64xf32>, vector<64x64xf32>, vector<1x64xf32> -> vector<1x64xf32>
    %107 = arith.addf %102, %106 : vector<1x64xf32>
    %108 = vector.extract_strided_slice %101 {offsets = [1, 0], sizes = [1, 64], strides = [1, 1]} : vector<4x64xf32> to vector<1x64xf32>
    %c1_97 = arith.constant 1 : index
    %c0_98 = arith.constant 0 : index
    %c0_99 = arith.constant 0 : index
    %109 = vector.load %arg10[%c1_97, %c0_98, %c0_99] : memref<4x64x64xf32, #tpu.memory_space<vmem>>, vector<1x64x64xf32>
    %110 = vector.shape_cast %109 : vector<1x64x64xf32> to vector<64x64xf32>
    %cst_100 = arith.constant dense<0.000000e+00> : vector<1x64xf32>
    %111 = tpu.matmul %108, %110, %cst_100 {dimension_numbers = #tpu.dot_dimension_numbers<[1], [0], [0], [1], [0, 0, 1, 1], [], []>} : vector<1x64xf32>, vector<64x64xf32>, vector<1x64xf32> -> vector<1x64xf32>
    %112 = arith.addf %107, %111 : vector<1x64xf32>
    %113 = vector.extract_strided_slice %101 {offsets = [2, 0], sizes = [1, 64], strides = [1, 1]} : vector<4x64xf32> to vector<1x64xf32>
    %c2_101 = arith.constant 2 : index
    %c0_102 = arith.constant 0 : index
    %c0_103 = arith.constant 0 : index
    %114 = vector.load %arg10[%c2_101, %c0_102, %c0_103] : memref<4x64x64xf32, #tpu.memory_space<vmem>>, vector<1x64x64xf32>
    %115 = vector.shape_cast %114 : vector<1x64x64xf32> to vector<64x64xf32>
    %cst_104 = arith.constant dense<0.000000e+00> : vector<1x64xf32>
    %116 = tpu.matmul %113, %115, %cst_104 {dimension_numbers = #tpu.dot_dimension_numbers<[1], [0], [0], [1], [0, 0, 1, 1], [], []>} : vector<1x64xf32>, vector<64x64xf32>, vector<1x64xf32> -> vector<1x64xf32>
    %117 = arith.addf %112, %116 : vector<1x64xf32>
    %118 = vector.extract_strided_slice %101 {offsets = [3, 0], sizes = [1, 64], strides = [1, 1]} : vector<4x64xf32> to vector<1x64xf32>
    %c3_105 = arith.constant 3 : index
    %c0_106 = arith.constant 0 : index
    %c0_107 = arith.constant 0 : index
    %119 = vector.load %arg10[%c3_105, %c0_106, %c0_107] : memref<4x64x64xf32, #tpu.memory_space<vmem>>, vector<1x64x64xf32>
    %120 = vector.shape_cast %119 : vector<1x64x64xf32> to vector<64x64xf32>
    %cst_108 = arith.constant dense<0.000000e+00> : vector<1x64xf32>
    %121 = tpu.matmul %118, %120, %cst_108 {dimension_numbers = #tpu.dot_dimension_numbers<[1], [0], [0], [1], [0, 0, 1, 1], [], []>} : vector<1x64xf32>, vector<64x64xf32>, vector<1x64xf32> -> vector<1x64xf32>
    %122 = arith.addf %117, %121 : vector<1x64xf32>
    %cst_109 = arith.constant 0.000000e+00 : f32
    %123 = vector.broadcast %cst_109 : f32 to vector<1x64xf32>
    %124 = arith.maximumf %122, %123 : vector<1x64xf32>
    %c0_110 = arith.constant 0 : index
    %c0_111 = arith.constant 0 : index
    %125 = vector.load %arg12[%c0_110, %c0_111] : memref<64x2xf32, #tpu.memory_space<vmem>>, vector<64x2xf32>
    %cst_112 = arith.constant dense<0.000000e+00> : vector<1x2xf32>
    %126 = tpu.matmul %124, %125, %cst_112 {dimension_numbers = #tpu.dot_dimension_numbers<[1], [0], [0], [1], [0, 0, 1, 1], [], []>} : vector<1x64xf32>, vector<64x2xf32>, vector<1x2xf32> -> vector<1x2xf32>
    %c0_113 = arith.constant 0 : index
    %c0_114 = arith.constant 0 : index
    %127 = vector.load %arg13[%c0_113, %c0_114] : memref<1x2xf32, #tpu.memory_space<vmem>>, vector<1x2xf32>
    %128 = arith.addf %126, %127 : vector<1x2xf32>
    %cst_115 = arith.constant 0.000000e+00 : f32
    %129 = vector.broadcast %cst_115 : f32 to vector<1x2xf32>
    %130 = arith.maximumf %128, %129 : vector<1x2xf32>
    %131 = vector.extract_strided_slice %130 {offsets = [0, 0], sizes = [1, 1], strides = [1, 1]} : vector<1x2xf32> to vector<1x1xf32>
    %132 = vector.extract_strided_slice %130 {offsets = [0, 1], sizes = [1, 1], strides = [1, 1]} : vector<1x2xf32> to vector<1x1xf32>
    %cst_116 = arith.constant 3.14159274 : f32
    %133 = vector.broadcast %cst_116 : f32 to vector<1x1xf32>
    %134 = arith.subf %133, %131 : vector<1x1xf32>
    %cst_117 = arith.constant 2.000000e+00 : f32
    %135 = vector.broadcast %cst_117 : f32 to vector<1x1xf32>
    %136 = arith.mulf %135, %134 : vector<1x1xf32>
    %cst_118 = arith.constant 3.14159274 : f32
    %137 = vector.broadcast %cst_118 : f32 to vector<1x1xf32>
    %138 = arith.subf %137, %132 : vector<1x1xf32>
    %139 = arith.mulf %136, %138 : vector<1x1xf32>
    %cst_119 = arith.constant 2.000000e+00 : f32
    %140 = vector.broadcast %cst_119 : f32 to vector<1x1xf32>
    %141 = arith.mulf %140, %132 : vector<1x1xf32>
    %142 = arith.addf %141, %139 : vector<1x1xf32>
    %cst_120 = arith.constant 2.000000e+00 : f32
    %143 = vector.broadcast %cst_120 : f32 to vector<1x1xf32>
    %144 = arith.mulf %143, %131 : vector<1x1xf32>
    %145 = arith.addf %144, %139 : vector<1x1xf32>
    %146 = arith.addf %131, %132 : vector<1x1xf32>
    %cst_121 = arith.constant 2.000000e+00 : f32
    %147 = vector.broadcast %cst_121 : f32 to vector<1x1xf32>
    %148 = arith.mulf %147, %146 : vector<1x1xf32>
    %cst_122 = arith.constant 1.000000e+00 : f32
    %149 = vector.broadcast %cst_122 : f32 to vector<1x1xf32>
    %150 = math.cos %142 : vector<1x1xf32>
    %151 = math.cos %145 : vector<1x1xf32>
    %152 = math.cos %148 : vector<1x1xf32>
    %cst_123 = arith.constant 0.000000e+00 : f32
    %153 = vector.broadcast %cst_123 : f32 to vector<1x1xf32>
    %154 = math.sin %142 : vector<1x1xf32>
    %155 = math.sin %145 : vector<1x1xf32>
    %156 = math.sin %148 : vector<1x1xf32>
    %cst_124 = arith.constant 1.000000e+00 : f32
    %157 = vector.broadcast %cst_124 : f32 to vector<1x1xf32>
    %158 = arith.mulf %157, %149 : vector<1x1xf32>
    %cst_125 = arith.constant 1.000000e+00 : f32
    %159 = vector.broadcast %cst_125 : f32 to vector<1x1xf32>
    %160 = arith.mulf %159, %150 : vector<1x1xf32>
    %161 = arith.addf %158, %160 : vector<1x1xf32>
    %cst_126 = arith.constant 1.000000e+00 : f32
    %162 = vector.broadcast %cst_126 : f32 to vector<1x1xf32>
    %163 = arith.mulf %162, %151 : vector<1x1xf32>
    %164 = arith.addf %161, %163 : vector<1x1xf32>
    %cst_127 = arith.constant 1.000000e+00 : f32
    %165 = vector.broadcast %cst_127 : f32 to vector<1x1xf32>
    %166 = arith.mulf %165, %152 : vector<1x1xf32>
    %167 = arith.addf %164, %166 : vector<1x1xf32>
    %cst_128 = arith.constant 1.000000e+00 : f32
    %168 = vector.broadcast %cst_128 : f32 to vector<1x1xf32>
    %169 = arith.mulf %168, %149 : vector<1x1xf32>
    %cst_129 = arith.constant -1.000000e+00 : f32
    %170 = vector.broadcast %cst_129 : f32 to vector<1x1xf32>
    %171 = arith.mulf %170, %150 : vector<1x1xf32>
    %172 = arith.addf %169, %171 : vector<1x1xf32>
    %cst_130 = arith.constant 1.000000e+00 : f32
    %173 = vector.broadcast %cst_130 : f32 to vector<1x1xf32>
    %174 = arith.mulf %173, %151 : vector<1x1xf32>
    %175 = arith.addf %172, %174 : vector<1x1xf32>
    %cst_131 = arith.constant -1.000000e+00 : f32
    %176 = vector.broadcast %cst_131 : f32 to vector<1x1xf32>
    %177 = arith.mulf %176, %152 : vector<1x1xf32>
    %178 = arith.addf %175, %177 : vector<1x1xf32>
    %cst_132 = arith.constant 1.000000e+00 : f32
    %179 = vector.broadcast %cst_132 : f32 to vector<1x1xf32>
    %180 = arith.mulf %179, %149 : vector<1x1xf32>
    %cst_133 = arith.constant 1.000000e+00 : f32
    %181 = vector.broadcast %cst_133 : f32 to vector<1x1xf32>
    %182 = arith.mulf %181, %150 : vector<1x1xf32>
    %183 = arith.addf %180, %182 : vector<1x1xf32>
    %cst_134 = arith.constant -1.000000e+00 : f32
    %184 = vector.broadcast %cst_134 : f32 to vector<1x1xf32>
    %185 = arith.mulf %184, %151 : vector<1x1xf32>
    %186 = arith.addf %183, %185 : vector<1x1xf32>
    %cst_135 = arith.constant -1.000000e+00 : f32
    %187 = vector.broadcast %cst_135 : f32 to vector<1x1xf32>
    %188 = arith.mulf %187, %152 : vector<1x1xf32>
    %189 = arith.addf %186, %188 : vector<1x1xf32>
    %cst_136 = arith.constant 1.000000e+00 : f32
    %190 = vector.broadcast %cst_136 : f32 to vector<1x1xf32>
    %191 = arith.mulf %190, %149 : vector<1x1xf32>
    %cst_137 = arith.constant -1.000000e+00 : f32
    %192 = vector.broadcast %cst_137 : f32 to vector<1x1xf32>
    %193 = arith.mulf %192, %150 : vector<1x1xf32>
    %194 = arith.addf %191, %193 : vector<1x1xf32>
    %cst_138 = arith.constant -1.000000e+00 : f32
    %195 = vector.broadcast %cst_138 : f32 to vector<1x1xf32>
    %196 = arith.mulf %195, %151 : vector<1x1xf32>
    %197 = arith.addf %194, %196 : vector<1x1xf32>
    %cst_139 = arith.constant 1.000000e+00 : f32
    %198 = vector.broadcast %cst_139 : f32 to vector<1x1xf32>
    %199 = arith.mulf %198, %152 : vector<1x1xf32>
    %200 = arith.addf %197, %199 : vector<1x1xf32>
    %cst_140 = arith.constant 1.000000e+00 : f32
    %201 = vector.broadcast %cst_140 : f32 to vector<1x1xf32>
    %202 = arith.mulf %201, %153 : vector<1x1xf32>
    %cst_141 = arith.constant 1.000000e+00 : f32
    %203 = vector.broadcast %cst_141 : f32 to vector<1x1xf32>
    %204 = arith.mulf %203, %154 : vector<1x1xf32>
    %205 = arith.addf %202, %204 : vector<1x1xf32>
    %cst_142 = arith.constant 1.000000e+00 : f32
    %206 = vector.broadcast %cst_142 : f32 to vector<1x1xf32>
    %207 = arith.mulf %206, %155 : vector<1x1xf32>
    %208 = arith.addf %205, %207 : vector<1x1xf32>
    %cst_143 = arith.constant 1.000000e+00 : f32
    %209 = vector.broadcast %cst_143 : f32 to vector<1x1xf32>
    %210 = arith.mulf %209, %156 : vector<1x1xf32>
    %211 = arith.addf %208, %210 : vector<1x1xf32>
    %cst_144 = arith.constant 1.000000e+00 : f32
    %212 = vector.broadcast %cst_144 : f32 to vector<1x1xf32>
    %213 = arith.mulf %212, %153 : vector<1x1xf32>
    %cst_145 = arith.constant -1.000000e+00 : f32
    %214 = vector.broadcast %cst_145 : f32 to vector<1x1xf32>
    %215 = arith.mulf %214, %154 : vector<1x1xf32>
    %216 = arith.addf %213, %215 : vector<1x1xf32>
    %cst_146 = arith.constant 1.000000e+00 : f32
    %217 = vector.broadcast %cst_146 : f32 to vector<1x1xf32>
    %218 = arith.mulf %217, %155 : vector<1x1xf32>
    %219 = arith.addf %216, %218 : vector<1x1xf32>
    %cst_147 = arith.constant -1.000000e+00 : f32
    %220 = vector.broadcast %cst_147 : f32 to vector<1x1xf32>
    %221 = arith.mulf %220, %156 : vector<1x1xf32>
    %222 = arith.addf %219, %221 : vector<1x1xf32>
    %cst_148 = arith.constant 1.000000e+00 : f32
    %223 = vector.broadcast %cst_148 : f32 to vector<1x1xf32>
    %224 = arith.mulf %223, %153 : vector<1x1xf32>
    %cst_149 = arith.constant 1.000000e+00 : f32
    %225 = vector.broadcast %cst_149 : f32 to vector<1x1xf32>
    %226 = arith.mulf %225, %154 : vector<1x1xf32>
    %227 = arith.addf %224, %226 : vector<1x1xf32>
    %cst_150 = arith.constant -1.000000e+00 : f32
    %228 = vector.broadcast %cst_150 : f32 to vector<1x1xf32>
    %229 = arith.mulf %228, %155 : vector<1x1xf32>
    %230 = arith.addf %227, %229 : vector<1x1xf32>
    %cst_151 = arith.constant -1.000000e+00 : f32
    %231 = vector.broadcast %cst_151 : f32 to vector<1x1xf32>
    %232 = arith.mulf %231, %156 : vector<1x1xf32>
    %233 = arith.addf %230, %232 : vector<1x1xf32>
    %cst_152 = arith.constant 1.000000e+00 : f32
    %234 = vector.broadcast %cst_152 : f32 to vector<1x1xf32>
    %235 = arith.mulf %234, %153 : vector<1x1xf32>
    %cst_153 = arith.constant -1.000000e+00 : f32
    %236 = vector.broadcast %cst_153 : f32 to vector<1x1xf32>
    %237 = arith.mulf %236, %154 : vector<1x1xf32>
    %238 = arith.addf %235, %237 : vector<1x1xf32>
    %cst_154 = arith.constant -1.000000e+00 : f32
    %239 = vector.broadcast %cst_154 : f32 to vector<1x1xf32>
    %240 = arith.mulf %239, %155 : vector<1x1xf32>
    %241 = arith.addf %238, %240 : vector<1x1xf32>
    %cst_155 = arith.constant 1.000000e+00 : f32
    %242 = vector.broadcast %cst_155 : f32 to vector<1x1xf32>
    %243 = arith.mulf %242, %156 : vector<1x1xf32>
    %244 = arith.addf %241, %243 : vector<1x1xf32>
    %245 = arith.mulf %149, %167 : vector<1x1xf32>
    %246 = arith.mulf %153, %211 : vector<1x1xf32>
    %247 = arith.subf %245, %246 : vector<1x1xf32>
    %cst_156 = arith.constant 2.500000e-01 : f32
    %248 = vector.broadcast %cst_156 : f32 to vector<1x1xf32>
    %249 = arith.mulf %248, %247 : vector<1x1xf32>
    %250 = arith.mulf %150, %178 : vector<1x1xf32>
    %251 = arith.mulf %154, %222 : vector<1x1xf32>
    %252 = arith.subf %250, %251 : vector<1x1xf32>
    %cst_157 = arith.constant 2.500000e-01 : f32
    %253 = vector.broadcast %cst_157 : f32 to vector<1x1xf32>
    %254 = arith.mulf %253, %252 : vector<1x1xf32>
    %255 = arith.mulf %151, %189 : vector<1x1xf32>
    %256 = arith.mulf %155, %233 : vector<1x1xf32>
    %257 = arith.subf %255, %256 : vector<1x1xf32>
    %cst_158 = arith.constant 2.500000e-01 : f32
    %258 = vector.broadcast %cst_158 : f32 to vector<1x1xf32>
    %259 = arith.mulf %258, %257 : vector<1x1xf32>
    %260 = arith.mulf %152, %200 : vector<1x1xf32>
    %261 = arith.mulf %156, %244 : vector<1x1xf32>
    %262 = arith.subf %260, %261 : vector<1x1xf32>
    %cst_159 = arith.constant 2.500000e-01 : f32
    %263 = vector.broadcast %cst_159 : f32 to vector<1x1xf32>
    %264 = arith.mulf %263, %262 : vector<1x1xf32>
    %265 = arith.mulf %149, %211 : vector<1x1xf32>
    %266 = arith.mulf %153, %167 : vector<1x1xf32>
    %267 = arith.addf %265, %266 : vector<1x1xf32>
    %cst_160 = arith.constant 2.500000e-01 : f32
    %268 = vector.broadcast %cst_160 : f32 to vector<1x1xf32>
    %269 = arith.mulf %268, %267 : vector<1x1xf32>
    %270 = arith.mulf %150, %222 : vector<1x1xf32>
    %271 = arith.mulf %154, %178 : vector<1x1xf32>
    %272 = arith.addf %270, %271 : vector<1x1xf32>
    %cst_161 = arith.constant 2.500000e-01 : f32
    %273 = vector.broadcast %cst_161 : f32 to vector<1x1xf32>
    %274 = arith.mulf %273, %272 : vector<1x1xf32>
    %275 = arith.mulf %151, %233 : vector<1x1xf32>
    %276 = arith.mulf %155, %189 : vector<1x1xf32>
    %277 = arith.addf %275, %276 : vector<1x1xf32>
    %cst_162 = arith.constant 2.500000e-01 : f32
    %278 = vector.broadcast %cst_162 : f32 to vector<1x1xf32>
    %279 = arith.mulf %278, %277 : vector<1x1xf32>
    %280 = arith.mulf %152, %244 : vector<1x1xf32>
    %281 = arith.mulf %156, %200 : vector<1x1xf32>
    %282 = arith.addf %280, %281 : vector<1x1xf32>
    %cst_163 = arith.constant 2.500000e-01 : f32
    %283 = vector.broadcast %cst_163 : f32 to vector<1x1xf32>
    %284 = arith.mulf %283, %282 : vector<1x1xf32>
    %cst_164 = arith.constant 0.000000e+00 : f32
    %285 = vector.broadcast %cst_164 : f32 to vector<1x1xf32>
    %cst_165 = arith.constant 0.000000e+00 : f32
    %286 = vector.broadcast %cst_165 : f32 to vector<1x1xf32>
    %cst_166 = arith.constant 0.000000e+00 : f32
    %287 = vector.broadcast %cst_166 : f32 to vector<1x1xf32>
    %c0_167 = arith.constant 0 : index
    %c0_168 = arith.constant 0 : index
    %288 = memref.load %arg14[%c0_167, %c0_168] : memref<4x4xf32, #tpu.memory_space<smem>>
    %289 = vector.broadcast %288 : f32 to vector<1x1xf32>
    %290 = arith.mulf %289, %249 : vector<1x1xf32>
    %291 = arith.addf %286, %290 : vector<1x1xf32>
    %292 = vector.broadcast %288 : f32 to vector<1x1xf32>
    %293 = arith.mulf %292, %269 : vector<1x1xf32>
    %294 = arith.addf %287, %293 : vector<1x1xf32>
    %c0_169 = arith.constant 0 : index
    %c1_170 = arith.constant 1 : index
    %295 = memref.load %arg14[%c0_169, %c1_170] : memref<4x4xf32, #tpu.memory_space<smem>>
    %296 = vector.broadcast %295 : f32 to vector<1x1xf32>
    %297 = arith.mulf %296, %254 : vector<1x1xf32>
    %298 = arith.addf %291, %297 : vector<1x1xf32>
    %299 = vector.broadcast %295 : f32 to vector<1x1xf32>
    %300 = arith.mulf %299, %274 : vector<1x1xf32>
    %301 = arith.addf %294, %300 : vector<1x1xf32>
    %c0_171 = arith.constant 0 : index
    %c2_172 = arith.constant 2 : index
    %302 = memref.load %arg14[%c0_171, %c2_172] : memref<4x4xf32, #tpu.memory_space<smem>>
    %303 = vector.broadcast %302 : f32 to vector<1x1xf32>
    %304 = arith.mulf %303, %259 : vector<1x1xf32>
    %305 = arith.addf %298, %304 : vector<1x1xf32>
    %306 = vector.broadcast %302 : f32 to vector<1x1xf32>
    %307 = arith.mulf %306, %279 : vector<1x1xf32>
    %308 = arith.addf %301, %307 : vector<1x1xf32>
    %c0_173 = arith.constant 0 : index
    %c3_174 = arith.constant 3 : index
    %309 = memref.load %arg14[%c0_173, %c3_174] : memref<4x4xf32, #tpu.memory_space<smem>>
    %310 = vector.broadcast %309 : f32 to vector<1x1xf32>
    %311 = arith.mulf %310, %264 : vector<1x1xf32>
    %312 = arith.addf %305, %311 : vector<1x1xf32>
    %313 = vector.broadcast %309 : f32 to vector<1x1xf32>
    %314 = arith.mulf %313, %284 : vector<1x1xf32>
    %315 = arith.addf %308, %314 : vector<1x1xf32>
    %316 = arith.mulf %249, %312 : vector<1x1xf32>
    %317 = arith.addf %285, %316 : vector<1x1xf32>
    %318 = arith.mulf %269, %315 : vector<1x1xf32>
    %319 = arith.addf %317, %318 : vector<1x1xf32>
    %cst_175 = arith.constant 0.000000e+00 : f32
    %320 = vector.broadcast %cst_175 : f32 to vector<1x1xf32>
    %cst_176 = arith.constant 0.000000e+00 : f32
    %321 = vector.broadcast %cst_176 : f32 to vector<1x1xf32>
    %c1_177 = arith.constant 1 : index
    %c0_178 = arith.constant 0 : index
    %322 = memref.load %arg14[%c1_177, %c0_178] : memref<4x4xf32, #tpu.memory_space<smem>>
    %323 = vector.broadcast %322 : f32 to vector<1x1xf32>
    %324 = arith.mulf %323, %249 : vector<1x1xf32>
    %325 = arith.addf %320, %324 : vector<1x1xf32>
    %326 = vector.broadcast %322 : f32 to vector<1x1xf32>
    %327 = arith.mulf %326, %269 : vector<1x1xf32>
    %328 = arith.addf %321, %327 : vector<1x1xf32>
    %c1_179 = arith.constant 1 : index
    %c1_180 = arith.constant 1 : index
    %329 = memref.load %arg14[%c1_179, %c1_180] : memref<4x4xf32, #tpu.memory_space<smem>>
    %330 = vector.broadcast %329 : f32 to vector<1x1xf32>
    %331 = arith.mulf %330, %254 : vector<1x1xf32>
    %332 = arith.addf %325, %331 : vector<1x1xf32>
    %333 = vector.broadcast %329 : f32 to vector<1x1xf32>
    %334 = arith.mulf %333, %274 : vector<1x1xf32>
    %335 = arith.addf %328, %334 : vector<1x1xf32>
    %c1_181 = arith.constant 1 : index
    %c2_182 = arith.constant 2 : index
    %336 = memref.load %arg14[%c1_181, %c2_182] : memref<4x4xf32, #tpu.memory_space<smem>>
    %337 = vector.broadcast %336 : f32 to vector<1x1xf32>
    %338 = arith.mulf %337, %259 : vector<1x1xf32>
    %339 = arith.addf %332, %338 : vector<1x1xf32>
    %340 = vector.broadcast %336 : f32 to vector<1x1xf32>
    %341 = arith.mulf %340, %279 : vector<1x1xf32>
    %342 = arith.addf %335, %341 : vector<1x1xf32>
    %c1_183 = arith.constant 1 : index
    %c3_184 = arith.constant 3 : index
    %343 = memref.load %arg14[%c1_183, %c3_184] : memref<4x4xf32, #tpu.memory_space<smem>>
    %344 = vector.broadcast %343 : f32 to vector<1x1xf32>
    %345 = arith.mulf %344, %264 : vector<1x1xf32>
    %346 = arith.addf %339, %345 : vector<1x1xf32>
    %347 = vector.broadcast %343 : f32 to vector<1x1xf32>
    %348 = arith.mulf %347, %284 : vector<1x1xf32>
    %349 = arith.addf %342, %348 : vector<1x1xf32>
    %350 = arith.mulf %254, %346 : vector<1x1xf32>
    %351 = arith.addf %319, %350 : vector<1x1xf32>
    %352 = arith.mulf %274, %349 : vector<1x1xf32>
    %353 = arith.addf %351, %352 : vector<1x1xf32>
    %cst_185 = arith.constant 0.000000e+00 : f32
    %354 = vector.broadcast %cst_185 : f32 to vector<1x1xf32>
    %cst_186 = arith.constant 0.000000e+00 : f32
    %355 = vector.broadcast %cst_186 : f32 to vector<1x1xf32>
    %c2_187 = arith.constant 2 : index
    %c0_188 = arith.constant 0 : index
    %356 = memref.load %arg14[%c2_187, %c0_188] : memref<4x4xf32, #tpu.memory_space<smem>>
    %357 = vector.broadcast %356 : f32 to vector<1x1xf32>
    %358 = arith.mulf %357, %249 : vector<1x1xf32>
    %359 = arith.addf %354, %358 : vector<1x1xf32>
    %360 = vector.broadcast %356 : f32 to vector<1x1xf32>
    %361 = arith.mulf %360, %269 : vector<1x1xf32>
    %362 = arith.addf %355, %361 : vector<1x1xf32>
    %c2_189 = arith.constant 2 : index
    %c1_190 = arith.constant 1 : index
    %363 = memref.load %arg14[%c2_189, %c1_190] : memref<4x4xf32, #tpu.memory_space<smem>>
    %364 = vector.broadcast %363 : f32 to vector<1x1xf32>
    %365 = arith.mulf %364, %254 : vector<1x1xf32>
    %366 = arith.addf %359, %365 : vector<1x1xf32>
    %367 = vector.broadcast %363 : f32 to vector<1x1xf32>
    %368 = arith.mulf %367, %274 : vector<1x1xf32>
    %369 = arith.addf %362, %368 : vector<1x1xf32>
    %c2_191 = arith.constant 2 : index
    %c2_192 = arith.constant 2 : index
    %370 = memref.load %arg14[%c2_191, %c2_192] : memref<4x4xf32, #tpu.memory_space<smem>>
    %371 = vector.broadcast %370 : f32 to vector<1x1xf32>
    %372 = arith.mulf %371, %259 : vector<1x1xf32>
    %373 = arith.addf %366, %372 : vector<1x1xf32>
    %374 = vector.broadcast %370 : f32 to vector<1x1xf32>
    %375 = arith.mulf %374, %279 : vector<1x1xf32>
    %376 = arith.addf %369, %375 : vector<1x1xf32>
    %c2_193 = arith.constant 2 : index
    %c3_194 = arith.constant 3 : index
    %377 = memref.load %arg14[%c2_193, %c3_194] : memref<4x4xf32, #tpu.memory_space<smem>>
    %378 = vector.broadcast %377 : f32 to vector<1x1xf32>
    %379 = arith.mulf %378, %264 : vector<1x1xf32>
    %380 = arith.addf %373, %379 : vector<1x1xf32>
    %381 = vector.broadcast %377 : f32 to vector<1x1xf32>
    %382 = arith.mulf %381, %284 : vector<1x1xf32>
    %383 = arith.addf %376, %382 : vector<1x1xf32>
    %384 = arith.mulf %259, %380 : vector<1x1xf32>
    %385 = arith.addf %353, %384 : vector<1x1xf32>
    %386 = arith.mulf %279, %383 : vector<1x1xf32>
    %387 = arith.addf %385, %386 : vector<1x1xf32>
    %cst_195 = arith.constant 0.000000e+00 : f32
    %388 = vector.broadcast %cst_195 : f32 to vector<1x1xf32>
    %cst_196 = arith.constant 0.000000e+00 : f32
    %389 = vector.broadcast %cst_196 : f32 to vector<1x1xf32>
    %c3_197 = arith.constant 3 : index
    %c0_198 = arith.constant 0 : index
    %390 = memref.load %arg14[%c3_197, %c0_198] : memref<4x4xf32, #tpu.memory_space<smem>>
    %391 = vector.broadcast %390 : f32 to vector<1x1xf32>
    %392 = arith.mulf %391, %249 : vector<1x1xf32>
    %393 = arith.addf %388, %392 : vector<1x1xf32>
    %394 = vector.broadcast %390 : f32 to vector<1x1xf32>
    %395 = arith.mulf %394, %269 : vector<1x1xf32>
    %396 = arith.addf %389, %395 : vector<1x1xf32>
    %c3_199 = arith.constant 3 : index
    %c1_200 = arith.constant 1 : index
    %397 = memref.load %arg14[%c3_199, %c1_200] : memref<4x4xf32, #tpu.memory_space<smem>>
    %398 = vector.broadcast %397 : f32 to vector<1x1xf32>
    %399 = arith.mulf %398, %254 : vector<1x1xf32>
    %400 = arith.addf %393, %399 : vector<1x1xf32>
    %401 = vector.broadcast %397 : f32 to vector<1x1xf32>
    %402 = arith.mulf %401, %274 : vector<1x1xf32>
    %403 = arith.addf %396, %402 : vector<1x1xf32>
    %c3_201 = arith.constant 3 : index
    %c2_202 = arith.constant 2 : index
    %404 = memref.load %arg14[%c3_201, %c2_202] : memref<4x4xf32, #tpu.memory_space<smem>>
    %405 = vector.broadcast %404 : f32 to vector<1x1xf32>
    %406 = arith.mulf %405, %259 : vector<1x1xf32>
    %407 = arith.addf %400, %406 : vector<1x1xf32>
    %408 = vector.broadcast %404 : f32 to vector<1x1xf32>
    %409 = arith.mulf %408, %279 : vector<1x1xf32>
    %410 = arith.addf %403, %409 : vector<1x1xf32>
    %c3_203 = arith.constant 3 : index
    %c3_204 = arith.constant 3 : index
    %411 = memref.load %arg14[%c3_203, %c3_204] : memref<4x4xf32, #tpu.memory_space<smem>>
    %412 = vector.broadcast %411 : f32 to vector<1x1xf32>
    %413 = arith.mulf %412, %264 : vector<1x1xf32>
    %414 = arith.addf %407, %413 : vector<1x1xf32>
    %415 = vector.broadcast %411 : f32 to vector<1x1xf32>
    %416 = arith.mulf %415, %284 : vector<1x1xf32>
    %417 = arith.addf %410, %416 : vector<1x1xf32>
    %418 = arith.mulf %264, %414 : vector<1x1xf32>
    %419 = arith.addf %387, %418 : vector<1x1xf32>
    %420 = arith.mulf %284, %417 : vector<1x1xf32>
    %421 = arith.addf %419, %420 : vector<1x1xf32>
    %c0_205 = arith.constant 0 : index
    %422 = memref.load %arg15[%c0_205] : memref<2xf32, #tpu.memory_space<smem>>
    %423 = vector.broadcast %422 : f32 to vector<1x1xf32>
    %424 = arith.mulf %421, %423 : vector<1x1xf32>
    %c1_206 = arith.constant 1 : index
    %425 = memref.load %arg15[%c1_206] : memref<2xf32, #tpu.memory_space<smem>>
    %426 = vector.broadcast %425 : f32 to vector<1x1xf32>
    %427 = arith.addf %424, %426 : vector<1x1xf32>
    %428 = tpu.iota {dimensions = array<i32: 1>} : vector<1x2xi32>
    %c0_i32 = arith.constant 0 : i32
    %429 = vector.broadcast %c0_i32 : i32 to vector<1x2xi32>
    %430 = arith.cmpi eq, %428, %429 : vector<1x2xi32>
    %cst_207 = arith.constant 1.000000e+00 : f32
    %431 = vector.broadcast %cst_207 : f32 to vector<1x1xf32>
    %432 = arith.subf %431, %427 : vector<1x1xf32>
    %433 = vector.shape_cast %427 : vector<1x1xf32> to vector<1x1xf32>
    %434 = vector.broadcast %433 : vector<1x1xf32> to vector<1x2xf32>
    %435 = vector.shape_cast %432 : vector<1x1xf32> to vector<1x1xf32>
    %436 = vector.broadcast %435 : vector<1x1xf32> to vector<1x2xf32>
    %437 = arith.select %430, %434, %436 : vector<1x2xi1>, vector<1x2xf32>
    %c0_208 = arith.constant 0 : index
    %c0_209 = arith.constant 0 : index
    %c0_210 = arith.constant 0 : index
    %438 = vector.load %arg16[%c0_208, %c0_209, %c0_210] : memref<1x1x2xf32, #tpu.memory_space<vmem>>, vector<1x1x2xf32>
    %439 = vector.shape_cast %438 : vector<1x1x2xf32> to vector<1x2xf32>
    %440 = vector.shape_cast %437 : vector<1x2xf32> to vector<1x1x2xf32>
    tpu.vector_store %arg16[%c0_208, %c0_209, %c0_210], %440 {strides = array<i32>} : memref<1x1x2xf32, #tpu.memory_space<vmem>>, vector<1x1x2xf32>,
    return
  }
  func.func @transform_0(%arg0: i32) -> (i32, i32, i32) {
    %c0_i32 = arith.constant 0 : i32
    %c0_i32_0 = arith.constant 0 : i32
    %c0_i32_1 = arith.constant 0 : i32
    return %arg0, %c0_i32, %c0_i32_0 : i32, i32, i32
  }
  func.func @transform_1(%arg0: i32) -> (i32, i32, i32) {
    %c0_i32 = arith.constant 0 : i32
    %c0_i32_0 = arith.constant 0 : i32
    %c0_i32_1 = arith.constant 0 : i32
    %c0_i32_2 = arith.constant 0 : i32
    return %c0_i32, %c0_i32_0, %c0_i32_1 : i32, i32, i32
  }
  func.func @transform_2(%arg0: i32) -> (i32, i32) {
    %c0_i32 = arith.constant 0 : i32
    %c0_i32_0 = arith.constant 0 : i32
    %c0_i32_1 = arith.constant 0 : i32
    return %c0_i32, %c0_i32_0 : i32, i32
  }
  func.func @transform_3(%arg0: i32) -> (i32, i32, i32) {
    %c0_i32 = arith.constant 0 : i32
    %c0_i32_0 = arith.constant 0 : i32
    %c0_i32_1 = arith.constant 0 : i32
    %c0_i32_2 = arith.constant 0 : i32
    return %c0_i32, %c0_i32_0, %c0_i32_1 : i32, i32, i32
  }
  func.func @transform_4(%arg0: i32) -> (i32, i32, i32) {
    %c0_i32 = arith.constant 0 : i32
    %c0_i32_0 = arith.constant 0 : i32
    %c0_i32_1 = arith.constant 0 : i32
    %c0_i32_2 = arith.constant 0 : i32
    return %c0_i32, %c0_i32_0, %c0_i32_1 : i32, i32, i32
  }
  func.func @transform_5(%arg0: i32) -> (i32, i32, i32) {
    %c0_i32 = arith.constant 0 : i32
    %c0_i32_0 = arith.constant 0 : i32
    %c0_i32_1 = arith.constant 0 : i32
    %c0_i32_2 = arith.constant 0 : i32
    return %c0_i32, %c0_i32_0, %c0_i32_1 : i32, i32, i32
  }
  func.func @transform_6(%arg0: i32) -> (i32, i32) {
    %c0_i32 = arith.constant 0 : i32
    %c0_i32_0 = arith.constant 0 : i32
    %c0_i32_1 = arith.constant 0 : i32
    return %c0_i32, %c0_i32_0 : i32, i32
  }
  func.func @transform_7(%arg0: i32) -> (i32, i32, i32) {
    %c0_i32 = arith.constant 0 : i32
    %c0_i32_0 = arith.constant 0 : i32
    %c0_i32_1 = arith.constant 0 : i32
    %c0_i32_2 = arith.constant 0 : i32
    return %c0_i32, %c0_i32_0, %c0_i32_1 : i32, i32, i32
  }
  func.func @transform_8(%arg0: i32) -> (i32, i32, i32) {
    %c0_i32 = arith.constant 0 : i32
    %c0_i32_0 = arith.constant 0 : i32
    %c0_i32_1 = arith.constant 0 : i32
    %c0_i32_2 = arith.constant 0 : i32
    return %c0_i32, %c0_i32_0, %c0_i32_1 : i32, i32, i32
  }
  func.func @transform_9(%arg0: i32) -> (i32, i32, i32) {
    %c0_i32 = arith.constant 0 : i32
    %c0_i32_0 = arith.constant 0 : i32
    %c0_i32_1 = arith.constant 0 : i32
    %c0_i32_2 = arith.constant 0 : i32
    return %c0_i32, %c0_i32_0, %c0_i32_1 : i32, i32, i32
  }
  func.func @transform_10(%arg0: i32) -> (i32, i32) {
    %c0_i32 = arith.constant 0 : i32
    %c0_i32_0 = arith.constant 0 : i32
    %c0_i32_1 = arith.constant 0 : i32
    return %c0_i32, %c0_i32_0 : i32, i32
  }
  func.func @transform_11(%arg0: i32) -> (i32, i32) {
    %c0_i32 = arith.constant 0 : i32
    %c0_i32_0 = arith.constant 0 : i32
    %c0_i32_1 = arith.constant 0 : i32
    return %c0_i32, %c0_i32_0 : i32, i32
  }
  func.func @transform_12(%arg0: i32) -> (i32, i32) {
    %c0_i32 = arith.constant 0 : i32
    %c0_i32_0 = arith.constant 0 : i32
    %c0_i32_1 = arith.constant 0 : i32
    return %c0_i32, %c0_i32_0 : i32, i32
  }
  func.func @transform_13(%arg0: i32) -> (i32, i32) {
    %c0_i32 = arith.constant 0 : i32
    %c0_i32_0 = arith.constant 0 : i32
    %c0_i32_1 = arith.constant 0 : i32
    return %c0_i32, %c0_i32_0 : i32, i32
  }
  func.func @transform_14(%arg0: i32) -> i32 {
    %c0_i32 = arith.constant 0 : i32
    %c0_i32_0 = arith.constant 0 : i32
    return %c0_i32 : i32
  }
  func.func @transform_15(%arg0: i32) -> (i32, i32, i32) {
    %c0_i32 = arith.constant 0 : i32
    %c0_i32_0 = arith.constant 0 : i32
    %c0_i32_1 = arith.constant 0 : i32
    return %arg0, %c0_i32, %c0_i32_0 : i32, i32, i32
  }
}

</mosaic_0001>

<bundles_post_ra>
// kernel: quantum_net_forward.1
= control target key start
LH: loop header
LB: loop body
LE: loop exit
PB: predicated region body
PF: predicated region fallthrough
CT: control target
= control target key end

     0   :  { %s6363_s0 = inlined_call_operand.vmem [shape: f32[2,28,28], index: 0, kind: input, shape index: {}]   ;;  %s6364_s1 = inlined_call_operand.vmem [shape: f32[5,28,48], index: 1, kind: input, shape index: {}]   ;;  %s6365_s2 = inlined_call_operand.vmem [shape: f32[1,48], index: 2, kind: input, shape index: {}]   ;;  %s6366_s3 = inlined_call_operand.vmem [shape: f32[2,12,24], index: 3, kind: input, shape index: {}]   ;;  %s6367_s4 = inlined_call_operand.vmem [shape: f32[2,48,24], index: 4, kind: input, shape index: {}]   ;;  %s6368_s5 = inlined_call_operand.vmem [shape: f32[5,24,128], index: 5, kind: input, shape index: {}]   ;;  %s6369_s6 = inlined_call_operand.vmem [shape: f32[1,128], index: 6, kind: input, shape index: {}]   ;;  %s6370_s7 = inlined_call_operand.vmem [shape: f32[2,4,8], index: 7, kind: input, shape index: {}]   ;;  %s6371_s8 = inlined_call_operand.vmem [shape: f32[2,128,64], index: 8, kind: input, shape index: {}]   ;;  %s6372_s9 = inlined_call_operand.vmem [shape: f32[4,64,64], index: 9, kind: input, shape index: {}]   ;;  %s6373_s10 = inlined_call_operand.vmem [shape: f32[1,64], index: 10, kind: input, shape index: {}]   ;;  %s6374_s11 = inlined_call_operand.vmem [shape: f32[64,2], index: 11, kind: input, shape index: {}]   ;;  %s6375_s12 = inlined_call_operand.vmem [shape: f32[1,2], index: 12, kind: input, shape index: {}]   ;;  %s6376_s13 = inlined_call_operand.vmem [shape: f32[4,4], index: 13, kind: input, shape index: {}]   ;;  %s6377_s14 = inlined_call_operand.vmem [shape: f32[2], index: 14, kind: input, shape index: {}]   ;;  %s6378_s15 = inlined_call_operand.hbm [shape: f32[2,1,2], index: 15, kind: output, shape index: {}]  }
   0x1   :  { %6386 = sst [smem:[#allocation15_spill]] %s6376_s13 }
   0x2   :  { %6387 = sst [smem:[#allocation16_spill]] %s6377_s14 }
   0x3   :  { %20 = vsyncpa [#allocation4], 0 }
   0x4   :  { %21 = vsyncpa [#allocation6], 0 }
   0x5   :  { %22 = vsyncpa [#allocation3], 0 }
   0x6   :  { %24 = vsyncpa [#allocation3 + $0x1], 0  ;;  %s5315_s18 = smov 0   ;;  %s5317_s19 = smov 0  }
   0x7   :  { %s5319_s20 = smov 0   ;;  %s5321_s21 = smov 0  }
   0x8 LB: > { %6388 = sst [smem:[#allocation11_spill]] %s5213_s20  ;;  %s5336_s22 = sadd.s32 4294967295, %s5217_s21   ;;  %s5217_s21 = sphi %s5321_s21, %s6408_s21   ;;  %s5213_s20 = sphi %s5319_s20, %s6413_s20   ;;  %s5209_s19 = sphi %s5317_s19, %s6412_s19   ;;  %s5205_s18 = sphi %s5315_s18, %s6411_s18  }
   0x9   : > { %s3905_s23 = sadd.s32 4294967294, %s5217_s21   ;;  %s5340_s24 = sadd.s32 1, %s5217_s21  }
   0xa   : > { %6389 = sst [smem:[#allocation12_spill]] %s5340_s24  ;;  %s357_s25 = sadd.s32 1, %s5213_s20 }
   0xb   : > { %s354_s26 = ssub.s32 %s5217_s21, %s5340_s24  ;;  %p367_p0 = scmp.ne.s32.totalorder %s5213_s20, %s5209_s19 }
   0xc   : > { %p355_p1 = scmp.eq.s32.totalorder %s354_s26, 0  ;;  %p368_p2 = scmp.eq.s32.totalorder %s5336_s22, 1 }
   0xd   : > { %p373_p3 = scmp.ne.s32.totalorder %s5209_s19, %s5205_s18  ;;  %p374_p4 = scmp.eq.s32.totalorder %s3905_s23, 1 }
   0xe   : > { %s5351_s27 = scalar_select %p355_p1, %s5213_s20, %s357_s25  }
   0xf   : > { %p5353_p5 = por %p368_p2, %p367_p0  ;;  %p5357_p6 = por %p374_p4, %p373_p3 }
  0x10   : > { %6390 = sst [smem:[#allocation13_spill]] %s5351_s27  ;;  %p3906_p7 = scmp.ge.s32.totalorder %s5217_s21, 1 }
  0x11   : > { %s6391_s28 = scalar_select %p5353_p5, 1, 0 }
  0x12   : > { %s6392_s29 = scalar_select %p5357_p6, 1, 0 }
  0x13   : > { %p381_p8 = scmp.lt.s32.totalorder %s5217_s21, 3  ;;  %p6382_p9 = scmp.eq.s32.totalorder %s5336_s22, 0 }
  0x14   : > { %6393 = sst [smem:[#allocation14_spill]] %s6392_s29  ;;  %s6395_s13 = sld [smem:[#allocation15_spill]] }
  0x15   : > { %p5364_p10 = pnand %p3906_p7, %p381_p8  ;;  %s6396_s14 = sld [smem:[#allocation16_spill]] }
  0x17   : > { %s6394_s30 = scalar_select %p5364_p10, 1, 0 }
  0x18   : > { %p5040_p11 = pneg %p5364_p10 }
  0x1a   : > { %s430_s23 = sshll.u32 %s6395_s13, 4  ;;  %p5378_p12 = pnand %p6382_p9, %p5040_p11  ;;  %s431_s23 = int_to_ptr.vmem [resolvable:$true] %s430_s23 }
  0x1b   : > { %s441_s27 = sshll.u32 %s6396_s14, 4  ;;  %s5117_s24 = scalar_lea.vmem %s431_s23, 64  ;;  %s442_s27 = int_to_ptr.vmem [resolvable:$true] %s441_s27 }
  0x1c   : > { %p5118_p13 = scmp.ne.s32.totalorder %s431_s23, %s5117_s24  ;;  %p5119_p0 = pneg %p5378_p12 }
  0x1d   : > { %p5125_p3 = scmp.lt.s32.totalorder %s431_s23, %s431_s23  ;;  %p5126_p4 = scmp.lt.s32.totalorder %s5117_s24, %s5117_s24 }
  0x1e   : > { %p5120_p1 = pnand %p5119_p0, %p5118_p13 }
  0x1f   : > { %p5127_p7 = por %p5126_p4, %p5125_p3 }
  0x20   : > { %p5121_p2 = pneg %p5120_p1 }
  0x22   : > { %p5128_p8 = pnand %p5127_p7, %p5121_p2 }
  0x24   : > { %5131 = shalt.err (!%p5128_p8)
}
  0x25   : > { %s5219_s16 = smov [#allocation2]   ;;  %s5132_s17 = scalar_lea.vmem %s442_s27, 16 }
  0x26   : > { %5043 = dma.vmem_to_smem (!%p5378_p12), %s431_s23, 64, %s5219_s16, [#allocation4]  }
  0x27   : > { %p5133_p11 = scmp.ne.s32.totalorder %s442_s27, %s5132_s17  ;;  %p5140_p5 = scmp.lt.s32.totalorder %s442_s27, %s442_s27 }
  0x28   : > { %p5141_p10 = scmp.lt.s32.totalorder %s5132_s17, %s5132_s17 }
  0x29   : > { %p5135_p9 = pnand %p5133_p11, %p5119_p0 }
  0x2a   : > { %p5142_p13 = por %p5141_p10, %p5140_p5 }
  0x2b   : > { %p5136_p6 = pneg %p5135_p9 }
  0x2d   : > { %p5143_p1 = pnand %p5142_p13, %p5136_p6 }
  0x2f   : > { %5146 = shalt.err (!%p5143_p1)
}
  0x30   : > { %s5220_s25 = smov [#allocation5]   ;;  %p6398_p2 = scmp.ne.s32.totalorder %s6394_s30, 0 }
  0x31   : > { %5046 = dma.vmem_to_smem (!%p5378_p12), %s442_s27, 16, %s5220_s25, [#allocation6]  }
  0x32   : > { %462 = sbr.rel (%p6398_p2) target bundleno = 3345 (0xd11), region = 80  ;;  %p6399_p3 = scmp.eq.s32.totalorder (!%p6398_p2), %s5336_s22, 0 }
  0x39   : > { %5192 = dma.done.wait (%p6399_p3), [#allocation4], 64   ;;  %p6400_p4 = pmov %p6399_p3 }
  0x3a   : > { %p6401_p9 = pmov %p6399_p3 }
  0x3b   : > { %5194 = vsyncadd (%p6400_p4), [#allocation4], 4294967232 }
  0x3c   : > { %5196 = dma.done.wait (%p6401_p9), [#allocation6], 16   ;;  %p6402_p5 = pmov %p6399_p3 }
  0x3e   : > { %5198 = vsyncadd (%p6402_p5), [#allocation6], 4294967280 }
  0x3f   : > { %472 = sfence }
  0x40   : > { %v3915_v0 = vld [vmem:[%s6364_s1 + $0x20] sm:$0xff]  ;;  %v3916_v1 = vld [vmem:[%s6364_s1 + $0x28] sm:$0xff]  ;;  %vm551_vm0 = vcmask 1043456   ;;  %v5221_v3 = vmov 0.0|0.0   ;;  %v3917_v6 = vld [vmem:[%s6364_s1 + $0x30] sm:$0xff]  ;;  %vm5222_vm1 = vmmov 0  }
  0x41   : > { %v523_v2 = vld [vmem:[%s6364_s1] sm:$0xff]  ;;  %4749 = vmatprep.subr.bf16.mxu0 %v5221_v3  ;;  %4756 = vmatprep.subr.bf16.mxu1 %v5221_v3  ;;  %v4750_v4 = vpack.c.bf16 %v3916_v1, %v3915_v0  ;;  %v524_v5 = vld [vmem:[%s6364_s1 + $0x8] sm:$0xff]  ;;  %v3918_v7 = vld [vmem:[%s6364_s1 + $0x38] sm:$0xf]  ;;  %v5223_v11 = vmov 0.0   ;;  %p514_p6 = scmp.lt.s32.totalorder %s5336_s22, 1 }
  0x42   : > { %v4757_v8 = vpack.c.bf16 %v524_v5, %v523_v2  ;;  %v525_v9 = vld [vmem:[%s6364_s1 + $0x10] sm:$0xff]  ;;  %v526_v10 = vld [vmem:[%s6364_s1 + $0x18] sm:$0xf]  ;;  %4304 = vmatprep.mubr.msk.f32.mxu0 %vm5222_vm1, %v5223_v11  ;;  %4321 = vmatprep.mubr.msk.f32.mxu1 %vm5222_vm1, %v5223_v11  ;;  %v4753_v12 = vpack.c.bf16 %v3918_v7, %v3917_v6  ;;  %vm5224_vm2 = vmmov 1   ;;  %v3927_v15 = vld [vmem:[%s6364_s1 + $0x40] sm:$0xff]  ;;  %vm536_vm4 = vcmask 1046528  }
  0x43   : > { %4751 = vmatpush3.bf16.msra.mxu0 %v4750_v4  ;;  %vm5431_vm3 = vmpackc.low %vm551_vm0, %vm5224_vm2  ;;  %v4760_v14 = vpack.c.bf16 %v526_v10, %v525_v9  ;;  %s515_s13 = scalar_select %p514_p6, %s5336_s22, 1  ;;  %v3928_v16 = vld [vmem:[%s6364_s1 + $0x48] sm:$0xff]  ;;  %v3935_v17 = vld [vmem:[%s6364_s1 + $0x60] sm:$0xff]  ;;  %vm544_vm5 = vcmask 228352   ;;  %vm834_vm6 = vcmask 1044480   ;;  %vm729_vm7 = vcmask 1045504  }
  0x44   : > { %4758 = vmatpush3.bf16.msra.mxu1 %v4757_v8  ;;  %4752 = vmatprep.subr.bf16.mxu0 %v5221_v3  ;;  %v3936_v18 = vld [vmem:[%s6364_s1 + $0x68] sm:$0xff]  ;;  %v4764_v25 = vpack.c.bf16 %v3928_v16, %v3927_v15  ;;  %v3929_v28 = vld [vmem:[%s6364_s1 + $0x50] sm:$0xff]  ;;  %v3930_v29 = vld [vmem:[%s6364_s1 + $0x58] sm:$0xf]  ;;  %vm1053_vm8 = vcmask 195584   ;;  %vm1141_vm9 = vcmask 392192  }
  0x45   : > { %4759 = vmatprep.subr.bf16.mxu1 %v5221_v3  ;;  %s4081_s16 = sshll.u32 %s515_s13, 5  ;;  %v4771_v26 = vpack.c.bf16 %v3936_v18, %v3935_v17  ;;  %v3937_v31 = vld [vmem:[%s6364_s1 + $0x70] sm:$0xff]  ;;  %v3938_v32 = vld [vmem:[%s6364_s1 + $0x78] sm:$0xf]  ;;  %v4767_v35 = vpack.c.bf16 %v3930_v29, %v3929_v28  ;;  %v3943_v42 = vld [vmem:[%s6364_s1 + $0x80] sm:$0xff]  ;;  %vm1957_vm10 = vcmask 64512  }
  0x46   : > { %s518_s30 = scalar_lea.vmem %s6363_s0, %s4081_s16  ;;  %v4774_v36 = vpack.c.bf16 %v3938_v32, %v3937_v31  ;;  %v3944_v43 = vld [vmem:[%s6364_s1 + $0x88] sm:$0xff]  ;;  %v3945_v49 = vld [vmem:[%s6364_s1 + $0x90] sm:$0xff]  ;;  %v3946_v50 = vld [vmem:[%s6364_s1 + $0x98] sm:$0xf]  ;;  %vm2431_vm11 = vcmask 523264   ;;  %s5225_s23 = smov 127  }
  0x47   : > { %4755 = vmatpush3.bf16.msk.msra.mxu0 %vm5431_vm3, %v4753_v12  ;;  %v5456_v19 = vld [vmem:[%s518_s30] sm:$0xff]  ;;  %v5458_v20 = vld [vmem:[%s518_s30 + $0x8] sm:$0xff]  ;;  %v5460_v21 = vld [vmem:[%s518_s30 + $0x10] sm:$0xff]  ;;  %v4778_v48 = vpack.c.bf16 %v3944_v43, %v3943_v42  ;;  %v4781_v55 = vpack.c.bf16 %v3946_v50, %v3945_v49  ;;  %s5226_s20 = smov 1   ;;  %s4071_s27 = sld [smem:[#allocation2 + $0x102]] }
  0x48   : > { %4762 = vmatpush3.bf16.msk.msra.mxu1 %vm5431_vm3, %v4760_v14  ;;  %4763 = vmatprep.subr.bf16.mxu0 %v5221_v3  ;;  %v537_v22 = vrot.slane %v5456_v19, 1  ;;  %v538_v23 = vrot.slane %v5458_v20, 1  ;;  %v540_v24 = vrot.slane %v5460_v21, 1  ;;  %v5467_v27 = vld [vmem:[%s518_s30 + $0x18] sm:$0xf]  ;;  %v835_v37 = vrot.slane %v5456_v19, 3 }
  0x49   : > { %4770 = vmatprep.subr.bf16.mxu1 %v5221_v3  ;;  %v542_v34 = vrot.slane %v5467_v27, 1  ;;  %v836_v38 = vrot.slane %v5458_v20, 3  ;;  %v730_v40 = vrot.slane %v5456_v19, 2  ;;  %v731_v41 = vrot.slane %v5458_v20, 2  ;;  %v1135_v1 = vld [vmem:[%s6367_s4] sm:$0xff]  ;;  %v1136_v2 = vld [vmem:[%s6367_s4 + $0x8] sm:$0xff] }
  0x4a   : > { %v539_v30 = vsel %vm536_vm4, %v537_v22, %v538_v23  ;;  %v541_v33 = vsel %vm536_vm4, %v538_v23, %v540_v24  ;;  %v838_v45 = vrot.slane %v5460_v21, 3  ;;  %v733_v47 = vrot.slane %v5460_v21, 2  ;;  %v1137_v5 = vld [vmem:[%s6367_s4 + $0x10] sm:$0xff]  ;;  %v1138_v6 = vld [vmem:[%s6367_s4 + $0x18] sm:$0xff]  ;;  %v1139_v8 = vld [vmem:[%s6367_s4 + $0x20] sm:$0xff]  ;;  %s4075_s30 = sld [smem:[#allocation2 + $0x182]] }
  0x4b   : > { %4322 = vmatmul.mubr.msk.f32.vlgmr.msra.gmra.mrb[0].mxu1 %vm544_vm5, %v5456_v19  ;;  %4305 = vmatmul.mubr.msk.f32.vlgmr.msra.gmra.mrb[0].mxu0 %vm544_vm5, %v539_v30  ;;  %v543_v39 = vsel %vm536_vm4, %v540_v24, %v542_v34  ;;  %v837_v44 = vsel %vm834_vm6, %v835_v37, %v836_v38  ;;  %v732_v46 = vsel %vm729_vm7, %v730_v40, %v731_v41  ;;  %v840_v52 = vrot.slane %v5467_v27, 3  ;;  %v1140_v9 = vld [vmem:[%s6367_s4 + $0x28] sm:$0xff]  ;;  %v1051_v12 = vld [vmem:[%s6366_s3] sm:$0xff]  ;;  %s4072_s26 = sld [smem:[#allocation2 + $0x103]]  ;;  %s4069_s14 = sld [smem:[#allocation2 + $0x100]] }
  0x4c   : > { %4324 = vmatprep.mubr.msk.f32.mxu1 %vm5222_vm1, %v5223_v11  ;;  %4307 = vmatprep.mubr.msk.f32.mxu0 %vm5222_vm1, %v5223_v11  ;;  %v839_v51 = vsel %vm834_vm6, %v836_v38, %v838_v45  ;;  %v734_v53 = vsel %vm729_vm7, %v731_v41, %v733_v47  ;;  %v735_v54 = vrot.slane %v5467_v27, 2  ;;  %v939_v58 = vrot.slane %v5456_v19, 4  ;;  %v3951_v49 = vld [vmem:[%s6365_s2] ss:$0 sm:$0xff]  ;;  %s4076_s13 = sld [smem:[#allocation2 + $0x183]]  ;;  %s4070_s29 = sld [smem:[#allocation2 + $0x101]] }
  0x4d   : > { %4765 = vmatpush3.bf16.msra.mxu0 %v4764_v25  ;;  %4772 = vmatpush3.bf16.msra.mxu1 %v4771_v26  ;;  %v841_v56 = vsel %vm834_vm6, %v838_v45, %v840_v52  ;;  %v940_v59 = vrot.slane %v5458_v20, 4  ;;  %v942_v61 = vrot.slane %v5460_v21, 4  ;;  %v944_v63 = vrot.slane %v5467_v27, 4  ;;  %s4073_s16 = sld [smem:[#allocation2 + $0x180]]  ;;  %s4074_s17 = sld [smem:[#allocation2 + $0x181]] }
  0x4e   : > { %4766 = vmatprep.subr.bf16.mxu0 %v5221_v3  ;;  %4773 = vmatprep.subr.bf16.mxu1 %v5221_v3  ;;  %v736_v57 = vsel %vm729_vm7, %v733_v47, %v735_v54  ;;  %v5578_v4 = vpack.c.bf16 %v1136_v2, %v1135_v1  ;;  %v5588_v7 = vpack.c.bf16 %v1138_v6, %v1137_v5  ;;  %v3958_v1 = vld [vmem:[%s6367_s4 + $0x40] sm:$0xff]  ;;  %v3959_v2 = vld [vmem:[%s6367_s4 + $0x48] sm:$0xff]  ;;  %s4063_s25 = sld [smem:[#allocation2 + $0x2]]  ;;  %s4064_s24 = sld [smem:[#allocation2 + $0x3]] }
  0x4f   : > { %4325 = vmatmul.mubr.msk.f32.gmra.mrb[2].mxu1 %vm544_vm5, %v5458_v20  ;;  %4308 = vmatmul.mubr.msk.f32.gmra.mrb[2].mxu0 %vm544_vm5, %v541_v33  ;;  %v941_v60 = vsel %vm551_vm0, %v939_v58, %v940_v59  ;;  %v943_v62 = vsel %vm551_vm0, %v940_v59, %v942_v61  ;;  %v945_v0 = vsel %vm551_vm0, %v942_v61, %v944_v63  ;;  %v3957_v63 = vld [vmem:[%s6367_s4 + $0x38] sm:$0xff]  ;;  %v1052_v6 = vld [vmem:[%s6366_s3 + $0x8] sm:$0xf]  ;;  %p6405_p12 = scmp.ne.s32.totalorder %s6391_s28, 0 }
  0x50   : > { %4327 = vmatprep.mubr.msk.f32.mxu1 %vm5222_vm1, %v5223_v11  ;;  %4310 = vmatprep.mubr.msk.f32.mxu0 %vm5222_vm1, %v5223_v11  ;;  %v5598_v10 = vpack.c.bf16 %v1140_v9, %v1139_v8  ;;  %v4804_v8 = vpack.c.bf16 %v3959_v2, %v3958_v1  ;;  %v3960_v9 = vld [vmem:[%s6367_s4 + $0x50] sm:$0xff] }
  0x51   : > { %4769 = vmatpush3.bf16.msk.msra.mxu0 %vm5431_vm3, %v4767_v35  ;;  %4776 = vmatpush3.bf16.msk.msra.mxu1 %vm5431_vm3, %v4774_v36  ;;  %v2033_v1 = vld [vmem:[%s6371_s8 + $0x10] sm:$0xff] }
  0x52   : > { %4777 = vmatprep.subr.bf16.mxu0 %v5221_v3 }
  0x53   : > { %4328 = vmatmul.mubr.msk.f32.gmra.mrb[4].mxu1 %vm544_vm5, %v5460_v21  ;;  %4311 = vmatmul.mubr.msk.f32.gmra.mrb[4].mxu0 %vm544_vm5, %v543_v39 }
  0x54   : > { %4355 = vmatprep.mubr.msk.f32.mxu1 %vm5222_vm1, %v5223_v11  ;;  %4338 = vmatprep.mubr.msk.f32.mxu0 %vm5222_vm1, %v5223_v11 }
  0x57   : > { %4356 = vmatmul.mubr.msk.f32.vlgmr.msra.gmra.mrb[6].mxu1 %vm544_vm5, %v837_v44  ;;  %4339 = vmatmul.mubr.msk.f32.vlgmr.msra.gmra.mrb[6].mxu0 %vm544_vm5, %v732_v46 }
  0x58   : > { %4358 = vmatprep.mubr.msk.f32.mxu1 %vm5222_vm1, %v5223_v11  ;;  %4341 = vmatprep.mubr.msk.f32.mxu0 %vm5222_vm1, %v5223_v11 }
  0x59   : > { %4779 = vmatpush3.bf16.msra.mxu0 %v4778_v48 }
  0x5a   : > { %4780 = vmatprep.subr.bf16.mxu0 %v5221_v3 }
  0x5b   : > { %4359 = vmatmul.mubr.msk.f32.gmra.mrb[8].mxu1 %vm544_vm5, %v839_v51  ;;  %4342 = vmatmul.mubr.msk.f32.gmra.mrb[8].mxu0 %vm544_vm5, %v734_v53 }
  0x5c   : > { %4361 = vmatprep.mubr.msk.f32.mxu1 %vm5222_vm1, %v5223_v11  ;;  %4344 = vmatprep.mubr.msk.f32.mxu0 %vm5222_vm1, %v5223_v11 }
  0x5d   : > { %4783 = vmatpush3.bf16.msk.msra.mxu0 %vm5431_vm3, %v4781_v55 }
  0x5e   : > { %4789 = vmatprep.subr.bf16.mxu0 %v5578_v4 }
  0x5f   : > { %4362 = vmatmul.mubr.msk.f32.gmra.mrb[10].mxu1 %vm544_vm5, %v841_v56  ;;  %4345 = vmatmul.mubr.msk.f32.gmra.mrb[10].mxu0 %vm544_vm5, %v736_v57 }
  0x60   : > { %4372 = vmatprep.mubr.msk.f32.mxu0 %vm5222_vm1, %v5223_v11  ;;  %4387 = vmatprep.mubr.msk.f32.mxu1 %vm1053_vm8, %v1051_v12  ;;  %v3961_v12 = vld [vmem:[%s6367_s4 + $0x58] sm:$0xff] }
  0x63   : > { %4373 = vmatmul.mubr.msk.f32.vlgmr.msra.gmra.mrb[12].mxu0 %vm544_vm5, %v941_v60 }
  0x64   : > { %4375 = vmatprep.mubr.msk.f32.mxu0 %vm5222_vm1, %v5223_v11  ;;  %4791 = vmatpush3.bf16.msra.mxu0 %v5578_v4 }
  0x65   : > { %4793 = vmatprep.subr.bf16.mxu0 %v5588_v7 }
  0x67   : > { %4376 = vmatmul.mubr.msk.f32.gmra.mrb[14].mxu0 %vm544_vm5, %v943_v62  ;;  %v3956_v62 = vld [vmem:[%s6367_s4 + $0x30] sm:$0xff] }
  0x68   : > { %4378 = vmatprep.mubr.msk.f32.mxu0 %vm5222_vm1, %v5223_v11  ;;  %4795 = vmatpush3.bf16.msra.mxu0 %v5588_v7  ;;  %v4800_v5 = vpack.c.bf16 %v3957_v63, %v3956_v62  ;;  %v3983_v62 = vld [vmem:[%s6368_s5 + $0x58] sm:$0xff]  ;;  %v2031_v63 = vld [vmem:[%s6371_s8] sm:$0xff] }
  0x69   : > { %4797 = vmatprep.subr.bf16.mxu0 %v5598_v10 }
  0x6b   : > { %4379 = vmatmul.mubr.msk.f32.gmra.mrb[16].mxu0 %vm544_vm5, %v945_v0 }
  0x6c   : > { %4799 = vmatpush3.bf16.msra.mxu0 %v5598_v10 }
 0x11e   : > { %v710_v13 = vpop.f32.mrb[0].mxu1  ;;  %v621_v14 = vpop.f32.mrb[0].mxu0 }
 0x11f   : > { %v4323_v15 = vpop.f32.mrb[1].mxu1  ;;  %v711_v16 = vadd.f32 %v710_v13, %v621_v14  ;;  %v4306_v17 = vpop.f32.mrb[1].mxu0  ;;  %v4808_v13 = vpack.c.bf16 %v3961_v12, %v3960_v9  ;;  %v2036_v9 = vld [vmem:[%s6371_s8 + $0x28] sm:$0xff] }
 0x120   : > { %v3965_v17 = vld [vmem:[%s6366_s3 + $0x18] sm:$0xf] }
 0x122   : > { %v715_v18 = vpop.f32.mrb[2].mxu1  ;;  %v626_v19 = vpop.f32.mrb[2].mxu0 }
 0x123   : > { %v4326_v20 = vpop.f32.mrb[3].mxu1  ;;  %v716_v21 = vadd.f32 %v715_v18, %v626_v19  ;;  %v4309_v22 = vpop.f32.mrb[3].mxu0 }
 0x126   : > { %v720_v23 = vpop.f32.mrb[4].mxu1  ;;  %v631_v24 = vpop.f32.mrb[4].mxu0 }
 0x127   : > { %v4329_v25 = vpop.f32.mrb[5].mxu1  ;;  %v721_v26 = vadd.f32 %v720_v23, %v631_v24  ;;  %v4312_v27 = vpop.f32.mrb[5].mxu0  ;;  %v3973_v24 = vld [vmem:[%s6368_s5 + $0x20] sm:$0xff] }
 0x128   : > { %v3977_v25 = vld [vmem:[%s6368_s5 + $0x30] sm:$0xff]  ;;  %v3978_v27 = vld [vmem:[%s6368_s5 + $0x38] sm:$0xff] }
 0x12a   : > { %v917_v28 = vpop.f32.mrb[6].mxu1  ;;  %v812_v29 = vpop.f32.mrb[6].mxu0 }
 0x12b   : > { %v4357_v30 = vpop.f32.mrb[7].mxu1  ;;  %v826_v31 = vadd.f32 %v812_v29, %v711_v16  ;;  %v4340_v32 = vpop.f32.mrb[7].mxu0  ;;  %v3964_v16 = vld [vmem:[%s6366_s3 + $0x10] sm:$0xff]  ;;  %v3974_v29 = vld [vmem:[%s6368_s5 + $0x28] sm:$0xff] }
 0x12c   : > { %v3979_v30 = vld [vmem:[%s6368_s5 + $0x40] sm:$0xff] }
 0x12d   : > { %v931_v33 = vadd.f32 %v917_v28, %v826_v31  ;;  %v4847_v28 = vpack.c.bf16 %v3978_v27, %v3977_v25 }
 0x12e   : > { %v922_v34 = vpop.f32.mrb[8].mxu1  ;;  %v817_v35 = vpop.f32.mrb[8].mxu0 }
 0x12f   : > { %v4360_v36 = vpop.f32.mrb[9].mxu1  ;;  %v827_v37 = vadd.f32 %v817_v35, %v716_v21  ;;  %v4343_v38 = vpop.f32.mrb[9].mxu0 }
 0x130   : > { %v3985_v38 = vld [vmem:[%s6368_s5 + $0x60] sm:$0xff] }
 0x131   : > { %v932_v39 = vadd.f32 %v922_v34, %v827_v37  ;;  %v1552_v37 = vld [vmem:[%s6368_s5 + $0x8] sm:$0xff] }
 0x132   : > { %v927_v40 = vpop.f32.mrb[10].mxu1  ;;  %v822_v41 = vpop.f32.mrb[10].mxu0 }
 0x133   : > { %v4363_v42 = vpop.f32.mrb[11].mxu1  ;;  %v828_v43 = vadd.f32 %v822_v41, %v721_v26  ;;  %v4346_v44 = vpop.f32.mrb[11].mxu0 }
 0x135   : > { %v933_v45 = vadd.f32 %v927_v40, %v828_v43 }
 0x136   : > { %v1021_v46 = vpop.f32.mrb[12].mxu0 }
 0x137   : > { %v1035_v47 = vadd.f32 %v1021_v46, %v931_v33  ;;  %v4374_v48 = vpop.f32.mrb[13].mxu0  ;;  %v1551_v33 = vld [vmem:[%s6368_s5] sm:$0xff] }
 0x138   : > { %v4844_v43 = vpack.c.bf16 %v1552_v37, %v1551_v33 }
 0x139   : > { %v1045_v51 = vadd.f32 %v3951_v49, %v1035_v47 }
 0x13a   : > { %v1026_v50 = vpop.f32.mrb[14].mxu0 }
 0x13b   : > { %v1036_v52 = vadd.f32 %v1026_v50, %v932_v39  ;;  %v4377_v53 = vpop.f32.mrb[15].mxu0  ;;  %v1048_v56 = vmax.f32 %v1045_v51, 0.0  ;;  %v3986_v39 = vld [vmem:[%s6368_s5 + $0x68] sm:$0xff] }
 0x13c   : > { %v4853_v44 = vpack.c.bf16 %v3986_v39, %v3985_v38  ;;  %v3989_v38 = vld [vmem:[%s6369_s6] ss:$0 sm:$0xff] }
 0x13d   : > { %v1046_v54 = vadd.f32 %v3951_v49, %v1036_v52 }
 0x13e   : > { %v1031_v55 = vpop.f32.mrb[16].mxu0 }
 0x13f   : > { %v1049_v57 = vmax.f32 %v1046_v54, 0.0  ;;  %v1037_v58 = vadd.f32 %v1031_v55, %v933_v45  ;;  %v4380_v59 = vpop.f32.mrb[17].mxu0 }
 0x140   : > { %v1553_v59 = vld [vmem:[%s6368_s5 + $0x10] sm:$0xff] }
 0x141   : > { %v4784_v60 = vpack.c.bf16 %v1049_v57, %v1048_v56  ;;  %v1047_v61 = vadd.f32 %v3951_v49, %v1037_v58  ;;  %v3981_v57 = vld [vmem:[%s6368_s5 + $0x48] sm:$0xff]  ;;  %v3982_v58 = vld [vmem:[%s6368_s5 + $0x50] sm:$0xff] }
 0x143   : > { %v1050_v0 = vmax.f32 %v1047_v61, 0.0  ;;  %4785 = vmatprep.subr.bf16.mxu1 %v4784_v60  ;;  %4813 = vmatprep.subr.bf16.mxu0 %v4784_v60  ;;  %v4850_v61 = vpack.c.bf16 %v3982_v58, %v3981_v57  ;;  %v3999_v57 = vld [vmem:[%s6371_s8 + $0xc0] sm:$0xff]  ;;  %v4000_v58 = vld [vmem:[%s6371_s8 + $0xc8] sm:$0xff] }
 0x144   : > { %4787 = vmatpush3.bf16.msra.mxu1 %v4784_v60 }
 0x145   : > { %4385 = vmatprep.subr.mxu1 %v1050_v0 }
 0x148   : > { %4386 = vmatpush3.msra.mxu1 %v1050_v0 }
 0x149   : > { %4388 = vmatmul.mubr.msk.f32.vlgmr.msra.gmra.mrb[12].mxu1 %vm1053_vm8, %v1052_v6  ;;  %4801 = vmatprep.subr.bf16.mxu1 %v4800_v5 }
 0x14a   : > { %4803 = vmatpush3.bf16.msra.mxu1 %v4800_v5 }
 0x14b   : > { %4805 = vmatprep.subr.bf16.mxu1 %v4804_v8 }
 0x14e   : > { %4807 = vmatpush3.bf16.msra.mxu1 %v4804_v8 }
 0x14f   : > { %4809 = vmatprep.subr.bf16.mxu1 %v4808_v13 }
 0x152   : > { %4811 = vmatpush3.bf16.msra.mxu1 %v4808_v13 }
 0x153   : > { %4817 = vmatprep.subr.bf16.mxu1 %v5578_v4 }
 0x21c   : > { %v4389_v14 = vpop.f32.mrb[12].mxu1 }
 0x21d   : > { %v1126_v15 = vpop.f32.mrb[13].mxu1 }
 0x21e   : > { %4402 = vmatprep.mubr.msk.f32.mxu0 %vm1141_vm9, %v1126_v15  ;;  %4417 = vmatprep.mubr.msk.f32.mxu1 %vm1141_vm9, %v1126_v15 }
 0x21f   : > { %4403 = vmatmul.mubr.msk.f32.vlgmr.msra.gmra.mrb[18].mxu0 %vm1141_vm9, %v4389_v14  ;;  %4418 = vmatmul.mubr.msk.f32.vlgmr.msra.gmra.mrb[14].mxu1 %vm1141_vm9, %v4389_v14  ;;  %v2038_v14 = vld [vmem:[%s6371_s8 + $0x38] sm:$0xff] }
 0x220   : > { %4815 = vmatpush3.bf16.msra.mxu0 %v4784_v60  ;;  %4426 = vmatprep.mubr.msk.f32.mxu0 %vm1053_vm8, %v3964_v16  ;;  %v3987_v60 = vld [vmem:[%s6368_s5 + $0x70] sm:$0xff]  ;;  %v2039_v16 = vld [vmem:[%s6371_s8 + $0x40] sm:$0xff] }
 0x221   : > { %4424 = vmatprep.subr.mxu0 %v1050_v0  ;;  %4819 = vmatpush3.bf16.msra.mxu1 %v5578_v4 }
 0x222   : > { %4821 = vmatprep.subr.bf16.mxu1 %v5588_v7 }
 0x224   : > { %4425 = vmatpush3.msra.mxu0 %v1050_v0  ;;  %v2032_v0 = vld [vmem:[%s6371_s8 + $0x8] sm:$0xff] }
 0x225   : > { %4427 = vmatmul.mubr.msk.f32.vlgmr.msra.gmra.mrb[20].mxu0 %vm1053_vm8, %v3965_v17  ;;  %4829 = vmatprep.subr.bf16.mxu0 %v4800_v5  ;;  %v4856_v2 = vpack.c.bf16 %v2032_v0, %v2031_v63  ;;  %v2040_v17 = vld [vmem:[%s6371_s8 + $0x48] sm:$0xff]  ;;  %v4003_v63 = vld [vmem:[%s6371_s8 + $0xe0] sm:$0xff] }
 0x226   : > { %4831 = vmatpush3.bf16.msra.mxu0 %v4800_v5  ;;  %4823 = vmatpush3.bf16.msra.mxu1 %v5588_v7  ;;  %v2034_v5 = vld [vmem:[%s6371_s8 + $0x18] sm:$0xff]  ;;  %v4004_v0 = vld [vmem:[%s6371_s8 + $0xe8] sm:$0xff] }
 0x227   : > { %4833 = vmatprep.subr.bf16.mxu0 %v4804_v8  ;;  %4825 = vmatprep.subr.bf16.mxu1 %v5598_v10  ;;  %v4859_v6 = vpack.c.bf16 %v2034_v5, %v2033_v1  ;;  %v4898_v1 = vpack.c.bf16 %v4004_v0, %v4003_v63  ;;  %v4006_v5 = vld [vmem:[%s6371_s8 + $0xf8] sm:$0xff]  ;;  %v4025_v0 = vld [vmem:[%s6372_s9 + $0xb0] sm:$0xff] }
 0x22a   : > { %4835 = vmatpush3.bf16.msra.mxu0 %v4804_v8  ;;  %4827 = vmatpush3.bf16.msra.mxu1 %v5598_v10  ;;  %v3972_v10 = vld [vmem:[%s6368_s5 + $0x18] sm:$0xff]  ;;  %v2035_v8 = vld [vmem:[%s6371_s8 + $0x20] sm:$0xff] }
 0x22b   : > { %4837 = vmatprep.subr.bf16.mxu0 %v4808_v13  ;;  %4846 = vmatprep.subr.bf16.mxu1 %v5221_v3  ;;  %v4841_v26 = vpack.c.bf16 %v3973_v24, %v3972_v10  ;;  %v4862_v12 = vpack.c.bf16 %v2036_v9, %v2035_v8  ;;  %v2046_v10 = vld [vmem:[%s6371_s8 + $0x78] sm:$0xff]  ;;  %v4007_v8 = vld [vmem:[%s6370_s7 + $0x4] sm:$0xf] }
 0x22e   : > { %4839 = vmatpush3.bf16.msra.mxu0 %v4808_v13  ;;  %v2037_v13 = vld [vmem:[%s6371_s8 + $0x30] sm:$0xff] }
 0x22f   : > { %4840 = vmatprep.subr.bf16.mxu0 %v5221_v3  ;;  %v4865_v15 = vpack.c.bf16 %v2038_v14, %v2037_v13  ;;  %v2423_v13 = vld [vmem:[%s6372_s9] sm:$0xff]  ;;  %v2424_v14 = vld [vmem:[%s6372_s9 + $0x8] sm:$0xff] }
 0x2f2   : > { %v4404_v4 = vpop.f32.mrb[18].mxu0  ;;  %v4419_v18 = vpop.f32.mrb[14].mxu1 }
 0x2f3   : > { %v1306_v19 = vmax.f32 %v4404_v4, %v4419_v18  ;;  %v1214_v20 = vpop.f32.mrb[19].mxu0  ;;  %v1296_v21 = vpop.f32.mrb[15].mxu1  ;;  %v4868_v4 = vpack.c.bf16 %v2040_v17, %v2039_v16  ;;  %v2041_v18 = vld [vmem:[%s6371_s8 + $0x50] sm:$0xff] }
 0x2f4   : > { %v1305_v22 = vmax.f32 %v1214_v20, %v1296_v21  ;;  %v2043_v21 = vld [vmem:[%s6371_s8 + $0x60] sm:$0xff] }
 0x2f8   : > { %v4428_v23 = vpop.f32.mrb[20].mxu0 }
 0x2f9   : > { %v1382_v7 = vpop.f32.mrb[21].mxu0 }
 0x2fa   : > { %4441 = vmatprep.mubr.msk.f32.mxu1 %vm1141_vm9, %v1382_v7  ;;  %4456 = vmatprep.mubr.msk.f32.mxu0 %vm1141_vm9, %v1382_v7  ;;  %v2045_v7 = vld [vmem:[%s6371_s8 + $0x70] sm:$0xff] }
 0x2fb   : > { %4442 = vmatmul.mubr.msk.f32.vlgmr.msra.gmra.mrb[16].mxu1 %vm1141_vm9, %v4428_v23  ;;  %4457 = vmatmul.mubr.msk.f32.vlgmr.msra.gmra.mrb[22].mxu0 %vm1141_vm9, %v4428_v23  ;;  %v4877_v24 = vpack.c.bf16 %v2046_v10, %v2045_v7  ;;  %v2428_v7 = vld [vmem:[%s6372_s9 + $0x28] sm:$0xff] }
 0x2fc   : > { %4465 = vmatprep.mubr.msk.f32.mxu0 %vm5222_vm1, %v5223_v11  ;;  %4483 = vmatprep.mubr.msk.f32.mxu1 %vm5222_vm1, %v5223_v11 }
 0x2fd   : > { %4842 = vmatpush3.bf16.msra.mxu0 %v4841_v26  ;;  %4848 = vmatpush3.bf16.msra.mxu1 %v4847_v28 }
 0x2fe   : > { %4463 = vmatprep.subr.mxu0 %v5223_v11  ;;  %4481 = vmatprep.subr.mxu1 %v5223_v11 }
 0x301   : > { %4464 = vmatpush3.msra.mxu0 %v3974_v29  ;;  %4482 = vmatpush3.msra.mxu1 %v3979_v30 }
 0x302   : > { %4843 = vmatprep.subr.bf16.mxu0 %v5221_v3  ;;  %4852 = vmatprep.subr.bf16.mxu1 %v5221_v3 }
 0x3ce   : > { %v4443_v31 = vpop.f32.mrb[16].mxu1  ;;  %v4458_v32 = vpop.f32.mrb[22].mxu0 }
 0x3cf   : > { %v1473_v34 = vmax.f32 %v1306_v19, %v4443_v31  ;;  %v1463_v35 = vpop.f32.mrb[17].mxu1  ;;  %v1540_v36 = vpop.f32.mrb[23].mxu0  ;;  %v2042_v19 = vld [vmem:[%s6371_s8 + $0x58] sm:$0xff] }
 0x3d0   : > { %v1472_v40 = vmax.f32 %v1305_v22, %v1463_v35  ;;  %v4871_v20 = vpack.c.bf16 %v2042_v19, %v2041_v18  ;;  %v2044_v22 = vld [vmem:[%s6371_s8 + $0x68] sm:$0xff]  ;;  %v2425_v18 = vld [vmem:[%s6372_s9 + $0x10] sm:$0xff]  ;;  %v2426_v19 = vld [vmem:[%s6372_s9 + $0x18] sm:$0xff] }
 0x3d1   : > { %v1550_v41 = vmax.f32 %v1473_v34, %v4458_v32  ;;  %v4874_v23 = vpack.c.bf16 %v2044_v22, %v2043_v21  ;;  %v4955_v22 = vpack.c.bf16 %v2426_v19, %v2425_v18 }
 0x3d2   : > { %v1549_v42 = vmax.f32 %v1472_v40, %v1540_v36 }
 0x3d3   : > { %v1561_v45 = vrot.slane %v1550_v41, 1  ;;  %v1712_v46 = vrot.slane %v1550_v41, 2  ;;  %v1792_v47 = vrot.slane %v1550_v41, 3  ;;  %v1872_v48 = vrot.slane %v1550_v41, 4 }
 0x3d4   : > { %v1560_v49 = vrot.slane %v1549_v42, 1  ;;  %v1711_v50 = vrot.slane %v1549_v42, 2  ;;  %v1871_v51 = vrot.slane %v1549_v42, 4  ;;  %v1791_v52 = vrot.slane %v1549_v42, 3 }
 0x3d6   : > { %v1562_v53 = vsel %vm536_vm4, %v1560_v49, %v1561_v45  ;;  %v1713_v54 = vsel %vm729_vm7, %v1711_v50, %v1712_v46  ;;  %v1873_v55 = vsel %vm551_vm0, %v1871_v51, %v1872_v48  ;;  %v1793_v56 = vsel %vm834_vm6, %v1791_v52, %v1792_v47  ;;  %v3993_v46 = vld [vmem:[%s6371_s8 + $0x90] sm:$0xff]  ;;  %v3994_v47 = vld [vmem:[%s6371_s8 + $0x98] sm:$0xff]  ;;  %v3995_v51 = vld [vmem:[%s6371_s8 + $0xa0] sm:$0xff] }
 0x3d7   : > { %4466 = vmatmul.mubr.msk.f32.vlgmr.msra.gmra.mrb[24].mxu0 %vm1053_vm8, %v1562_v53  ;;  %4484 = vmatmul.mubr.msk.f32.vlgmr.msra.gmra.mrb[18].mxu1 %vm1053_vm8, %v1713_v54  ;;  %v4883_v50 = vpack.c.bf16 %v3994_v47, %v3993_v46  ;;  %v3996_v52 = vld [vmem:[%s6371_s8 + $0xa8] sm:$0xff]  ;;  %v3997_v54 = vld [vmem:[%s6371_s8 + $0xb0] sm:$0xff]  ;;  %v4013_v46 = vld [vmem:[%s6372_s9 + $0x58] sm:$0xff] }
 0x3d8   : > { %4845 = vmatpush3.bf16.msra.mxu0 %v4844_v43  ;;  %4854 = vmatpush3.bf16.msra.mxu1 %v4853_v44  ;;  %v3991_v43 = vld [vmem:[%s6371_s8 + $0x80] sm:$0xff]  ;;  %v3992_v44 = vld [vmem:[%s6371_s8 + $0x88] sm:$0xff]  ;;  %v4886_v53 = vpack.c.bf16 %v3996_v52, %v3995_v51  ;;  %v4016_v51 = vld [vmem:[%s6372_s9 + $0x70] sm:$0xff] }
 0x3d9   : > { %4472 = vmatprep.subr.mxu0 %v5223_v11  ;;  %4499 = vmatprep.subr.mxu1 %v5223_v11  ;;  %v4880_v45 = vpack.c.bf16 %v3992_v44, %v3991_v43  ;;  %v4017_v52 = vld [vmem:[%s6372_s9 + $0x78] sm:$0xff] }
 0x3da   : > { %4474 = vmatprep.mubr.msk.f32.mxu0 %vm5222_vm1, %v5223_v11  ;;  %4501 = vmatprep.mubr.msk.f32.mxu1 %vm5222_vm1, %v5223_v11 }
 0x3dc   : > { %4473 = vmatpush3.msra.mxu0 %v1553_v59  ;;  %4500 = vmatpush3.msra.mxu1 %v3987_v60  ;;  %v4892_v59 = vpack.c.bf16 %v4000_v58, %v3999_v57  ;;  %v4001_v60 = vld [vmem:[%s6371_s8 + $0xd0] sm:$0xff] }
 0x3dd   : > { %4475 = vmatmul.mubr.msk.f32.vlgmr.msra.gmra.mrb[26].mxu0 %vm1053_vm8, %v1549_v42  ;;  %4849 = vmatprep.subr.bf16.mxu0 %v5221_v3  ;;  %v1956_v42 = vld [vmem:[%s6370_s7] sm:$0xf]  ;;  %v4021_v58 = vld [vmem:[%s6372_s9 + $0x90] sm:$0xff] }
 0x3de   : > { %4502 = vmatmul.mubr.msk.f32.vlgmr.msra.gmra.mrb[20].mxu1 %vm1053_vm8, %v1873_v55  ;;  %4851 = vmatpush3.bf16.msra.mxu0 %v4850_v61  ;;  %v3998_v55 = vld [vmem:[%s6371_s8 + $0xb8] sm:$0xff] }
 0x3df   : > { %4490 = vmatprep.subr.mxu0 %v5223_v11  ;;  %4492 = vmatprep.mubr.msk.f32.mxu0 %vm5222_vm1, %v5223_v11  ;;  %v4002_v61 = vld [vmem:[%s6371_s8 + $0xd8] sm:$0xff] }
 0x3e0   : > { %4855 = vmatprep.subr.bf16.mxu1 %v5221_v3  ;;  %4541 = vmatprep.mubr.msk.f32.mxu1 %vm5222_vm1, %v5223_v11 }
 0x3e1   : > { %4857 = vmatpush3.bf16.msra.mxu1 %v4856_v2 }
 0x3e2   : > { %4491 = vmatpush3.msra.mxu0 %v3983_v62  ;;  %4858 = vmatprep.subr.bf16.mxu1 %v5221_v3  ;;  %v4895_v62 = vpack.c.bf16 %v4002_v61, %v4001_v60  ;;  %v4023_v61 = vld [vmem:[%s6372_s9 + $0xa0] sm:$0xff] }
 0x3e3   : > { %4493 = vmatmul.mubr.msk.f32.vlgmr.msra.gmra.mrb[28].mxu0 %vm1053_vm8, %v1793_v56  ;;  %4504 = vmatprep.subr.mxu0 %v5223_v11  ;;  %v4889_v56 = vpack.c.bf16 %v3998_v55, %v3997_v54  ;;  %v4019_v54 = vld [vmem:[%s6372_s9 + $0x80] sm:$0xff]  ;;  %v4020_v55 = vld [vmem:[%s6372_s9 + $0x88] sm:$0xff] }
 0x3e4   : > { %4506 = vmatprep.mubr.msk.f32.mxu0 %vm5222_vm1, %v5223_v11 }
 0x3e5   : > { %4860 = vmatpush3.bf16.msra.mxu1 %v4859_v6 }
 0x3e6   : > { %4861 = vmatprep.subr.bf16.mxu1 %v5221_v3 }
 0x3e9   : > { %4863 = vmatpush3.bf16.msra.mxu1 %v4862_v12 }
 0x3ea   : > { %4864 = vmatprep.subr.bf16.mxu1 %v5221_v3 }
 0x3ed   : > { %4866 = vmatpush3.bf16.msra.mxu1 %v4865_v15 }
 0x3ee   : > { %4867 = vmatprep.subr.bf16.mxu1 %v5221_v3 }
 0x3f1   : > { %4869 = vmatpush3.bf16.msra.mxu1 %v4868_v4 }
 0x3f2   : > { %4870 = vmatprep.subr.bf16.mxu1 %v5221_v3 }
 0x3f5   : > { %4872 = vmatpush3.bf16.msra.mxu1 %v4871_v20 }
 0x3f6   : > { %4873 = vmatprep.subr.bf16.mxu1 %v5221_v3 }
 0x3f9   : > { %4875 = vmatpush3.bf16.msra.mxu1 %v4874_v23 }
 0x3fa   : > { %4876 = vmatprep.subr.bf16.mxu1 %v5221_v3 }
 0x3fd   : > { %4878 = vmatpush3.bf16.msra.mxu1 %v4877_v24 }
 0x3fe   : > { %4879 = vmatprep.subr.bf16.mxu1 %v5221_v3 }
 0x4aa   : > { %v1631_v25 = vpop.f32.mrb[24].mxu0  ;;  %v1782_v26 = vpop.f32.mrb[18].mxu1 }
 0x4ab   : > { %v4467_v27 = vpop.f32.mrb[25].mxu0  ;;  %v4485_v28 = vpop.f32.mrb[19].mxu1 }
 0x4ac   : > { %v2756_v27 = vld [vmem:[%s6374_s11] sm:$0xff]  ;;  %v2757_v28 = vld [vmem:[%s6374_s11 + $0x8] sm:$0xff] }
 0x4b0   : > { %v1703_v29 = vpop.f32.mrb[26].mxu0 }
 0x4b1   : > { %v1704_v30 = vadd.f32 %v1703_v29, %v1631_v25  ;;  %v1942_v31 = vpop.f32.mrb[20].mxu1  ;;  %v4476_v32 = vpop.f32.mrb[27].mxu0  ;;  %v2430_v25 = vld [vmem:[%s6372_s9 + $0x38] sm:$0xff]  ;;  %v2758_v29 = vld [vmem:[%s6374_s11 + $0x10] sm:$0xff] }
 0x4b2   : > { %v4503_v33 = vpop.f32.mrb[21].mxu1 }
 0x4b3   : > { %v1786_v34 = vadd.f32 %v1782_v26, %v1704_v30  ;;  %v5000_v30 = vpack.c.bf16 %v2757_v28, %v2756_v27  ;;  %v2760_v33 = vld [vmem:[%s6374_s11 + $0x20] sm:$0xff] }
 0x4b6   : > { %v1862_v35 = vpop.f32.mrb[28].mxu0 }
 0x4b7   : > { %v1866_v36 = vadd.f32 %v1862_v35, %v1786_v34  ;;  %v4494_v37 = vpop.f32.mrb[29].mxu0  ;;  %v2761_v34 = vld [vmem:[%s6374_s11 + $0x28] sm:$0xff] }
 0x4b8   : > { %v5006_v35 = vpack.c.bf16 %v2761_v34, %v2760_v33  ;;  %v4011_v37 = vld [vmem:[%s6372_s9 + $0x48] sm:$0xff] }
 0x4b9   : > { %v1946_v39 = vadd.f32 %v1942_v31, %v1866_v36  ;;  %v2759_v31 = vld [vmem:[%s6374_s11 + $0x18] sm:$0xff]  ;;  %v4010_v36 = vld [vmem:[%s6372_s9 + $0x40] sm:$0xff] }
 0x4ba   : > { %v5003_v32 = vpack.c.bf16 %v2759_v31, %v2758_v29  ;;  %v4964_v43 = vpack.c.bf16 %v4011_v37, %v4010_v36 }
 0x4bb   : > { %v5792_v40 = vadd.f32 %v3989_v38, %v1946_v39 }
 0x4bd   : > { %v1955_v41 = vmax.f32 %v5792_v40, 0.0 }
 0x4bf   : > { %4505 = vmatpush3.msra.mxu0 %v1955_v41 }
 0x4c0   : > { %4507 = vmatmul.mubr.msk.f32.vlgmr.msra.gmra.mrb[30].mxu0 %vm1957_vm10, %v1956_v42  ;;  %4903 = vmatprep.subr.bf16.mxu0 %v5221_v3 }
 0x4c1   : > { %4905 = vmatpush3.bf16.msra.mxu0 %v4856_v2  ;;  %4616 = vmatprep.mubr.msk.f32.mxu0 %vm5222_vm1, %v5223_v11  ;;  %v4005_v2 = vld [vmem:[%s6371_s8 + $0xf0] sm:$0xff] }
 0x4c2   : > { %4906 = vmatprep.subr.bf16.mxu0 %v5221_v3 }
 0x4c5   : > { %4908 = vmatpush3.bf16.msra.mxu0 %v4859_v6  ;;  %v4901_v6 = vpack.c.bf16 %v4006_v5, %v4005_v2  ;;  %v4028_v5 = vld [vmem:[%s6372_s9 + $0xc0] sm:$0xff] }
 0x4c6   : > { %4909 = vmatprep.subr.bf16.mxu0 %v5221_v3 }
 0x4c9   : > { %4911 = vmatpush3.bf16.msra.mxu0 %v4862_v12 }
 0x4ca   : > { %4912 = vmatprep.subr.bf16.mxu0 %v5221_v3 }
 0x4cd   : > { %4914 = vmatpush3.bf16.msra.mxu0 %v4865_v15 }
 0x4ce   : > { %4915 = vmatprep.subr.bf16.mxu0 %v5221_v3 }
 0x4d1   : > { %4917 = vmatpush3.bf16.msra.mxu0 %v4868_v4  ;;  %v4952_v4 = vpack.c.bf16 %v2424_v14, %v2423_v13  ;;  %v4031_v13 = vld [vmem:[%s6372_s9 + $0xd8] sm:$0xff] }
 0x4d2   : > { %4918 = vmatprep.subr.bf16.mxu0 %v5221_v3 }
 0x4d5   : > { %4920 = vmatpush3.bf16.msra.mxu0 %v4871_v20 }
 0x4d6   : > { %4921 = vmatprep.subr.bf16.mxu0 %v5221_v3 }
 0x4d9   : > { %4923 = vmatpush3.bf16.msra.mxu0 %v4874_v23  ;;  %v2427_v23 = vld [vmem:[%s6372_s9 + $0x20] sm:$0xff] }
 0x4da   : > { %4924 = vmatprep.subr.bf16.mxu0 %v5221_v3  ;;  %v4958_v10 = vpack.c.bf16 %v2428_v7, %v2427_v23  ;;  %v2422_v23 = vld [vmem:[%s6373_s10] sm:$0x1] }
 0x4dd   : > { %4926 = vmatpush3.bf16.msra.mxu0 %v4877_v24  ;;  %v2429_v24 = vld [vmem:[%s6372_s9 + $0x30] sm:$0xff] }
 0x4de   : > { %4951 = vmatprep.subr.bf16.mxu0 %v5221_v3  ;;  %v4961_v26 = vpack.c.bf16 %v2430_v25, %v2429_v24  ;;  %v2764_v25 = vld [vmem:[%s6375_s12] sm:$0x1] }
 0x593   : > { %v2027_v48 = vpop.f32.mrb[30].mxu0 }
 0x594   : > { %4542 = vmatmul.mubr.f32.vlgmr.msra.gmra.mrb[22].mxu1 %v2027_v48  ;;  %v4508_v49 = vpop.f32.mrb[31].mxu0 }
 0x595   : > { %4881 = vmatpush3.bf16.msra.mxu1 %v4880_v45  ;;  %4576 = vmatprep.mubr.msk.f32.mxu1 %vm5222_vm1, %v5223_v11  ;;  %v4015_v49 = vld [vmem:[%s6372_s9 + $0x68] sm:$0xff] }
 0x596   : > { %4882 = vmatprep.subr.bf16.mxu1 %v5221_v3 }
 0x599   : > { %4884 = vmatpush3.bf16.msra.mxu1 %v4883_v50 }
 0x59a   : > { %4885 = vmatprep.subr.bf16.mxu1 %v5221_v3 }
 0x59d   : > { %4887 = vmatpush3.bf16.msra.mxu1 %v4886_v53 }
 0x59e   : > { %4888 = vmatprep.subr.bf16.mxu1 %v5221_v3 }
 0x5a1   : > { %4890 = vmatpush3.bf16.msra.mxu1 %v4889_v56 }
 0x5a2   : > { %4891 = vmatprep.subr.bf16.mxu1 %v5221_v3 }
 0x5a5   : > { %4893 = vmatpush3.bf16.msra.mxu1 %v4892_v59 }
 0x5a6   : > { %4894 = vmatprep.subr.bf16.mxu1 %v5221_v3 }
 0x5a9   : > { %4896 = vmatpush3.bf16.msra.mxu1 %v4895_v62 }
 0x5aa   : > { %4897 = vmatprep.subr.bf16.mxu1 %v5221_v3 }
 0x5ad   : > { %4899 = vmatpush3.bf16.msra.mxu1 %v4898_v1 }
 0x5ae   : > { %4900 = vmatprep.subr.bf16.mxu1 %v5221_v3 }
 0x5b1   : > { %4902 = vmatpush3.bf16.msra.mxu1 %v4901_v6 }
 0x5b2   : > { %4579 = vmatprep.subr.mxu1 %v5223_v11 }
 0x5b4   : > { %4577 = vmatmul.mubr.f32.vlgmr.msra.gmra.mrb[24].mxu1 %v2027_v48  ;;  %v4014_v48 = vld [vmem:[%s6372_s9 + $0x60] sm:$0xff] }
 0x5b5   : > { %4580 = vmatpush3.msra.mxu1 %v1955_v41  ;;  %4581 = vmatprep.mubr.msk.f32.mxu1 %vm5222_vm1, %v5223_v11 }
 0x5b6   : > { %4927 = vmatprep.subr.bf16.mxu1 %v5221_v3 }
 0x5b8   : > { %4582 = vmatmul.mubr.msk.f32.vlgmr.msra.gmra.mrb[26].mxu1 %vm1957_vm10, %v4007_v8 }
 0x5b9   : > { %4929 = vmatpush3.bf16.msra.mxu1 %v4880_v45  ;;  %4651 = vmatprep.mubr.msk.f32.mxu1 %vm5222_vm1, %v5223_v11  ;;  %v4012_v45 = vld [vmem:[%s6372_s9 + $0x50] sm:$0xff] }
 0x5ba   : > { %4930 = vmatprep.subr.bf16.mxu1 %v5221_v3  ;;  %v4967_v47 = vpack.c.bf16 %v4013_v46, %v4012_v45 }
 0x5bd   : > { %4932 = vmatpush3.bf16.msra.mxu1 %v4883_v50  ;;  %v4970_v50 = vpack.c.bf16 %v4015_v49, %v4014_v48 }
 0x5be   : > { %4933 = vmatprep.subr.bf16.mxu1 %v5221_v3 }
 0x5c1   : > { %4935 = vmatpush3.bf16.msra.mxu1 %v4886_v53  ;;  %v4973_v53 = vpack.c.bf16 %v4017_v52, %v4016_v51 }
 0x5c2   : > { %4936 = vmatprep.subr.bf16.mxu1 %v5221_v3 }
 0x5c5   : > { %4938 = vmatpush3.bf16.msra.mxu1 %v4889_v56  ;;  %v4976_v56 = vpack.c.bf16 %v4020_v55, %v4019_v54  ;;  %v5227_v55 = vmov 683565275  }
 0x5c6   : > { %4939 = vmatprep.subr.bf16.mxu1 %v5221_v3 }
 0x5c9   : > { %4941 = vmatpush3.bf16.msra.mxu1 %v4892_v59  ;;  %v4022_v59 = vld [vmem:[%s6372_s9 + $0x98] sm:$0xff] }
 0x5ca   : > { %4942 = vmatprep.subr.bf16.mxu1 %v5221_v3  ;;  %v4979_v60 = vpack.c.bf16 %v4022_v59, %v4021_v58  ;;  %v5228_v59 = vmov 2475754826  }
 0x5cd   : > { %4944 = vmatpush3.bf16.msra.mxu1 %v4895_v62  ;;  %v4024_v62 = vld [vmem:[%s6372_s9 + $0xa8] sm:$0xff] }
 0x5ce   : > { %4945 = vmatprep.subr.bf16.mxu1 %v5221_v3  ;;  %v4982_v63 = vpack.c.bf16 %v4024_v62, %v4023_v61  ;;  %v5229_v61 = vmov 2131351028  }
 0x5d1   : > { %4947 = vmatpush3.bf16.msra.mxu1 %v4898_v1  ;;  %v4026_v1 = vld [vmem:[%s6372_s9 + $0xb8] sm:$0xff] }
 0x5d2   : > { %4948 = vmatprep.subr.bf16.mxu1 %v5221_v3  ;;  %v4985_v2 = vpack.c.bf16 %v4026_v1, %v4025_v0  ;;  %v5231_v1 = vmov 920167782  }
 0x5d5   : > { %4950 = vmatpush3.bf16.msra.mxu1 %v4901_v6  ;;  %v4029_v6 = vld [vmem:[%s6372_s9 + $0xc8] sm:$0xff] }
 0x5d6   : > { %4999 = vmatprep.subr.bf16.mxu1 %v5221_v3  ;;  %v4988_v8 = vpack.c.bf16 %v4029_v6, %v4028_v5 }
 0x667   : > { %v2113_v9 = vpop.f32.mrb[22].mxu1 }
 0x668   : > { %v4543_v12 = vpop.f32.mrb[23].mxu1 }
 0x669   : > { %v4030_v12 = vld [vmem:[%s6372_s9 + $0xd0] sm:$0xff] }
 0x66a   : > { %v4991_v14 = vpack.c.bf16 %v4031_v13, %v4030_v12  ;;  %v5232_v13 = vmov 1326507024  }
 0x687   : > { %v2200_v15 = vpop.f32.mrb[24].mxu1 }
 0x688   : > { %v2204_v16 = vmax.f32 %v2113_v9, %v2200_v15  ;;  %v4578_v17 = vpop.f32.mrb[25].mxu1  ;;  %v4032_v15 = vld [vmem:[%s6372_s9 + $0xe0] sm:$0xff] }
 0x68b   : > { %v2276_v20 = vpop.f32.mrb[26].mxu1 }
 0x68c   : > { %4617 = vmatmul.mubr.f32.vlgmr.msra.gmra.mrb[32].mxu0 %v2276_v20  ;;  %4652 = vmatmul.mubr.f32.vlgmr.msra.gmra.mrb[28].mxu1 %v2276_v20  ;;  %v4583_v21 = vpop.f32.mrb[27].mxu1  ;;  %v2762_v20 = vld [vmem:[%s6374_s11 + $0x30] sm:$0xff] }
 0x68d   : > { %4953 = vmatpush3.bf16.msra.mxu0 %v4952_v4  ;;  %4670 = vmatprep.mubr.msk.f32.mxu0 %vm5222_vm1, %v5223_v11  ;;  %v4034_v4 = vld [vmem:[%s6372_s9 + $0xf0] sm:$0xff]  ;;  %v2763_v21 = vld [vmem:[%s6374_s11 + $0x38] sm:$0xff] }
 0x68e   : > { %4954 = vmatprep.subr.bf16.mxu0 %v5221_v3  ;;  %4746 = vmatprep.mubr.msk.f32.mxu1 %vm5222_vm1, %v5223_v11 }
 0x68f   : > { %5001 = vmatpush3.bf16.msra.mxu1 %v5000_v30 }
 0x690   : > { %5002 = vmatprep.subr.bf16.mxu1 %v5221_v3 }
 0x691   : > { %4956 = vmatpush3.bf16.msra.mxu0 %v4955_v22  ;;  %v5009_v22 = vpack.c.bf16 %v2763_v21, %v2762_v20 }
 0x692   : > { %4957 = vmatprep.subr.bf16.mxu0 %v5221_v3 }
 0x693   : > { %5004 = vmatpush3.bf16.msra.mxu1 %v5003_v32 }
 0x694   : > { %5005 = vmatprep.subr.bf16.mxu1 %v5221_v3 }
 0x695   : > { %4959 = vmatpush3.bf16.msra.mxu0 %v4958_v10 }
 0x696   : > { %4960 = vmatprep.subr.bf16.mxu0 %v5221_v3 }
 0x697   : > { %5007 = vmatpush3.bf16.msra.mxu1 %v5006_v35 }
 0x698   : > { %5008 = vmatprep.subr.bf16.mxu1 %v5221_v3 }
 0x699   : > { %4962 = vmatpush3.bf16.msra.mxu0 %v4961_v26 }
 0x69a   : > { %4963 = vmatprep.subr.bf16.mxu0 %v5221_v3 }
 0x69b   : > { %5010 = vmatpush3.bf16.msra.mxu1 %v5009_v22 }
 0x75f   : > { %v2346_v38 = vpop.f32.mrb[32].mxu0  ;;  %v2417_v39 = vpop.f32.mrb[28].mxu1 }
 0x760   : > { %v2350_v40 = vmax.f32 %v2204_v16, %v2346_v38  ;;  %v4618_v41 = vpop.f32.mrb[33].mxu0  ;;  %v4653_v42 = vpop.f32.mrb[29].mxu1  ;;  %v4033_v16 = vld [vmem:[%s6372_s9 + $0xe8] sm:$0xff] }
 0x761   : > { %v4994_v17 = vpack.c.bf16 %v4033_v16, %v4032_v15 }
 0x762   : > { %v5948_v44 = vmax.f32 %v2350_v40, %v2417_v39 }
 0x764   : > { %4671 = vmatmul.mubr.msk.f32.vlgmr.msra.gmra.mrb[34].mxu0 %vm2431_vm11, %v5948_v44  ;;  %v2515_v57 = vrot.slane %v5948_v44, 1  ;;  %v2598_v9 = vrot.slane %v5948_v44, 2  ;;  %v2681_v19 = vrot.slane %v5948_v44, 3 }
 0x765   : > { %4965 = vmatpush3.bf16.msra.mxu0 %v4964_v43  ;;  %4689 = vmatprep.mubr.msk.f32.mxu0 %vm5222_vm1, %v5223_v11 }
 0x766   : > { %4966 = vmatprep.subr.bf16.mxu0 %v5221_v3 }
 0x769   : > { %4968 = vmatpush3.bf16.msra.mxu0 %v4967_v47 }
 0x76a   : > { %4969 = vmatprep.subr.bf16.mxu0 %v5221_v3 }
 0x76d   : > { %4971 = vmatpush3.bf16.msra.mxu0 %v4970_v50 }
 0x76e   : > { %4972 = vmatprep.subr.bf16.mxu0 %v5221_v3 }
 0x771   : > { %4974 = vmatpush3.bf16.msra.mxu0 %v4973_v53 }
 0x772   : > { %4975 = vmatprep.subr.bf16.mxu0 %v5221_v3 }
 0x774   : > { %4690 = vmatmul.mubr.msk.f32.vlgmr.msra.gmra.mrb[34].mxu0 %vm2431_vm11, %v2515_v57 }
 0x775   : > { %4977 = vmatpush3.bf16.msra.mxu0 %v4976_v56  ;;  %4708 = vmatprep.mubr.msk.f32.mxu0 %vm5222_vm1, %v5223_v11 }
 0x776   : > { %4978 = vmatprep.subr.bf16.mxu0 %v5221_v3 }
 0x779   : > { %4980 = vmatpush3.bf16.msra.mxu0 %v4979_v60 }
 0x77a   : > { %4981 = vmatprep.subr.bf16.mxu0 %v5221_v3 }
 0x77d   : > { %4983 = vmatpush3.bf16.msra.mxu0 %v4982_v63  ;;  %v5230_v63 = vmov 2102212464  }
 0x77e   : > { %4984 = vmatprep.subr.bf16.mxu0 %v5221_v3 }
 0x781   : > { %4986 = vmatpush3.bf16.msra.mxu0 %v4985_v2 }
 0x782   : > { %4987 = vmatprep.subr.bf16.mxu0 %v5221_v3 }
 0x784   : > { %4709 = vmatmul.mubr.msk.f32.vlgmr.msra.gmra.mrb[34].mxu0 %vm2431_vm11, %v2598_v9 }
 0x785   : > { %4989 = vmatpush3.bf16.msra.mxu0 %v4988_v8  ;;  %4727 = vmatprep.mubr.msk.f32.mxu0 %vm5222_vm1, %v5223_v11  ;;  %v4035_v11 = vld [vmem:[%s6372_s9 + $0xf8] sm:$0xff] }
 0x786   : > { %4990 = vmatprep.subr.bf16.mxu0 %v5221_v3  ;;  %v4997_v18 = vpack.c.bf16 %v4035_v11, %v4034_v4 }
 0x789   : > { %4992 = vmatpush3.bf16.msra.mxu0 %v4991_v14 }
 0x78a   : > { %4993 = vmatprep.subr.bf16.mxu0 %v5221_v3 }
 0x78d   : > { %4995 = vmatpush3.bf16.msra.mxu0 %v4994_v17 }
 0x78e   : > { %4996 = vmatprep.subr.bf16.mxu0 %v5221_v3 }
 0x791   : > { %4998 = vmatpush3.bf16.msra.mxu0 %v4997_v18 }
 0x794   : > { %4728 = vmatmul.mubr.msk.f32.vlgmr.msra.gmra.mrb[34].mxu0 %vm2431_vm11, %v2681_v19 }
 0x867   : > { %v2750_v3 = vpop.f32.mrb[34].mxu0 }
 0x868   : > { %v5011_v7 = vadd.f32 %v2750_v3, %v2422_v23  ;;  %v4729_v10 = vpop.f32.mrb[35].mxu0 }
 0x86a   : > { %v2755_v24 = vmax.f32 %v5011_v7, 0.0 }
 0x86c   : > { %4747 = vmatmul.mubr.msk.f32.vlgmr.msra.gmra.mrb[30].mxu1 %vm2431_vm11, %v2755_v24 }
 0x93f   : > { %v2834_v26 = vpop.f32.mrb[30].mxu1 }
 0x940   : > { %v2835_v27 = vadd.f32 %v2834_v26, %v2764_v25  ;;  %v4748_v28 = vpop.f32.mrb[31].mxu1 }
 0x942   : > { %v2838_v29 = vmax.f32 %v2835_v27, 0.0 }
 0x944   : > { %v2839_v30 = vsub.f32 3.1415927, %v2838_v29  ;;  %v6056_v33 = vmul.f32 2.0, %v2838_v29 }
 0x946   : > { %2842 = vrot.lane.b32.xlu0 %v2839_v30, %s5225_s23  ;;  %v2840_v31 = vmul.f32 2.0, %v2839_v30 }
 0x94a   : > { %2854 = vrot.lane.b32.xlu0 %v2838_v29, %s5225_s23 }
 0x9b8   : > { %v2843_v32 = vpop.permute.xlu0 %2842 }
 0x9b9   : > { %v2845_v34 = vmul.f32 %v2843_v32, %v2840_v31 }
 0x9bb   : > { %v6059_v35 = vadd.f32 %v6056_v33, %v2845_v34  ;;  %2848 = vrot.lane.b32.xlu1 %v2845_v34, %s5226_s20 }
 0x9bc   : > { %v2855_v36 = vpop.permute.xlu0 %2854 }
 0x9bd   : > { %v2962_v37 = vand.u32 2147483647, %v6059_v35  ;;  %v2965_v38 = vand.u32 2139095040, %v6059_v35  ;;  %v2857_v39 = vadd.f32 %v2855_v36, %v2838_v29  ;;  %vm2964_vm10 = vcmp.lt.s32.totalorder %v6059_v35, 0 }
 0x9bf   : > { %v2966_v40 = vshrl.u32 %v2965_v38, 23  ;;  %v6064_v41 = vmul.f32 2.0, %v2857_v39  ;;  %v2969_v42 = vand.u32 8388607, %v2962_v37  ;;  %vm2963_vm11 = vcmp.le.f32.partialorder %v2962_v37, 0.7853982 }
 0x9c1   : > { %v4042_v43 = vadd.s32 4294967169, %v2966_v40  ;;  %v3068_v44 = vand.u32 2139095040, %v6064_v41  ;;  %v2970_v46 = vor.u32 8388608, %v2969_v42  ;;  %v3065_v48 = vand.u32 2147483647, %v6064_v41 }
 0x9c3   : > { %v2972_v45 = vadd.s32 1, %v4042_v43  ;;  %v3069_v47 = vshrl.u32 %v3068_v44, 23  ;;  %v6070_v53 = vshll.u32 %v2970_v46, 8  ;;  %v3072_v57 = vand.u32 8388607, %v3065_v48 }
 0x9c5   : > { %vm2973_vm12 = vcmp.gt.s32.totalorder %v2972_v45, 0  ;;  %v4046_v50 = vadd.s32 4294967169, %v3069_v47  ;;  %v3073_v10 = vor.u32 8388608, %v3072_v57 }
 0x9c6   : > { %v2974_v49 = vsel %vm2973_vm12, %v2972_v45, 0  ;;  %vm3067_vm12 = vcmp.lt.s32.totalorder %v6064_v41, 0 }
 0x9c7   : > { %v2975_v51 = vshrl.u32 %v2974_v49, 5  ;;  %v2976_v52 = vand.u32 31, %v2974_v49  ;;  %v3075_v58 = vadd.s32 1, %v4046_v50  ;;  %v3113_v39 = vshll.u32 %v3073_v10, 8 }
 0x9c9   : > { %v2977_v54 = vsub.s32 32, %v2976_v52  ;;  %v2979_v56 = vshll.u32 %v5227_v55, %v2976_v52  ;;  %v2982_v60 = vshll.u32 %v5228_v59, %v2976_v52  ;;  %v2985_v62 = vshll.u32 %v5229_v61, %v2976_v52 }
 0x9ca   : > { %v2988_v0 = vshll.u32 %v5230_v63, %v2976_v52  ;;  %v2991_v2 = vshll.u32 %v5231_v1, %v2976_v52  ;;  %vm2994_vm13 = vcmp.lt.s32.totalorder %v2975_v51, 1  ;;  %vm2996_vm14 = vcmp.lt.s32.totalorder %v2975_v51, 3 }
 0x9cb   : > { %v2980_v5 = vshrl.u32 %v5228_v59, %v2977_v54  ;;  %v2983_v6 = vshrl.u32 %v5229_v61, %v2977_v54  ;;  %v2986_v8 = vshrl.u32 %v5230_v63, %v2977_v54  ;;  %v2978_v9 = vshrl.u32 %v5227_v55, %v2977_v54 }
 0x9cc   : > { %v2989_v12 = vshrl.u32 %v5231_v1, %v2977_v54  ;;  %v2992_v14 = vshrl.u32 %v5232_v13, %v2977_v54  ;;  %vm3076_vm15 = vcmp.gt.s32.totalorder %v3075_v58, 0  ;;  %vm2997_vm0 = vcmp.lt.s32.totalorder %v2975_v51, 4 }
 0x9cd   : > { %v2981_v15 = vor.u32 %v2980_v5, %v2979_v56  ;;  %v2984_v16 = vor.u32 %v2983_v6, %v2982_v60  ;;  %v2987_v17 = vor.u32 %v2986_v8, %v2985_v62  ;;  %v3077_v18 = vsel %vm3076_vm15, %v3075_v58, 0 }
 0x9ce   : > { %v2990_v4 = vor.u32 %v2989_v12, %v2988_v0  ;;  %v2993_v11 = vor.u32 %v2992_v14, %v2991_v2  ;;  %vm2995_vm1 = vcmp.lt.s32.totalorder %v2975_v51, 2  ;;  %v3079_v26 = vand.u32 31, %v3077_v18 }
 0x9cf   : > { %v2998_v19 = vsel %vm2994_vm13, %v2978_v9, %v2981_v15  ;;  %v2999_v20 = vsel %vm2997_vm0, %v2987_v17, 2102212464  ;;  %v3002_v21 = vsel %vm2994_vm13, %v2981_v15, %v2984_v16  ;;  %v3006_v22 = vsel %vm2994_vm13, %v2984_v16, %v2987_v17 }
 0x9d0   : > { %v3000_v23 = vsel %vm2996_vm14, %v2984_v16, %v2999_v20  ;;  %v3003_v3 = vsel %vm2997_vm0, %v2990_v4, 920167782  ;;  %v3007_v7 = vsel %vm2997_vm0, %v2993_v11, 1326507024  ;;  %v3078_v36 = vshrl.u32 %v3077_v18, 5 }
 0x9d1   : > { %v3004_v24 = vsel %vm2996_vm14, %v2987_v17, %v3003_v3  ;;  %v3008_v25 = vsel %vm2996_vm14, %v2990_v4, %v3007_v7  ;;  %v3001_v27 = vsel %vm2995_vm1, %v2998_v19, %v3000_v23  ;;  %v3080_v38 = vsub.s32 32, %v3079_v26 }
 0x9d2   : > { %v3005_v28 = vsel %vm2995_vm1, %v3002_v21, %v3004_v24  ;;  %v3009_v29 = vsel %vm2995_vm1, %v3006_v22, %v3008_v25  ;;  %v3017_v40 = vmul.u32 %v6070_v53, %v3001_v27  ;;  %v3082_v42 = vshll.u32 %v5227_v55, %v3079_v26 }
 0x9d3   : > { %v6092_v30 = vmul.u32.u64.low %v6070_v53, %v3009_v29  ;;  %v6093_v31 = vmul.u32.u64.high %v6070_v53, %v3009_v29, %v6092_v30  ;;  %v6096_v32 = vmul.u32.u64.low %v6070_v53, %v3005_v28  ;;  %v6097_v34 = vmul.u32.u64.high %v6070_v53, %v3005_v28, %v6096_v32 }
 0x9d4   : > { %v3085_v43 = vshll.u32 %v5228_v59, %v3079_v26  ;;  %v3088_v44 = vshll.u32 %v5229_v61, %v3079_v26  ;;  %v3083_v45 = vshrl.u32 %v5228_v59, %v3080_v38  ;;  %v3086_v46 = vshrl.u32 %v5229_v61, %v3080_v38 }
 0x9d5   : > { %v3089_v47 = vshrl.u32 %v5230_v63, %v3080_v38  ;;  %v3091_v49 = vshll.u32 %v5230_v63, %v3079_v26  ;;  %vm3019_vm2 = vc.u32 %v6093_v31, %v6096_v32  ;;  %v3020_v50 = vadd.s32 1, %v6097_v34 }
 0x9d6   : > { %v3092_v51 = vshrl.u32 %v5231_v1, %v3080_v38  ;;  %v3094_v52 = vshll.u32 %v5231_v1, %v3079_v26  ;;  %v3084_v53 = vor.u32 %v3083_v45, %v3082_v42  ;;  %v3087_v54 = vor.u32 %v3086_v46, %v3085_v43 }
 0x9d7   : > { %v3090_v56 = vor.u32 %v3089_v47, %v3088_v44  ;;  %v3095_v57 = vshrl.u32 %v5232_v13, %v3080_v38  ;;  %v3021_v58 = vsel %vm3019_vm2, %v3020_v50, %v6097_v34  ;;  %vm3097_vm3 = vcmp.lt.s32.totalorder %v3078_v36, 1 }
 0x9d8   : > { %v3093_v60 = vor.u32 %v3092_v51, %v3091_v49  ;;  %vm3100_vm4 = vcmp.lt.s32.totalorder %v3078_v36, 4  ;;  %v3022_v62 = vadd.s32 %v3021_v58, %v3017_v40  ;;  %vm3099_vm5 = vcmp.lt.s32.totalorder %v3078_v36, 3 }
 0x9d9   : > { %v3096_v0 = vor.u32 %v3095_v57, %v3094_v52  ;;  %v3102_v2 = vsel %vm3100_vm4, %v3090_v56, 2102212464  ;;  %v3081_v5 = vshrl.u32 %v5227_v55, %v3080_v38  ;;  %v3105_v6 = vsel %vm3097_vm3, %v3084_v53, %v3087_v54 }
 0x9da   : > { %v3106_v8 = vsel %vm3100_vm4, %v3093_v60, 920167782  ;;  %v3109_v9 = vsel %vm3097_vm3, %v3087_v54, %v3090_v56  ;;  %v3023_v12 = vadd.s32 536870912, %v3022_v62  ;;  %vm3098_vm6 = vcmp.lt.s32.totalorder %v3078_v36, 2 }
 0x9db   : > { %v3107_v14 = vsel %vm3099_vm5, %v3090_v56, %v3106_v8  ;;  %v3110_v15 = vsel %vm3100_vm4, %v3096_v0, 1326507024  ;;  %v3101_v16 = vsel %vm3097_vm3, %v3081_v5, %v3084_v53  ;;  %v3103_v17 = vsel %vm3099_vm5, %v3087_v54, %v3102_v2 }
 0x9dc   : > { %v3108_v4 = vsel %vm3098_vm6, %v3105_v6, %v3107_v14  ;;  %v3111_v11 = vsel %vm3099_vm5, %v3093_v60, %v3110_v15  ;;  %v3024_v18 = vshrl.u32 %v3023_v12, 30  ;;  %v3104_v7 = vsel %vm3098_vm6, %v3101_v16, %v3103_v17 }
 0x9dd   : > { %v3112_v19 = vsel %vm3098_vm6, %v3109_v9, %v3111_v11  ;;  %v6116_v20 = vmul.u32.u64.low %v3113_v39, %v3108_v4  ;;  %v6117_v21 = vmul.u32.u64.high %v3113_v39, %v3108_v4, %v6116_v20  ;;  %v3120_v25 = vmul.u32 %v3113_v39, %v3104_v7 }
 0x9de   : > { %v6119_v22 = vmul.u32.u64.low %v3113_v39, %v3112_v19  ;;  %v6120_v23 = vmul.u32.u64.high %v3113_v39, %v3112_v19, %v6119_v22  ;;  %v3025_v3 = vshll.u32 %v3024_v18, 30  ;;  %v3018_v44 = vadd.s32 %v6096_v32, %v6093_v31 }
 0x9df   : > { %v3123_v24 = vadd.s32 1, %v6117_v21  ;;  %v3048_v0 = vsub.s32 4, %v3024_v18  ;;  %vm3066_vm13 = vcmp.le.f32.partialorder %v3065_v48, 0.7853982  ;;  %vm3054_vm4 = vweird.f32 %v6059_v35 }
 0x9e0   : > { %v3026_v10 = vsub.s32 %v3022_v62, %v3025_v3  ;;  %vm3122_vm7 = vc.u32 %v6120_v23, %v6116_v20  ;;  %v3121_v31 = vadd.s32 %v6116_v20, %v6120_v23 }
 0x9e1   : > { %v3124_v27 = vsel %vm3122_vm7, %v3123_v24, %v6117_v21  ;;  %v3049_v15 = vsel %vm2964_vm10, %v3048_v0, %v3024_v18 }
 0x9e2   : > { %v3028_v26 = vsub.s32 0, %v3026_v10  ;;  %v3125_v28 = vadd.s32 %v3124_v27, %v3120_v25  ;;  %v3051_v19 = vsel %vm2963_vm11, 0, %v3049_v15 }
 0x9e3   : > { %v3365_v22 = vadd.s32 3, %v3051_v19 }
 0x9e4   : > { %v4043_v29 = vmin.u32 %v3028_v26, %v3026_v10  ;;  %v3126_v30 = vadd.s32 536870912, %v3125_v28 }
 0x9e5   : > { %v3366_v37 = vand.u32 3, %v3365_v22 }
 0x9e6   : > { %v3030_v34 = vclz %v4043_v29  ;;  %v3127_v36 = vshrl.u32 %v3126_v30, 30 }
 0x9e7   : > { %vm3371_vm15 = vcmp.eq.s32.totalorder %v3366_v37, 2  ;;  %vm3368_vm0 = vcmp.eq.s32.totalorder %v3366_v37, 0  ;;  %vm3367_vm2 = vcmp.lt.s32.totalorder %v3366_v37, 2 }
 0x9e8   : > { %v4044_v38 = vadd.s32 4294967294, %v3030_v34  ;;  %v3128_v40 = vshll.u32 %v3127_v36, 30  ;;  %v3151_v3 = vsub.s32 4, %v3127_v36 }
 0x9ea   : > { %vm4045_vm8 = vcmp.lt.s32.totalorder %v4044_v38, 0  ;;  %v3129_v43 = vsub.s32 %v3125_v28, %v3128_v40  ;;  %v3152_v24 = vsel %vm3067_vm12, %v3151_v3, %v3127_v36 }
 0x9eb   : > { %v3033_v42 = vsel %vm4045_vm8, 0, %v4044_v38  ;;  %v3154_v29 = vsel %vm3066_vm13, 0, %v3152_v24 }
 0x9ec   : > { %v3034_v45 = vsub.s32 32, %v3033_v42  ;;  %v3038_v39 = vsub.s32 4294967266, %v3033_v42  ;;  %v3131_v46 = vsub.s32 0, %v3129_v43  ;;  %v3035_v47 = vshll.u32 %v3026_v10, %v3033_v42 }
 0x9ed   : > { %v3055_v10 = vand.u32 3, %v3051_v19  ;;  %v3469_v36 = vadd.s32 3, %v3154_v29 }
 0x9ee   : > { %v3036_v49 = vshrl.u32 %v3018_v44, %v3034_v45  ;;  %v3039_v50 = vadd.s32 127, %v3038_v39  ;;  %v4047_v51 = vmin.u32 %v3131_v46, %v3129_v43  ;;  %v3158_v46 = vand.u32 3, %v3154_v29 }
 0x9ef   : > { %vm3060_vm14 = vcmp.eq.s32.totalorder %v3055_v10, 2  ;;  %vm3057_vm1 = vcmp.eq.s32.totalorder %v3055_v10, 0  ;;  %vm3056_vm3 = vcmp.lt.s32.totalorder %v3055_v10, 2  ;;  %v3470_v39 = vand.u32 3, %v3469_v36 }
 0x9f0   : > { %v3037_v52 = vor.u32 %v3036_v49, %v3035_v47  ;;  %v3040_v53 = vshll.u32 %v3039_v50, 23  ;;  %v3133_v54 = vclz %v4047_v51  ;;  %vm3163_vm6 = vcmp.eq.s32.totalorder %v3158_v46, 2 }
 0x9f1   : > { %vm3475_vm5 = vcmp.eq.s32.totalorder %v3470_v39, 2  ;;  %vm3472_vm7 = vcmp.eq.s32.totalorder %v3470_v39, 0  ;;  %vm3160_vm8 = vcmp.eq.s32.totalorder %v3158_v46, 0 }
 0x9f2   : > { %v3041_v56 = vor.u32 4788187, %v3040_v53  ;;  %v4048_v57 = vadd.s32 4294967294, %v3133_v54  ;;  %v3044_v60 = vcvt.s32.f32 %v3037_v52 }
 0x9f4   : > { %v3042_v58 = vand.u32 2147483647, %v3041_v56  ;;  %vm4049_vm9 = vcmp.lt.s32.totalorder %v4048_v57, 0 }
 0x9f5   : > { %v3136_v2 = vsel %vm4049_vm9, 0, %v4048_v57  ;;  %vm3471_vm9 = vcmp.lt.s32.totalorder %v3470_v39, 2 }
 0x9f6   : > { %v3045_v62 = vmul.f32 %v3044_v60, %v3042_v58  ;;  %v3137_v32 = vsub.s32 32, %v3136_v2  ;;  %v3141_v5 = vsub.s32 4294967266, %v3136_v2  ;;  %v3138_v8 = vshll.u32 %v3129_v43, %v3136_v2 }
 0x9f8   : > { %v3046_v6 = vxor.u32 2147483648, %v3045_v62  ;;  %v3139_v9 = vshrl.u32 %v3121_v31, %v3137_v32  ;;  %v3142_v12 = vadd.s32 127, %v3141_v5 }
 0x9fa   : > { %v3047_v14 = vsel %vm2964_vm10, %v3046_v6, %v3045_v62  ;;  %v3140_v17 = vor.u32 %v3139_v9, %v3138_v8  ;;  %v3143_v4 = vshll.u32 %v3142_v12, 23  ;;  %vm3159_vm10 = vcmp.lt.s32.totalorder %v3158_v46, 2 }
 0x9fb   : > { %v3050_v16 = vsel %vm2963_vm11, %v6059_v35, %v3047_v14  ;;  %vm3157_vm11 = vweird.f32 %v6064_v41 }
 0x9fc   : > { %5105 = vcosq.f32 %v3050_v16  ;;  %v3144_v11 = vor.u32 4788187, %v3143_v4  ;;  %v3147_v21 = vcvt.s32.f32 %v3140_v17 }
 0x9fd   : > { %5107 = vsinq.f32 %v3050_v16 }
 0x9fe   : > { %v3145_v20 = vand.u32 2147483647, %v3144_v11 }
 0xa00   : > { %v3148_v23 = vmul.f32 %v3147_v21, %v3145_v20 }
 0xa02   : > { %v3149_v7 = vxor.u32 2147483648, %v3148_v23 }
 0xa04   : > { %v3150_v18 = vsel %vm3067_vm12, %v3149_v7, %v3148_v23 }
 0xa05   : > { %v3153_v26 = vsel %vm3066_vm13, %v6064_v41, %v3150_v18 }
 0xa06   : > { %v5106_v25 = vpop.eup %5105  ;;  %5109 = vcosq.f32 %v3153_v26 }
 0xa07   : > { %v5108_v27 = vpop.eup %5107  ;;  %v3061_v28 = vxor.u32 2147483648, %v5106_v25  ;;  %5111 = vsinq.f32 %v3153_v26 }
 0xa08   : > { %v3058_v30 = vxor.u32 2147483648, %v5108_v27 }
 0xa09   : > { %v3373_v34 = vsel %vm3371_vm15, %v3061_v28, %v5108_v27  ;;  %v3062_v38 = vsel %vm3060_vm14, %v3061_v28, %v5108_v27 }
 0xa0a   : > { %v3370_v40 = vsel %vm3368_vm0, %v5106_v25, %v3058_v30  ;;  %v3059_v48 = vsel %vm3057_vm1, %v5106_v25, %v3058_v30 }
 0xa0b   : > { %v3374_v42 = vsel %vm3367_vm2, %v3370_v40, %v3373_v34  ;;  %v3063_v43 = vsel %vm3056_vm3, %v3059_v48, %v3062_v38 }
 0xa0c   : > { %v6137_v44 = vsel %vm3054_vm4, nan, %v3374_v42  ;;  %v6139_v45 = vsel %vm3054_vm4, nan, %v3063_v43 }
 0xa0d   : > { %v3529_v2 = vmul.f32 -1.0, %v6137_v44  ;;  %v3500_v31 = vmul.f32 -1.0, %v6139_v45 }
 0xa10   : > { %v5110_v47 = vpop.eup %5109 }
 0xa11   : > { %v5112_v49 = vpop.eup %5111  ;;  %v3164_v50 = vxor.u32 2147483648, %v5110_v47 }
 0xa12   : > { %v3161_v51 = vxor.u32 2147483648, %v5112_v49 }
 0xa13   : > { %v3477_v52 = vsel %vm3475_vm5, %v3164_v50, %v5112_v49  ;;  %v3165_v53 = vsel %vm3163_vm6, %v3164_v50, %v5112_v49 }
 0xa14   : > { %v3474_v35 = vsel %vm3472_vm7, %v5110_v47, %v3161_v51  ;;  %v3162_v54 = vsel %vm3160_vm8, %v5110_v47, %v3161_v51 }
 0xa15   : > { %v3478_v56 = vsel %vm3471_vm9, %v3474_v35, %v3477_v52  ;;  %v3166_v57 = vsel %vm3159_vm10, %v3162_v54, %v3165_v53 }
 0xa16   : > { %v6142_v58 = vsel %vm3157_vm11, nan, %v3478_v56  ;;  %v6144_v60 = vsel %vm3157_vm11, nan, %v3166_v57 }
 0xa17   : > { %v3523_v62 = vmul.f32 -1.0, %v6142_v58  ;;  %v3494_v0 = vmul.f32 -1.0, %v6144_v60 }
 0xa19   : > { %3525 = vrot.lane.b32.xlu0 %v3523_v62, %s5226_s20  ;;  %3496 = vrot.lane.b32.xlu1 %v3494_v0, %s5226_s20 }
 0xa1d   : > { %3531 = vrot.lane.b32.xlu0 %v3529_v2, %s5226_s20  ;;  %3502 = vrot.lane.b32.xlu1 %v3500_v31, %s5226_s20 }
 0xa21   : > { %3516 = vrot.lane.b32.xlu0 %v6142_v58, %s5226_s20  ;;  %3487 = vrot.lane.b32.xlu1 %v6144_v60, %s5226_s20 }
 0xa2d   : > { %v2849_v41 = vpop.permute.xlu1 %2848 }
 0xa2e   : > { %v6159_v32 = vadd.f32 %v2849_v41, %v6056_v33 }
 0xa30   : > { %v2862_v5 = vand.u32 2139095040, %v6159_v32  ;;  %v2859_v12 = vand.u32 2147483647, %v6159_v32  ;;  %vm2861_vm3 = vcmp.lt.s32.totalorder %v6159_v32, 0  ;;  %vm2951_vm10 = vweird.f32 %v6159_v32 }
 0xa32   : > { %v2863_v6 = vshrl.u32 %v2862_v5, 23  ;;  %v2866_v16 = vand.u32 8388607, %v2859_v12  ;;  %vm2860_vm4 = vcmp.le.f32.partialorder %v2859_v12, 0.7853982 }
 0xa34   : > { %v4038_v8 = vadd.s32 4294967169, %v2863_v6  ;;  %v2867_v37 = vor.u32 8388608, %v2866_v16 }
 0xa36   : > { %v2869_v9 = vadd.s32 1, %v4038_v8 }
 0xa38   : > { %vm2870_vm12 = vcmp.gt.s32.totalorder %v2869_v9, 0 }
 0xa39   : > { %v2871_v14 = vsel %vm2870_vm12, %v2869_v9, 0 }
 0xa3a   : > { %v2873_v15 = vand.u32 31, %v2871_v14  ;;  %v2872_v4 = vshrl.u32 %v2871_v14, 5 }
 0xa3c   : > { %v2874_v17 = vsub.s32 32, %v2873_v15  ;;  %v2876_v11 = vshll.u32 %v5227_v55, %v2873_v15  ;;  %v2879_v33 = vshll.u32 %v5228_v59, %v2873_v15  ;;  %v2882_v21 = vshll.u32 %v5229_v61, %v2873_v15 }
 0xa3d   : > { %v2885_v23 = vshll.u32 %v5230_v63, %v2873_v15  ;;  %v2888_v7 = vshll.u32 %v5231_v1, %v2873_v15  ;;  %vm2891_vm13 = vcmp.lt.s32.totalorder %v2872_v4, 1  ;;  %vm2894_vm14 = vcmp.lt.s32.totalorder %v2872_v4, 4 }
 0xa3e   : > { %v2877_v19 = vshrl.u32 %v5228_v59, %v2874_v17  ;;  %v2880_v20 = vshrl.u32 %v5229_v61, %v2874_v17  ;;  %v2883_v22 = vshrl.u32 %v5230_v63, %v2874_v17  ;;  %v2886_v3 = vshrl.u32 %v5231_v1, %v2874_v17 }
 0xa3f   : > { %v2889_v10 = vshrl.u32 %v5232_v13, %v2874_v17  ;;  %v2875_v29 = vshrl.u32 %v5227_v55, %v2874_v17  ;;  %vm2893_vm15 = vcmp.lt.s32.totalorder %v2872_v4, 3  ;;  %vm2892_vm0 = vcmp.lt.s32.totalorder %v2872_v4, 2 }
 0xa40   : > { %v2878_v18 = vor.u32 %v2877_v19, %v2876_v11  ;;  %v2881_v24 = vor.u32 %v2880_v20, %v2879_v33  ;;  %v2884_v25 = vor.u32 %v2883_v22, %v2882_v21  ;;  %v2887_v26 = vor.u32 %v2886_v3, %v2885_v23 }
 0xa41   : > { %v2890_v59 = vor.u32 %v2889_v10, %v2888_v7  ;;  %v2907_v13 = vshll.u32 %v2867_v37, 8 }
 0xa42   : > { %v2896_v27 = vsel %vm2894_vm14, %v2884_v25, 2102212464  ;;  %v2899_v61 = vsel %vm2891_vm13, %v2878_v18, %v2881_v24  ;;  %v2903_v28 = vsel %vm2891_vm13, %v2881_v24, %v2884_v25  ;;  %v2900_v63 = vsel %vm2894_vm14, %v2887_v26, 920167782 }
 0xa43   : > { %v2904_v30 = vsel %vm2894_vm14, %v2890_v59, 1326507024  ;;  %v2901_v1 = vsel %vm2893_vm15, %v2884_v25, %v2900_v63  ;;  %v2895_v38 = vsel %vm2891_vm13, %v2875_v29, %v2878_v18  ;;  %v2897_v40 = vsel %vm2893_vm15, %v2881_v24, %v2896_v27 }
 0xa44   : > { %v2905_v34 = vsel %vm2893_vm15, %v2887_v26, %v2904_v30  ;;  %v2902_v48 = vsel %vm2892_vm0, %v2899_v61, %v2901_v1  ;;  %v2898_v47 = vsel %vm2892_vm0, %v2895_v38, %v2897_v40  ;;  %vm3813_vm13 = vcmask 8192  }
 0xa45   : > { %v2906_v36 = vsel %vm2892_vm0, %v2903_v28, %v2905_v34  ;;  %v6179_v39 = vmul.u32.u64.low %v2907_v13, %v2902_v48  ;;  %v6180_v46 = vmul.u32.u64.high %v2907_v13, %v2902_v48, %v6179_v39  ;;  %v2914_v49 = vmul.u32 %v2907_v13, %v2898_v47 }
 0xa46   : > { %v6176_v42 = vmul.u32.u64.low %v2907_v13, %v2906_v36  ;;  %v6177_v43 = vmul.u32.u64.high %v2907_v13, %v2906_v36, %v6176_v42 }
 0xa47   : > { %v2917_v55 = vadd.s32 1, %v6180_v46 }
 0xa48   : > { %vm2916_vm1 = vc.u32 %v6177_v43, %v6179_v39  ;;  %v2915_v31 = vadd.s32 %v6179_v39, %v6177_v43 }
 0xa49   : > { %v2918_v50 = vsel %vm2916_vm1, %v2917_v55, %v6180_v46 }
 0xa4a   : > { %v2919_v51 = vadd.s32 %v2918_v50, %v2914_v49 }
 0xa4c   : > { %v2920_v52 = vadd.s32 536870912, %v2919_v51 }
 0xa4e   : > { %v2921_v53 = vshrl.u32 %v2920_v52, 30 }
 0xa50   : > { %v2922_v35 = vshll.u32 %v2921_v53, 30  ;;  %v2945_v21 = vsub.s32 4, %v2921_v53 }
 0xa52   : > { %v2923_v54 = vsub.s32 %v2919_v51, %v2922_v35  ;;  %v2946_v22 = vsel %vm2861_vm3, %v2945_v21, %v2921_v53 }
 0xa53   : > { %v2948_v3 = vsel %vm2860_vm4, 0, %v2946_v22  ;;  %v3759_v22 = vstv %s4076_s13  ;;  %s4065_s13 = sld [smem:[#allocation2 + $0x80]] }
 0xa54   : > { %v2925_v56 = vsub.s32 0, %v2923_v54  ;;  %v3261_v10 = vadd.s32 3, %v2948_v3  ;;  %v2952_v37 = vand.u32 3, %v2948_v3 }
 0xa56   : > { %v4039_v57 = vmin.u32 %v2925_v56, %v2923_v54  ;;  %v3262_v25 = vand.u32 3, %v3261_v10  ;;  %vm2954_vm5 = vcmp.eq.s32.totalorder %v2952_v37, 0  ;;  %vm2957_vm6 = vcmp.eq.s32.totalorder %v2952_v37, 2 }
 0xa57   : > { %vm2953_vm7 = vcmp.lt.s32.totalorder %v2952_v37, 2 }
 0xa58   : > { %v2927_v62 = vclz %v4039_v57  ;;  %vm3264_vm8 = vcmp.eq.s32.totalorder %v3262_v25, 0  ;;  %vm3267_vm9 = vcmp.eq.s32.totalorder %v3262_v25, 2  ;;  %vm3263_vm11 = vcmp.lt.s32.totalorder %v3262_v25, 2 }
 0xa5a   : > { %v4040_v0 = vadd.s32 4294967294, %v2927_v62 }
 0xa5c   : > { %vm4041_vm2 = vcmp.lt.s32.totalorder %v4040_v0, 0 }
 0xa5d   : > { %v2930_v2 = vsel %vm4041_vm2, 0, %v4040_v0 }
 0xa5e   : > { %v2931_v41 = vsub.s32 32, %v2930_v2  ;;  %v2935_v5 = vsub.s32 4294967266, %v2930_v2  ;;  %v2932_v6 = vshll.u32 %v2923_v54, %v2930_v2 }
 0xa60   : > { %v2933_v8 = vshrl.u32 %v2915_v31, %v2931_v41  ;;  %v2936_v9 = vadd.s32 127, %v2935_v5  ;;  %v3685_v41 = vstv %s4071_s27  ;;  %s4067_s27 = sld [smem:[#allocation2 + $0x82]] }
 0xa62   : > { %v2934_v14 = vor.u32 %v2933_v8, %v2932_v6  ;;  %v2937_v15 = vshll.u32 %v2936_v9, 23 }
 0xa64   : > { %v2938_v16 = vor.u32 4788187, %v2937_v15  ;;  %v2941_v4 = vcvt.s32.f32 %v2934_v14 }
 0xa66   : > { %v2939_v17 = vand.u32 2147483647, %v2938_v16 }
 0xa68   : > { %v2942_v11 = vmul.f32 %v2941_v4, %v2939_v17  ;;  %v3745_v4 = vstv %s4075_s30  ;;  %s4068_s30 = sld [smem:[#allocation2 + $0x83]] }
 0xa6a   : > { %v2943_v33 = vxor.u32 2147483648, %v2942_v11 }
 0xa6c   : > { %v2944_v19 = vsel %vm2861_vm3, %v2943_v33, %v2942_v11 }
 0xa6d   : > { %v2947_v20 = vsel %vm2860_vm4, %v6159_v32, %v2944_v19 }
 0xa6e   : > { %5113 = vcosq.f32 %v2947_v20 }
 0xa6f   : > { %5115 = vsinq.f32 %v2947_v20 }
 0xa78   : > { %v5114_v23 = vpop.eup %5113 }
 0xa79   : > { %v5116_v7 = vpop.eup %5115  ;;  %v2958_v24 = vxor.u32 2147483648, %v5114_v23 }
 0xa7a   : > { %v2955_v18 = vxor.u32 2147483648, %v5116_v7 }
 0xa7b   : > { %v2959_v59 = vsel %vm2957_vm6, %v2958_v24, %v5116_v7  ;;  %v3269_v61 = vsel %vm3267_vm9, %v2958_v24, %v5116_v7 }
 0xa7c   : > { %v2956_v26 = vsel %vm2954_vm5, %v5114_v23, %v2955_v18  ;;  %v3266_v27 = vsel %vm3264_vm8, %v5114_v23, %v2955_v18 }
 0xa7d   : > { %v2960_v12 = vsel %vm2953_vm7, %v2956_v26, %v2959_v59  ;;  %v3270_v30 = vsel %vm3263_vm11, %v3266_v27, %v3269_v61 }
 0xa7e   : > { %v6195_v63 = vsel %vm2951_vm10, nan, %v2960_v12  ;;  %v6201_v13 = vsel %vm2951_vm10, nan, %v3270_v30 }
 0xa7f   : > { %v6198_v1 = vadd.f32 1.0, %v6195_v63  ;;  %v3491_v34 = vmul.f32 -1.0, %v6195_v63  ;;  %v3520_v36 = vmul.f32 -1.0, %v6201_v13 }
 0xa81   : > { %v3492_v43 = vadd.f32 1.0, %v3491_v34 }
 0xa8b   : > { %v6191_v28 = vpop.permute.xlu0 %3525  ;;  %v6193_v29 = vpop.permute.xlu1 %3496 }
 0xa8f   : > { %v3532_v38 = vpop.permute.xlu0 %3531  ;;  %v3503_v40 = vpop.permute.xlu1 %3502 }
 0xa90   : > { %v3534_v48 = vadd.f32 %v3532_v38, %v6201_v13  ;;  %v3505_v32 = vadd.f32 %v3503_v40, %v6198_v1  ;;  %v3536_v55 = vadd.f32 %v3532_v38, %v3520_v36  ;;  %v3507_v49 = vadd.f32 %v3503_v40, %v3492_v43 }
 0xa92   : > { %v3535_v42 = vadd.f32 %v3534_v48, %v6191_v28  ;;  %v3506_v39 = vadd.f32 %v3505_v32, %v6193_v29 }
 0xa93   : > { %v6208_v46 = vpop.permute.xlu0 %3516  ;;  %v3488_v47 = vpop.permute.xlu1 %3487 }
 0xa94   : > { %3551 = vrot.lane.b32.xlu0 %v3535_v42, %s5225_s23  ;;  %3546 = vrot.lane.b32.xlu1 %v3506_v39, %s5225_s23  ;;  %v3537_v50 = vadd.f32 %v3536_v55, %v6208_v46  ;;  %v3508_v51 = vadd.f32 %v3507_v49, %v3488_v47 }
 0xa98   : > { %3563 = vrot.lane.b32.xlu0 %v3537_v50, %s5225_s23  ;;  %3558 = vrot.lane.b32.xlu1 %v3508_v51, %s5225_s23 }
 0xa9c   : > { %3511 = vrot.lane.b32.xlu0 %v6137_v44, %s5226_s20  ;;  %3482 = vrot.lane.b32.xlu1 %v6139_v45, %s5226_s20 }
 0xb06   : > { %v3552_v52 = vpop.permute.xlu0 %3551  ;;  %v3547_v53 = vpop.permute.xlu1 %3546 }
 0xb07   : > { %v3554_v35 = vmul.f32 %v3552_v52, %v6137_v44  ;;  %v3576_v54 = vmul.f32 %v3552_v52, %v6139_v45  ;;  %v3549_v56 = vmul.f32 %v3547_v53, %v6139_v45  ;;  %v3577_v57 = vmul.f32 %v3547_v53, %v6137_v44 }
 0xb08   : > { %v3733_v52 = vstv %s4073_s16  ;;  %v3739_v53 = vstv %s4074_s17  ;;  %s512_s16 = sand.u32 1, %s5209_s19   ;;  %s4078_s17 = sshll.u32 %s5336_s22, 4 }
 0xb09   : > { %v3555_v62 = vsub.f32 %v3549_v56, %v3554_v35  ;;  %v3578_v0 = vadd.f32 %v3577_v57, %v3576_v54 }
 0xb0a   : > { %v3564_v2 = vpop.permute.xlu0 %3563  ;;  %v3559_v31 = vpop.permute.xlu1 %3558 }
 0xb0b   : > { %v6223_v5 = vmul.f32 0.25, %v3555_v62  ;;  %v6225_v6 = vmul.f32 0.25, %v3578_v0  ;;  %v3566_v8 = vmul.f32 %v3564_v2, %v6142_v58  ;;  %v3580_v9 = vmul.f32 %v3564_v2, %v6144_v60 }
 0xb0c   : > { %v3561_v14 = vmul.f32 %v3559_v31, %v6144_v60  ;;  %v3581_v45 = vmul.f32 %v3559_v31, %v6142_v58  ;;  %v3699_v60 = vstv %s4072_s26  ;;  %s4062_s26 = sld [smem:[#allocation2 + $0x1]] }
 0xb0d   : > { %v3692_v44 = vmul.f32 %v3685_v41, %v6225_v6  ;;  %v3686_v15 = vmul.f32 %v3685_v41, %v6223_v5  ;;  %v3752_v33 = vmul.f32 %v3745_v4, %v6225_v6  ;;  %v3746_v58 = vmul.f32 %v3745_v4, %v6223_v5 }
 0xb0e   : > { %v3567_v16 = vsub.f32 %v3561_v14, %v3566_v8  ;;  %v3582_v17 = vadd.f32 %v3581_v45, %v3580_v9  ;;  %v3512_v7 = vpop.permute.xlu0 %3511  ;;  %v3483_v10 = vpop.permute.xlu1 %3482 }
 0xb0f   : > { %3694 = vrot.lane.b32.xlu0 %v3692_v44, %s5226_s20  ;;  %3688 = vrot.lane.b32.xlu1 %v3686_v15, %s5226_s20  ;;  %v3522_v37 = vadd.f32 %v3520_v36, %v3512_v7  ;;  %v3485_v18 = vadd.f32 %v3483_v10, %v6198_v1  ;;  %v3493_v24 = vadd.f32 %v3492_v43, %v3483_v10 }
 0xb10   : > { %v6235_v11 = vmul.f32 0.25, %v3582_v17  ;;  %v6238_v19 = vmul.f32 0.25, %v3567_v16  ;;  %v3514_v25 = vadd.f32 %v3512_v7, %v6201_v13 }
 0xb11   : > { %v3528_v26 = vadd.f32 %v6191_v28, %v3522_v37  ;;  %v3490_v59 = vadd.f32 %v3488_v47, %v3485_v18  ;;  %v3499_v12 = vadd.f32 %v6193_v29, %v3493_v24  ;;  %v3641_v37 = vstv %s4067_s27 }
 0xb12   : > { %v3706_v20 = vmul.f32 %v3699_v60, %v6235_v11  ;;  %v3700_v21 = vmul.f32 %v3699_v60, %v6238_v19  ;;  %v3766_v23 = vmul.f32 %v3759_v22, %v6235_v11  ;;  %v3760_v3 = vmul.f32 %v3759_v22, %v6238_v19 }
 0xb13   : > { %3754 = vrot.lane.b32.xlu0 %v3752_v33, %s5226_s20  ;;  %3748 = vrot.lane.b32.xlu1 %v3746_v58, %s5226_s20  ;;  %v3519_v27 = vadd.f32 %v6208_v46, %v3514_v25  ;;  %v3572_v61 = vmul.f32 %v3528_v26, %v6195_v63  ;;  %v3569_v30 = vmul.f32 0.0, %v3490_v59  ;;  %v3573_v34 = vmul.f32 %v3499_v12, %v6201_v13 }
 0xb14   : > { %v3542_v40 = vmul.f32 %v3528_v26, %v6201_v13  ;;  %v3541_v1 = vmul.f32 %v3499_v12, %v6195_v63  ;;  %v3673_v46 = vstv %s4069_s14  ;;  %v3679_v13 = vstv %s4070_s29  ;;  %s4066_s14 = sld [smem:[#allocation2 + $0x81]] }
 0xb15   : > { %v3538_v38 = vmul.f32 0.0, %v3519_v27  ;;  %v3570_v48 = vadd.f32 %v3569_v30, %v3519_v27  ;;  %v3574_v32 = vadd.f32 %v3573_v34, %v3572_v61  ;;  %v3648_v18 = vmul.f32 %v3641_v37, %v6225_v6  ;;  %s4077_s29 = sld [smem:[#allocation5 + $0x1]] }
 0xb16   : > { %v3543_v36 = vsub.f32 %v3541_v1, %v3542_v40  ;;  %v3642_v24 = vmul.f32 %v3641_v37, %v6223_v5  ;;  %v3655_v25 = vstv %s4068_s30  ;;  %v5233_v27 = vmov 1  }
 0xb17   : > { %3708 = vrot.lane.b32.xlu0 %v3706_v20, %s5226_s20  ;;  %3702 = vrot.lane.b32.xlu1 %v3700_v21, %s5226_s20  ;;  %v3539_v28 = vsub.f32 %v3490_v59, %v3538_v38  ;;  %v6260_v29 = vmul.f32 0.25, %v3570_v48  ;;  %v6262_v42 = vmul.f32 0.25, %v3574_v32  ;;  %v3597_v21 = vstv %s4063_s25  ;;  %s513_s25 = scalar_lea.vmem [#allocation7], %s512_s16 }
 0xb18   : > { %v6266_v39 = vmul.f32 0.25, %v3543_v36  ;;  %v3604_v22 = vmul.f32 %v3597_v21, %v6225_v6  ;;  %v3662_v26 = vmul.f32 %v3655_v25, %v6235_v11  ;;  %v3656_v59 = vmul.f32 %v3655_v25, %v6238_v19  ;;  %5103 = vset.pattern.permute.xlu1 %v5233_v27  ;;  %5104 = vset.pattern.permute.xlu0 %v5233_v27 }
 0xb19   : > { %v6264_v43 = vmul.f32 0.25, %v3539_v28  ;;  %v3676_v63 = vmul.f32 %v3673_v46, %v6260_v29  ;;  %v3682_v55 = vmul.f32 %v3679_v13, %v6262_v42  ;;  %v3736_v56 = vmul.f32 %v3733_v52, %v6260_v29 }
 0xb1a   : > { %v3680_v51 = vmul.f32 %v3679_v13, %v6266_v39  ;;  %v3742_v57 = vmul.f32 %v3739_v53, %v6262_v42  ;;  %v3740_v31 = vmul.f32 %v3739_v53, %v6266_v39  ;;  %v3591_v36 = vstv %s4062_s26  ;;  %s3816_s26 = scalar_lea.sflag [#allocation3], %s512_s16 }
 0xb1b   : > { %3768 = vrot.lane.b32.xlu0 %v3766_v23, %s5226_s20  ;;  %3762 = vrot.lane.b32.xlu1 %v3760_v3, %s5226_s20  ;;  %v3674_v50 = vmul.f32 %v3673_v46, %v6264_v43  ;;  %v3683_v54 = vadd.f32 %v3682_v55, %v3676_v63  ;;  %v3734_v2 = vmul.f32 %v3733_v52, %v6264_v43  ;;  %v3611_v3 = vstv %s4064_s24  ;;  %s3828_s24 = sshll.u32 %s513_s25, 4  ;;  %s6323_s24 = int_to_ptr.vmem [resolvable:$true] %s3828_s24 }
 0xb1c   : > { %v3743_v14 = vadd.f32 %v3742_v57, %v3736_v56  ;;  %v3598_v23 = vmul.f32 %v3597_v21, %v6223_v5  ;;  %v3618_v7 = vmul.f32 %v3611_v3, %v6235_v11  ;;  %v3612_v10 = vmul.f32 %v3611_v3, %v6238_v19  ;;  %s5147_s22 = scalar_lea.vmem %s6323_s24, 16 }
 0xb1d   : > { %v3681_v0 = vadd.f32 %v3680_v51, %v3674_v50  ;;  %v3741_v15 = vadd.f32 %v3740_v31, %v3734_v2  ;;  %v3629_v46 = vstv %s4065_s13  ;;  %v3635_v13 = vstv %s4066_s14  ;;  %p5148_p10 = scmp.ne.s32.totalorder %s6323_s24, %s5147_s22  ;;  %s5234_s13 = smov [#allocation7]  }
 0xb1e   : > { %v3592_v63 = vmul.f32 %v3591_v36, %v6266_v39  ;;  %v3630_v50 = vmul.f32 %v3629_v46, %v6264_v43  ;;  %v3636_v51 = vmul.f32 %v3635_v13, %v6266_v39  ;;  %v3632_v57 = vmul.f32 %v3629_v46, %v6260_v29  ;;  %s5151_s14 = sshll.u32 %s5234_s13, 4  ;;  %s5152_s14 = int_to_ptr.vmem [resolvable:$false] %s5151_s14 }
 0xb1f   : > { %p5149_p0 = pnand %p5148_p10, %p6405_p12  ;;  %p5154_p8 = scmp.lt.s32.totalorder %s6323_s24, %s5152_s14 }
 0xb20   : > { %v3637_v56 = vadd.f32 %v3636_v51, %v3630_v50 }
 0xb21   : > { %p5150_p7 = pneg %p5149_p0 }
 0xb81   : > { %v3695_v47 = vpop.permute.xlu0 %3694  ;;  %v3689_v49 = vpop.permute.xlu1 %3688 }
 0xb82   : > { %v3697_v41 = vadd.f32 %v3695_v47, %v3683_v54  ;;  %v3691_v8 = vadd.f32 %v3689_v49, %v3681_v0  ;;  %v3594_v47 = vmul.f32 %v3591_v36, %v6262_v42 }
 0xb85   : > { %v3755_v35 = vpop.permute.xlu0 %3754  ;;  %v3749_v62 = vpop.permute.xlu1 %3748 }
 0xb86   : > { %v3757_v17 = vadd.f32 %v3755_v35, %v3743_v14  ;;  %v3751_v4 = vadd.f32 %v3749_v62, %v3741_v15 }
 0xb89   : > { %v3709_v9 = vpop.permute.xlu0 %3708  ;;  %v3703_v44 = vpop.permute.xlu1 %3702 }
 0xb8a   : > { %v3711_v45 = vadd.f32 %v3709_v9, %v3697_v41  ;;  %v3705_v16 = vadd.f32 %v3703_v44, %v3691_v8  ;;  %v3638_v41 = vmul.f32 %v3635_v13, %v6262_v42 }
 0xb8c   : > { %3723 = vrot.lane.b32.xlu0 %v3711_v45, %s5225_s23  ;;  %3713 = vrot.lane.b32.xlu1 %v3705_v16, %s5225_s23  ;;  %v3639_v44 = vadd.f32 %v3638_v41, %v3632_v57 }
 0xb8d   : > { %v3769_v33 = vpop.permute.xlu0 %3768  ;;  %v3763_v60 = vpop.permute.xlu1 %3762 }
 0xb8e   : > { %v3771_v58 = vadd.f32 %v3769_v33, %v3757_v17  ;;  %v3765_v20 = vadd.f32 %v3763_v60, %v3751_v4 }
 0xb90   : > { %3783 = vrot.lane.b32.xlu0 %v3771_v58, %s5225_s23  ;;  %3773 = vrot.lane.b32.xlu1 %v3765_v20, %s5225_s23  ;;  %s3584_s23 = sld [smem:[#allocation2]] }
 0xb94   : > { %3606 = vrot.lane.b32.xlu0 %v3604_v22, %s5226_s20  ;;  %3600 = vrot.lane.b32.xlu1 %v3598_v23, %s5226_s20 }
 0xb96   : > { %v3585_v28 = vstv %s3584_s23  ;;  %s6321_s23 = scalar_lea.hbm %s6378_s15, %s4078_s17 }
 0xb98   : > { %3620 = vrot.lane.b32.xlu0 %v3618_v7, %s5226_s20  ;;  %3614 = vrot.lane.b32.xlu1 %v3612_v10, %s5226_s20 }
 0xb9c   : > { %3650 = vrot.lane.b32.xlu0 %v3648_v18, %s5226_s20  ;;  %3644 = vrot.lane.b32.xlu1 %v3642_v24, %s5226_s20 }
 0xba0   : > { %3664 = vrot.lane.b32.xlu0 %v3662_v26, %s5226_s20  ;;  %3658 = vrot.lane.b32.xlu1 %v3656_v59, %s5226_s20 }
 0xbfe   : > { %v3724_v12 = vpop.permute.xlu0 %3723  ;;  %v3714_v30 = vpop.permute.xlu1 %3713 }
 0xbff   : > { %v3726_v61 = vmul.f32 %v3724_v12, %v6225_v6  ;;  %v3716_v34 = vmul.f32 %v3714_v30, %v6223_v5 }
 0xc01   : > { %3728 = vrot.lane.b32.xlu0 %v3726_v61, %s5226_s20  ;;  %3718 = vrot.lane.b32.xlu1 %v3716_v34, %s5226_s20 }
 0xc02   : > { %v3784_v38 = vpop.permute.xlu0 %3783  ;;  %v3774_v1 = vpop.permute.xlu1 %3773 }
 0xc03   : > { %v3786_v40 = vmul.f32 %v3784_v38, %v6235_v11  ;;  %v3776_v48 = vmul.f32 %v3774_v1, %v6238_v19  ;;  %v3588_v11 = vmul.f32 %v3585_v28, %v6260_v29  ;;  %v3586_v19 = vmul.f32 %v3585_v28, %v6264_v43 }
 0xc05   : > { %3788 = vrot.lane.b32.xlu0 %v3786_v40, %s5226_s20  ;;  %3778 = vrot.lane.b32.xlu1 %v3776_v48, %s5226_s20  ;;  %v3595_v52 = vadd.f32 %v3594_v47, %v3588_v11  ;;  %v3593_v53 = vadd.f32 %v3592_v63, %v3586_v19  ;;  %s3792_s20 = sld [smem:[#allocation5]] }
 0xc06   : > { %v3601_v6 = vpop.permute.xlu1 %3600  ;;  %v3607_v5 = vpop.permute.xlu0 %3606 }
 0xc07   : > { %v3609_v35 = vadd.f32 %v3607_v5, %v3595_v52  ;;  %v3603_v54 = vadd.f32 %v3601_v6, %v3593_v53 }
 0xc0a   : > { %v3615_v32 = vpop.permute.xlu1 %3614  ;;  %v3621_v55 = vpop.permute.xlu0 %3620 }
 0xc0b   : > { %v3623_v2 = vadd.f32 %v3621_v55, %v3609_v35  ;;  %v3617_v31 = vadd.f32 %v3615_v32, %v3603_v54  ;;  %v3793_v10 = vstv %s3792_s20  ;;  %s5153_s20 = scalar_lea.vmem %s5152_s14, 32 }
 0xc0c   : > { %p5155_p11 = scmp.lt.s32.totalorder %s5153_s20, %s5147_s22 }
 0xc0d   : > { %v3626_v14 = vmul.f32 %v3623_v2, %v6260_v29  ;;  %v3624_v45 = vmul.f32 %v3617_v31, %v6264_v43 }
 0xc0e   : > { %v3645_v49 = vpop.permute.xlu1 %3644  ;;  %v3651_v62 = vpop.permute.xlu0 %3650  ;;  %p5156_p13 = por %p5155_p11, %p5154_p8 }
 0xc0f   : > { %v3647_v8 = vadd.f32 %v3645_v49, %v3637_v56  ;;  %v3653_v16 = vadd.f32 %v3651_v62, %v3639_v44  ;;  %v3627_v4 = vadd.f32 %v3626_v14, %v3624_v45 }
 0xc10   : > { %p5157_p1 = pnand %p5156_p13, %p5150_p7 }
 0xc12   : > { %v3659_v0 = vpop.permute.xlu1 %3658  ;;  %v3665_v15 = vpop.permute.xlu0 %3664 }
 0xc13   : > { %v3661_v9 = vadd.f32 %v3659_v0, %v3647_v8  ;;  %v3667_v33 = vadd.f32 %v3665_v15, %v3653_v16 }
 0xc15   : > { %v3668_v17 = vmul.f32 %v3661_v9, %v6266_v39  ;;  %v3670_v60 = vmul.f32 %v3667_v33, %v6262_v42  ;;  %v3796_v39 = vstv %s4077_s29  ;;  %v3798_v42 = vlaneseq }
 0xc17   : > { %v3669_v58 = vadd.f32 %v3668_v17, %v3627_v4  ;;  %v3799_v26 = vand.u32 127, %v3798_v42 }
 0xc19   : > { %v3671_v20 = vadd.f32 %v3670_v60, %v3669_v58  ;;  %vm3800_vm12 = vcmp.eq.s32.totalorder %v3799_v26, 0 }
 0xc73   : > { %v3729_v21 = vpop.permute.xlu0 %3728  ;;  %v3719_v22 = vpop.permute.xlu1 %3718 }
 0xc74   : > { %v3721_v23 = vadd.f32 %v3719_v22, %v3671_v20 }
 0xc76   : > { %v3731_v29 = vadd.f32 %v3729_v21, %v3721_v23 }
 0xc77   : > { %v3779_v43 = vpop.permute.xlu1 %3778  ;;  %v3789_v7 = vpop.permute.xlu0 %3788 }
 0xc78   : > { %v3781_v3 = vadd.f32 %v3779_v43, %v3731_v29 }
 0xc7a   : > { %v3791_v37 = vadd.f32 %v3789_v7, %v3781_v3 }
 0xc7c   : > { %v3794_v18 = vmul.f32 %v3793_v10, %v3791_v37 }
 0xc7e   : > { %v3797_v24 = vadd.f32 %v3796_v39, %v3794_v18 }
 0xc80   : > { %3804 = vperm.xlu1 %5103, %v3797_v24   ;;  %v3801_v25 = vsub.f32 1.0, %v3797_v24 }
 0xc82   : > { %3809 = vperm.xlu0 %5104, %v3801_v25  }
 0xcff   : > { %v3805_v59 = vpop.permute.xlu1 %3804 }
 0xd01   : > { %v3810_v12 = vpop.permute.xlu0 %3809 }
 0xd02   : > { %v3812_v27 = vsel %vm3800_vm12, %v3805_v59, %v3810_v12 }
 0xd03   : > { %3814 = vst.msk [vmem:[%s513_s25] sm:$0x1] %vm3813_vm13, %v3812_v27 }
 0xd04   : > { %5160 = shalt.err (!%p5157_p1)
}
 0xd05   : > { %s5161_s29 = scalar_lea.hbm %s6321_s23, 16  ;;  %s5165_s25 = scalar_lea.hbm %s6378_s15, 32 }
 0xd06   : > { %p5162_p2 = scmp.ne.s32.totalorder %s6321_s23, %s5161_s29  ;;  %p5166_p9 = scmp.lt.u32.totalorder %s6321_s23, %s6378_s15 }
 0xd07   : > { %p5167_p5 = scmp.lt.u32.totalorder %s5165_s25, %s5161_s29  ;;  %p5169_p10 = scmp.lt.u32.totalorder %s5161_s29, %s6321_s23 }
 0xd08   : > { %p5163_p3 = pnand %p5162_p2, %p6405_p12 }
 0xd09   : > { %p5168_p6 = por %p5167_p5, %p5166_p9 }
 0xd0a   : > { %p5164_p4 = pneg %p5163_p3 }
 0xd0b   : > { %p5170_p0 = por %p5169_p10, %p5168_p6 }
 0xd0d   : > { %p5171_p7 = pnand %p5170_p0, %p5164_p4 }
 0xd0f   : > { %5174 = shalt.err (!%p5171_p7)
}
 0xd10   : > { %5038 = dma.vmem_to_hbm [thread:$0]  (%p6405_p12), %s6323_s24, 16, %s6321_s23, %s3816_s26  }
 0xd11 PF: > { %s6406_s22 = sld [smem:[#allocation14_spill]]  ;;  %p5055_p8 = scmp.ge.s32.totalorder %s5217_s21, 2 }
 0xd12   : > { %s3840_s13 = sand.u32 1, %s5205_s18  }
 0xd13   : > { %s3841_s14 = scalar_lea.sflag [#allocation3], %s3840_s13 }
 0xd17   : > { %p6407_p11 = scmp.ne.s32.totalorder %s6406_s22, 0 }
 0xd19   : > { %p5048_p13 = pnand %p5055_p8, %p6407_p11 }
 0xd1b   : > { %5200 = dma.done.wait (!%p5048_p13), %s3841_s14, 16  }
 0xd1c   : > { %5202 = vsyncadd (!%p5048_p13), %s3841_s14, 4294967280  ;;  %s6408_s21 = sld [smem:[#allocation12_spill]]  ;;  %s6409_s20 = sld [smem:[#allocation11_spill]] }
 0xd1d   : > { %s6410_s29 = sld [smem:[#allocation13_spill]]  ;;  %s6411_s18 = smov %s5209_s19 }
 0xd22   : > { %p27_p1 = scmp.ge.s32.totalorder %s6408_s21, 4   ;;  %s6412_s19 = smov %s6409_s20 }
 0xd23   : > { %s6413_s20 = smov %s6410_s29 }
 0xd24   :  { %29 = sbr.rel (!%p27_p1) target bundleno = 8 (0x8), region = 139 }
 0xd2b   :  { %3845 = vsyncpa [#allocation3], 1 }
 0xd2c   :  { %3847 = vsyncpa [#allocation3 + $0x1], 1 }
 0xd2d   :  { %3848 = vsyncpa [#allocation4], 1 }
 0xd2e   :  { %3850 = vsyncpa [#allocation4 + $0x1], 1 }
 0xd2f   :  { %3851 = vsyncpa [#allocation6], 1 }

</bundles_post_ra>
